<compile_context>
chip_gen: v5e
topology: v5e:2x2
jax: 0.10.0
libtpu: 0.0.40
codegen_flags: <defaults>
</compile_context>

<pallas_src>
import functools

import jax
import jax.numpy as jnp
from jax.experimental import pallas as pl
from jax.experimental.pallas import tpu as pltpu


def _round_up(x, m):
    return ((x + m - 1) // m) * m


def _cdiv(a, b):
    return (a + b - 1) // b


# ----------------------------------------------------------------------------
# Pallas kernel: fused matmul + bias + activation (the compute hot path)
# ----------------------------------------------------------------------------
def _matmul_bias_act_kernel(x_ref, w_ref, b_ref, o_ref, *, act):
    # bf16 operands, f32 accumulate on the MXU.
    acc = jnp.dot(x_ref[...], w_ref[...], preferred_element_type=jnp.float32)
    acc = acc + b_ref[...]                       # (1, Np) f32 broadcast over rows
    if act == "relu":
        acc = jnp.maximum(acc, 0.0)
    elif act == "sigmoid":
        acc = jax.nn.sigmoid(acc)                # lax.logistic -> EUP path
    o_ref[...] = acc.astype(o_ref.dtype)


def matmul_bias_act(x2d, w2d, b, act, out_dtype):
    """x2d: [M, K], w2d: [K, N], b: [N]  ->  [M, N] out_dtype (fused activation)."""
    M, K = x2d.shape
    K2, N = w2d.shape
    assert K == K2

    # Minimal padding: K to a multiple of 16 (bf16 sublane packing only; the
    # blocks span the full K so no 128-alignment is needed), N to 128 so the
    # output stores are lane-dense.
    Kp = _round_up(K, 16)
    Np = _round_up(N, 128)

    # Row-tile policy: smallest padding that keeps TM a multiple of 16.
    #   * M <= 256: one tile (per-step overhead would dominate otherwise).
    #   * else: >= 2 tiles (engage the second TensorCore on v7x via the
    #     "parallel" grid axis), ~512 rows per tile.
    if M <= 256:
        n_tiles = 1
    else:
        n_tiles = max(2, _cdiv(M, 512))
    TM = _round_up(_cdiv(M, n_tiles), 16)
    Mp = TM * n_tiles

    x_p = x2d if x2d.dtype == jnp.bfloat16 else x2d.astype(jnp.bfloat16)
    if Mp != M or Kp != K:
        x_p = jnp.pad(x_p, ((0, Mp - M), (0, Kp - K)))
    w_p = w2d.astype(jnp.bfloat16)
    if Kp != K or Np != N:
        w_p = jnp.pad(w_p, ((0, Kp - K), (0, Np - N)))
    b_p = jnp.pad(b.astype(jnp.float32), (0, Np - N)).reshape(1, Np)

    out_itemsize = jnp.dtype(out_dtype).itemsize
    out = pl.pallas_call(
        functools.partial(_matmul_bias_act_kernel, act=act),
        out_shape=jax.ShapeDtypeStruct((Mp, Np), out_dtype),
        grid=(n_tiles,),
        in_specs=[
            pl.BlockSpec((TM, Kp), lambda i: (i, 0)),   # X: tiled over rows
            pl.BlockSpec((Kp, Np), lambda i: (0, 0)),   # W: grid-invariant
            pl.BlockSpec((1, Np), lambda i: (0, 0)),    # bias: grid-invariant
        ],
        out_specs=pl.BlockSpec((TM, Np), lambda i: (i, 0)),
        compiler_params=pltpu.CompilerParams(
            dimension_semantics=("parallel",),           # megacore over M tiles
            vmem_limit_bytes=32 * 1024 * 1024,
        ),
        cost_estimate=pl.CostEstimate(
            flops=2 * Mp * Kp * Np,
            transcendentals=Mp * Np if act == "sigmoid" else 0,
            bytes_accessed=2 * Mp * Kp + 2 * Kp * Np + 4 * Np
            + out_itemsize * Mp * Np,
        ),
    )(x_p, w_p, b_p)
    return out[:M, :N]


# ----------------------------------------------------------------------------
# Glue: im2col patch extraction for the 3x3 layers (pure rearrangement, XLA)
# ----------------------------------------------------------------------------
def _im2col(x_nhwc, kh, kw, stride):
    B, H, W, C = x_nhwc.shape
    oh = (H - kh) // stride + 1
    ow = (W - kw) // stride + 1
    cols = []
    for i in range(kh):
        for j in range(kw):
            cols.append(
                x_nhwc[:, i:i + stride * oh:stride, j:j + stride * ow:stride, :]
            )
    patches = jnp.concatenate(cols, axis=-1)            # (B, oh, ow, kh*kw*C)
    return patches.reshape(B * oh * ow, kh * kw * C), oh, ow


def conv2d(x_nhwc, w_oihw, b, *, stride, padding, act, out_dtype):
    """Matches torch.nn.Conv2d semantics. w_oihw: (Cout, Cin, kh, kw)."""
    cout, cin, kh, kw = w_oihw.shape
    if padding > 0:
        x_nhwc = jnp.pad(
            x_nhwc, ((0, 0), (padding, padding), (padding, padding), (0, 0))
        )
    B, H, W, _ = x_nhwc.shape
    # (Cout, Cin, kh, kw) -> (kh, kw, Cin, Cout) -> (kh*kw*Cin, Cout)
    w2d = jnp.transpose(w_oihw, (2, 3, 1, 0)).reshape(kh * kw * cin, cout)
    if H == kh and W == kw:
        # Single output position (enc3): im2col degenerates to a reshape.
        oh = ow = 1
        patches = x_nhwc.reshape(B, kh * kw * cin)
    else:
        patches, oh, ow = _im2col(x_nhwc, kh, kw, stride)
    out = matmul_bias_act(patches, w2d, b, act, out_dtype)
    return out.reshape(B, oh, ow, cout)


def conv_transpose2d(x_nhwc, w_iohw, b, *, stride, padding, output_padding,
                     act, out_dtype):
    """Matches torch.nn.ConvTranspose2d. w_iohw: (Cin, Cout, kh, kw)."""
    cin, cout, kh, kw = w_iohw.shape
    B, H, W, _ = x_nhwc.shape

    if H == 1 and W == 1 and padding == 0 and output_padding == 0:
        # 1x1 spatial input (dec1): the transposed conv is a dense linear map
        #   out[b, y, x, o] = sum_i x[b, i] * W[i, o, y, x] + bias[o]
        w2d = jnp.transpose(w_iohw, (0, 2, 3, 1)).reshape(cin, kh * kw * cout)
        b_full = jnp.tile(b, kh * kw)
        out = matmul_bias_act(x_nhwc.reshape(B, cin), w2d, b_full, act, out_dtype)
        return out.reshape(B, kh, kw, cout)

    # General path: dilate by `stride`, pad by (k-1-p) (+output_padding on the
    # bottom/right), then a stride-1 conv with the flipped/transposed kernel —
    # the conv itself runs in the Pallas matmul kernel.
    if stride > 1:
        hd, wd = (H - 1) * stride + 1, (W - 1) * stride + 1
        xd = jnp.zeros((B, hd, wd, cin), x_nhwc.dtype)
        xd = xd.at[:, ::stride, ::stride, :].set(x_nhwc)
    else:
        xd = x_nhwc
    p_lo_h, p_hi_h = kh - 1 - padding, kh - 1 - padding + output_padding
    p_lo_w, p_hi_w = kw - 1 - padding, kw - 1 - padding + output_padding
    xd = jnp.pad(xd, ((0, 0), (p_lo_h, p_hi_h), (p_lo_w, p_hi_w), (0, 0)))
    patches, oh, ow = _im2col(xd, kh, kw, 1)
    # equivalent forward-conv weight: W'[a,b,i,o] = W[i,o,kh-1-a,kw-1-b]
    w_hwio = jnp.transpose(jnp.flip(w_iohw, axis=(2, 3)), (2, 3, 0, 1))
    w2d = w_hwio.reshape(kh * kw * cin, cout)
    out = matmul_bias_act(patches, w2d, b, act, out_dtype)
    return out.reshape(B, oh, ow, cout)


# ----------------------------------------------------------------------------
# ConvReAE forward
# ----------------------------------------------------------------------------
def init_params(key, img_num_channel=3):
    shapes = {
        # encoder (Conv2d weights: (Cout, Cin, kh, kw))
        "enc1_w": (16, img_num_channel, 3, 3), "enc1_b": (16,),
        "enc2_w": (32, 16, 3, 3),              "enc2_b": (32,),
        "enc3_w": (64, 32, 7, 7),              "enc3_b": (64,),
        # decoder (ConvTranspose2d weights: (Cin, Cout, kh, kw))
        "dec1_w": (64, 32, 7, 7),              "dec1_b": (32,),
        "dec2_w": (32, 16, 3, 3),              "dec2_b": (16,),
        "dec3_w": (16, img_num_channel, 3, 3), "dec3_b": (img_num_channel,),
    }
    params = {}
    keys = jax.random.split(key, len(shapes))
    for k, (name, shp) in zip(keys, sorted(shapes.items())):
        scale = 0.1 if name.endswith("_w") else 0.01
        params[name] = scale * jax.random.normal(k, shp, dtype=jnp.float32)
    return params


def conv_re_ae_forward(params, x_nchw):
    """Input/output in NCHW (PyTorch convention)."""
    x = jnp.transpose(x_nchw, (0, 2, 3, 1))  # -> NHWC
    bf = jnp.bfloat16
    # encoder
    x = conv2d(x, params["enc1_w"], params["enc1_b"], stride=2, padding=1,
               act="relu", out_dtype=bf)
    x = conv2d(x, params["enc2_w"], params["enc2_b"], stride=2, padding=1,
               act="relu", out_dtype=bf)
    x = conv2d(x, params["enc3_w"], params["enc3_b"], stride=1, padding=0,
               act="none", out_dtype=bf)
    # decoder
    x = conv_transpose2d(x, params["dec1_w"], params["dec1_b"], stride=1,
                         padding=0, output_padding=0, act="relu", out_dtype=bf)
    x = conv_transpose2d(x, params["dec2_w"], params["dec2_b"], stride=2,
                         padding=1, output_padding=1, act="relu", out_dtype=bf)
    x = conv_transpose2d(x, params["dec3_w"], params["dec3_b"], stride=2,
                         padding=1, output_padding=1, act="sigmoid",
                         out_dtype=jnp.float32)
    return jnp.transpose(x, (0, 3, 1, 2))    # -> NCHW


# ----------------------------------------------------------------------------
# Pure-XLA reference (f32) for a numerical sanity check
# ----------------------------------------------------------------------------
def _conv2d_ref(x, w, b, stride, padding):
    out = jax.lax.conv_general_dilated(
        x, w, window_strides=(stride, stride),
        padding=[(padding, padding), (padding, padding)],
        dimension_numbers=("NCHW", "OIHW", "NCHW"))
    return out + b[None, :, None, None]


def _conv_transpose2d_ref(x, w, b, stride, padding, output_padding):
    kh, kw = w.shape[2], w.shape[3]
    w_flip = jnp.transpose(jnp.flip(w, (2, 3)), (1, 0, 2, 3))  # (Cout,Cin,kh,kw)
    out = jax.lax.conv_general_dilated(
        x, w_flip, window_strides=(1, 1),
        padding=[(kh - 1 - padding, kh - 1 - padding + output_padding),
                 (kw - 1 - padding, kw - 1 - padding + output_padding)],
        lhs_dilation=(stride, stride),
        dimension_numbers=("NCHW", "OIHW", "NCHW"))
    return out + b[None, :, None, None]


def conv_re_ae_reference(params, x):
    h = jax.nn.relu(_conv2d_ref(x, params["enc1_w"], params["enc1_b"], 2, 1))
    h = jax.nn.relu(_conv2d_ref(h, params["enc2_w"], params["enc2_b"], 2, 1))
    h = _conv2d_ref(h, params["enc3_w"], params["enc3_b"], 1, 0)
    h = jax.nn.relu(_conv_transpose2d_ref(h, params["dec1_w"], params["dec1_b"], 1, 0, 0))
    h = jax.nn.relu(_conv_transpose2d_ref(h, params["dec2_w"], params["dec2_b"], 2, 1, 1))
    h = jax.nn.sigmoid(_conv_transpose2d_ref(h, params["dec3_w"], params["dec3_b"], 2, 1, 1))
    return h


if __name__ == "__main__":
    key = jax.random.PRNGKey(0)
    k_param, k_x = jax.random.split(key)
    img_num_channel = 3
    params = init_params(k_param, img_num_channel)

    # 28x28 input: encoder brings it to a 1x1x64 code (as the module implies).
    x = jax.random.normal(k_x, (2, img_num_channel, 28, 28), dtype=jnp.float32)

    fwd = jax.jit(conv_re_ae_forward)
    out = jax.block_until_ready(fwd(params, x))

    assert out.shape == x.shape, out.shape
    assert bool(jnp.all(jnp.isfinite(out)))
    assert bool(jnp.all((out >= 0.0) & (out <= 1.0)))  # sigmoid output range

    # Numerical check vs. pure-XLA reference (bf16 operands -> loose tolerance).
    ref = jax.block_until_ready(jax.jit(conv_re_ae_reference)(params, x))
    max_err = float(jnp.max(jnp.abs(out - ref)))
    assert max_err < 5e-2, max_err

    print("KERNEL_OK")
</pallas_src>

<mosaic_0001>
module attributes {stable_mosaic.version = 11 : i64} {
  func.func @_matmul_bias_act_kernel(%arg0: i32, %arg1: memref<208x32xbf16, #tpu.memory_space<vmem>>, %arg2: memref<32x128xbf16, #tpu.memory_space<vmem>>, %arg3: memref<1x128xf32, #tpu.memory_space<vmem>>, %arg4: memref<208x128xbf16, #tpu.memory_space<vmem>>) attributes {dimension_semantics = [#tpu.dimension_semantics<parallel>], iteration_bounds = array<i64: 2>, scalar_prefetch = 0 : i64, scratch_operands = 0 : i64, tpu.core_type = #tpu.core_type<tc>, window_params = [{transform_indices = @transform_0, window_bounds = array<i64: 208, 32>}, {pipeline_mode = #tpu.pipeline_mode<synchronous>, transform_indices = @transform_1, window_bounds = array<i64: 32, 128>}, {pipeline_mode = #tpu.pipeline_mode<synchronous>, transform_indices = @transform_2, window_bounds = array<i64: 1, 128>}, {transform_indices = @transform_3, window_bounds = array<i64: 208, 128>}]} {
    %c0 = arith.constant 0 : index
    %c0_0 = arith.constant 0 : index
    %0 = vector.load %arg1[%c0, %c0_0] : memref<208x32xbf16, #tpu.memory_space<vmem>>, vector<208x32xbf16>
    %c0_1 = arith.constant 0 : index
    %c0_2 = arith.constant 0 : index
    %1 = vector.load %arg2[%c0_1, %c0_2] : memref<32x128xbf16, #tpu.memory_space<vmem>>, vector<32x128xbf16>
    %cst = arith.constant dense<0.000000e+00> : vector<208x128xf32>
    %2 = tpu.matmul %0, %1, %cst {dimension_numbers = #tpu.dot_dimension_numbers<[1], [0], [0], [1], [0, 0, 1, 1], [], []>} : vector<208x32xbf16>, vector<32x128xbf16>, vector<208x128xf32> -> vector<208x128xf32>
    %c0_3 = arith.constant 0 : index
    %c0_4 = arith.constant 0 : index
    %3 = vector.load %arg3[%c0_3, %c0_4] : memref<1x128xf32, #tpu.memory_space<vmem>>, vector<1x128xf32>
    %4 = vector.broadcast %3 : vector<1x128xf32> to vector<208x128xf32>
    %5 = arith.addf %2, %4 : vector<208x128xf32>
    %cst_5 = arith.constant 0.000000e+00 : f32
    %6 = vector.broadcast %cst_5 : f32 to vector<208x128xf32>
    %7 = arith.maximumf %5, %6 : vector<208x128xf32>
    %8 = arith.truncf %7 : vector<208x128xf32> to vector<208x128xbf16>
    %c0_6 = arith.constant 0 : index
    %c0_7 = arith.constant 0 : index
    %9 = vector.load %arg4[%c0_6, %c0_7] : memref<208x128xbf16, #tpu.memory_space<vmem>>, vector<208x128xbf16>
    tpu.vector_store %arg4[%c0_6, %c0_7], %8 {strides = array<i32>} : memref<208x128xbf16, #tpu.memory_space<vmem>>, vector<208x128xbf16>,
    return
  }
  func.func @transform_0(%arg0: i32) -> (i32, i32) {
    %c0_i32 = arith.constant 0 : i32
    %c0_i32_0 = arith.constant 0 : i32
    return %arg0, %c0_i32 : i32, i32
  }
  func.func @transform_1(%arg0: i32) -> (i32, i32) {
    %c0_i32 = arith.constant 0 : i32
    %c0_i32_0 = arith.constant 0 : i32
    %c0_i32_1 = arith.constant 0 : i32
    return %c0_i32, %c0_i32_0 : i32, i32
  }
  func.func @transform_2(%arg0: i32) -> (i32, i32) {
    %c0_i32 = arith.constant 0 : i32
    %c0_i32_0 = arith.constant 0 : i32
    %c0_i32_1 = arith.constant 0 : i32
    return %c0_i32, %c0_i32_0 : i32, i32
  }
  func.func @transform_3(%arg0: i32) -> (i32, i32) {
    %c0_i32 = arith.constant 0 : i32
    %c0_i32_0 = arith.constant 0 : i32
    return %arg0, %c0_i32 : i32, i32
  }
}

module attributes {stable_mosaic.version = 11 : i64} {
  func.func @_matmul_bias_act_kernel(%arg0: i32, %arg1: memref<112x144xbf16, #tpu.memory_space<vmem>>, %arg2: memref<144x128xbf16, #tpu.memory_space<vmem>>, %arg3: memref<1x128xf32, #tpu.memory_space<vmem>>, %arg4: memref<112x128xbf16, #tpu.memory_space<vmem>>) attributes {dimension_semantics = [#tpu.dimension_semantics<parallel>], iteration_bounds = array<i64: 1>, scalar_prefetch = 0 : i64, scratch_operands = 0 : i64, tpu.core_type = #tpu.core_type<tc>, window_params = [{transform_indices = @transform_0, window_bounds = array<i64: 112, 144>}, {pipeline_mode = #tpu.pipeline_mode<synchronous>, transform_indices = @transform_1, window_bounds = array<i64: 144, 128>}, {pipeline_mode = #tpu.pipeline_mode<synchronous>, transform_indices = @transform_2, window_bounds = array<i64: 1, 128>}, {transform_indices = @transform_3, window_bounds = array<i64: 112, 128>}]} {
    %c0 = arith.constant 0 : index
    %c0_0 = arith.constant 0 : index
    %0 = vector.load %arg1[%c0, %c0_0] : memref<112x144xbf16, #tpu.memory_space<vmem>>, vector<112x144xbf16>
    %c0_1 = arith.constant 0 : index
    %c0_2 = arith.constant 0 : index
    %1 = vector.load %arg2[%c0_1, %c0_2] : memref<144x128xbf16, #tpu.memory_space<vmem>>, vector<144x128xbf16>
    %cst = arith.constant dense<0.000000e+00> : vector<112x128xf32>
    %2 = tpu.matmul %0, %1, %cst {dimension_numbers = #tpu.dot_dimension_numbers<[1], [0], [0], [1], [0, 0, 1, 1], [], []>} : vector<112x144xbf16>, vector<144x128xbf16>, vector<112x128xf32> -> vector<112x128xf32>
    %c0_3 = arith.constant 0 : index
    %c0_4 = arith.constant 0 : index
    %3 = vector.load %arg3[%c0_3, %c0_4] : memref<1x128xf32, #tpu.memory_space<vmem>>, vector<1x128xf32>
    %4 = vector.broadcast %3 : vector<1x128xf32> to vector<112x128xf32>
    %5 = arith.addf %2, %4 : vector<112x128xf32>
    %cst_5 = arith.constant 0.000000e+00 : f32
    %6 = vector.broadcast %cst_5 : f32 to vector<112x128xf32>
    %7 = arith.maximumf %5, %6 : vector<112x128xf32>
    %8 = arith.truncf %7 : vector<112x128xf32> to vector<112x128xbf16>
    %c0_6 = arith.constant 0 : index
    %c0_7 = arith.constant 0 : index
    %9 = vector.load %arg4[%c0_6, %c0_7] : memref<112x128xbf16, #tpu.memory_space<vmem>>, vector<112x128xbf16>
    tpu.vector_store %arg4[%c0_6, %c0_7], %8 {strides = array<i32>} : memref<112x128xbf16, #tpu.memory_space<vmem>>, vector<112x128xbf16>,
    return
  }
  func.func @transform_0(%arg0: i32) -> (i32, i32) {
    %c0_i32 = arith.constant 0 : i32
    %c0_i32_0 = arith.constant 0 : i32
    return %arg0, %c0_i32 : i32, i32
  }
  func.func @transform_1(%arg0: i32) -> (i32, i32) {
    %c0_i32 = arith.constant 0 : i32
    %c0_i32_0 = arith.constant 0 : i32
    %c0_i32_1 = arith.constant 0 : i32
    return %c0_i32, %c0_i32_0 : i32, i32
  }
  func.func @transform_2(%arg0: i32) -> (i32, i32) {
    %c0_i32 = arith.constant 0 : i32
    %c0_i32_0 = arith.constant 0 : i32
    %c0_i32_1 = arith.constant 0 : i32
    return %c0_i32, %c0_i32_0 : i32, i32
  }
  func.func @transform_3(%arg0: i32) -> (i32, i32) {
    %c0_i32 = arith.constant 0 : i32
    %c0_i32_0 = arith.constant 0 : i32
    return %arg0, %c0_i32 : i32, i32
  }
}

module attributes {stable_mosaic.version = 11 : i64} {
  func.func @_matmul_bias_act_kernel(%arg0: i32, %arg1: memref<16x1568xbf16, #tpu.memory_space<vmem>>, %arg2: memref<1568x128xbf16, #tpu.memory_space<vmem>>, %arg3: memref<1x128xf32, #tpu.memory_space<vmem>>, %arg4: memref<16x128xbf16, #tpu.memory_space<vmem>>) attributes {dimension_semantics = [#tpu.dimension_semantics<parallel>], iteration_bounds = array<i64: 1>, scalar_prefetch = 0 : i64, scratch_operands = 0 : i64, tpu.core_type = #tpu.core_type<tc>, window_params = [{transform_indices = @transform_0, window_bounds = array<i64: 16, 1568>}, {pipeline_mode = #tpu.pipeline_mode<synchronous>, transform_indices = @transform_1, window_bounds = array<i64: 1568, 128>}, {pipeline_mode = #tpu.pipeline_mode<synchronous>, transform_indices = @transform_2, window_bounds = array<i64: 1, 128>}, {transform_indices = @transform_3, window_bounds = array<i64: 16, 128>}]} {
    %c0 = arith.constant 0 : index
    %c0_0 = arith.constant 0 : index
    %0 = vector.load %arg1[%c0, %c0_0] : memref<16x1568xbf16, #tpu.memory_space<vmem>>, vector<16x1568xbf16>
    %c0_1 = arith.constant 0 : index
    %c0_2 = arith.constant 0 : index
    %1 = vector.load %arg2[%c0_1, %c0_2] : memref<1568x128xbf16, #tpu.memory_space<vmem>>, vector<1568x128xbf16>
    %cst = arith.constant dense<0.000000e+00> : vector<16x128xf32>
    %2 = tpu.matmul %0, %1, %cst {dimension_numbers = #tpu.dot_dimension_numbers<[1], [0], [0], [1], [0, 0, 1, 1], [], []>} : vector<16x1568xbf16>, vector<1568x128xbf16>, vector<16x128xf32> -> vector<16x128xf32>
    %c0_3 = arith.constant 0 : index
    %c0_4 = arith.constant 0 : index
    %3 = vector.load %arg3[%c0_3, %c0_4] : memref<1x128xf32, #tpu.memory_space<vmem>>, vector<1x128xf32>
    %4 = vector.broadcast %3 : vector<1x128xf32> to vector<16x128xf32>
    %5 = arith.addf %2, %4 : vector<16x128xf32>
    %6 = arith.truncf %5 : vector<16x128xf32> to vector<16x128xbf16>
    %c0_5 = arith.constant 0 : index
    %c0_6 = arith.constant 0 : index
    %7 = vector.load %arg4[%c0_5, %c0_6] : memref<16x128xbf16, #tpu.memory_space<vmem>>, vector<16x128xbf16>
    tpu.vector_store %arg4[%c0_5, %c0_6], %6 {strides = array<i32>} : memref<16x128xbf16, #tpu.memory_space<vmem>>, vector<16x128xbf16>,
    return
  }
  func.func @transform_0(%arg0: i32) -> (i32, i32) {
    %c0_i32 = arith.constant 0 : i32
    %c0_i32_0 = arith.constant 0 : i32
    return %arg0, %c0_i32 : i32, i32
  }
  func.func @transform_1(%arg0: i32) -> (i32, i32) {
    %c0_i32 = arith.constant 0 : i32
    %c0_i32_0 = arith.constant 0 : i32
    %c0_i32_1 = arith.constant 0 : i32
    return %c0_i32, %c0_i32_0 : i32, i32
  }
  func.func @transform_2(%arg0: i32) -> (i32, i32) {
    %c0_i32 = arith.constant 0 : i32
    %c0_i32_0 = arith.constant 0 : i32
    %c0_i32_1 = arith.constant 0 : i32
    return %c0_i32, %c0_i32_0 : i32, i32
  }
  func.func @transform_3(%arg0: i32) -> (i32, i32) {
    %c0_i32 = arith.constant 0 : i32
    %c0_i32_0 = arith.constant 0 : i32
    return %arg0, %c0_i32 : i32, i32
  }
}

module attributes {stable_mosaic.version = 11 : i64} {
  func.func @_matmul_bias_act_kernel(%arg0: i32, %arg1: memref<16x64xbf16, #tpu.memory_space<vmem>>, %arg2: memref<64x1664xbf16, #tpu.memory_space<vmem>>, %arg3: memref<1x1664xf32, #tpu.memory_space<vmem>>, %arg4: memref<16x1664xbf16, #tpu.memory_space<vmem>>) attributes {dimension_semantics = [#tpu.dimension_semantics<parallel>], iteration_bounds = array<i64: 1>, scalar_prefetch = 0 : i64, scratch_operands = 0 : i64, tpu.core_type = #tpu.core_type<tc>, window_params = [{transform_indices = @transform_0, window_bounds = array<i64: 16, 64>}, {pipeline_mode = #tpu.pipeline_mode<synchronous>, transform_indices = @transform_1, window_bounds = array<i64: 64, 1664>}, {pipeline_mode = #tpu.pipeline_mode<synchronous>, transform_indices = @transform_2, window_bounds = array<i64: 1, 1664>}, {transform_indices = @transform_3, window_bounds = array<i64: 16, 1664>}]} {
    %c0 = arith.constant 0 : index
    %c0_0 = arith.constant 0 : index
    %0 = vector.load %arg1[%c0, %c0_0] : memref<16x64xbf16, #tpu.memory_space<vmem>>, vector<16x64xbf16>
    %c0_1 = arith.constant 0 : index
    %c0_2 = arith.constant 0 : index
    %1 = vector.load %arg2[%c0_1, %c0_2] : memref<64x1664xbf16, #tpu.memory_space<vmem>>, vector<64x1664xbf16>
    %cst = arith.constant dense<0.000000e+00> : vector<16x1664xf32>
    %2 = tpu.matmul %0, %1, %cst {dimension_numbers = #tpu.dot_dimension_numbers<[1], [0], [0], [1], [0, 0, 1, 1], [], []>} : vector<16x64xbf16>, vector<64x1664xbf16>, vector<16x1664xf32> -> vector<16x1664xf32>
    %c0_3 = arith.constant 0 : index
    %c0_4 = arith.constant 0 : index
    %3 = vector.load %arg3[%c0_3, %c0_4] : memref<1x1664xf32, #tpu.memory_space<vmem>>, vector<1x1664xf32>
    %4 = vector.broadcast %3 : vector<1x1664xf32> to vector<16x1664xf32>
    %5 = arith.addf %2, %4 : vector<16x1664xf32>
    %cst_5 = arith.constant 0.000000e+00 : f32
    %6 = vector.broadcast %cst_5 : f32 to vector<16x1664xf32>
    %7 = arith.maximumf %5, %6 : vector<16x1664xf32>
    %8 = arith.truncf %7 : vector<16x1664xf32> to vector<16x1664xbf16>
    %c0_6 = arith.constant 0 : index
    %c0_7 = arith.constant 0 : index
    %9 = vector.load %arg4[%c0_6, %c0_7] : memref<16x1664xbf16, #tpu.memory_space<vmem>>, vector<16x1664xbf16>
    tpu.vector_store %arg4[%c0_6, %c0_7], %8 {strides = array<i32>} : memref<16x1664xbf16, #tpu.memory_space<vmem>>, vector<16x1664xbf16>,
    return
  }
  func.func @transform_0(%arg0: i32) -> (i32, i32) {
    %c0_i32 = arith.constant 0 : i32
    %c0_i32_0 = arith.constant 0 : i32
    return %arg0, %c0_i32 : i32, i32
  }
  func.func @transform_1(%arg0: i32) -> (i32, i32) {
    %c0_i32 = arith.constant 0 : i32
    %c0_i32_0 = arith.constant 0 : i32
    %c0_i32_1 = arith.constant 0 : i32
    return %c0_i32, %c0_i32_0 : i32, i32
  }
  func.func @transform_2(%arg0: i32) -> (i32, i32) {
    %c0_i32 = arith.constant 0 : i32
    %c0_i32_0 = arith.constant 0 : i32
    %c0_i32_1 = arith.constant 0 : i32
    return %c0_i32, %c0_i32_0 : i32, i32
  }
  func.func @transform_3(%arg0: i32) -> (i32, i32) {
    %c0_i32 = arith.constant 0 : i32
    %c0_i32_0 = arith.constant 0 : i32
    return %arg0, %c0_i32 : i32, i32
  }
}

module attributes {stable_mosaic.version = 11 : i64} {
  func.func @_matmul_bias_act_kernel(%arg0: i32, %arg1: memref<208x288xbf16, #tpu.memory_space<vmem>>, %arg2: memref<288x128xbf16, #tpu.memory_space<vmem>>, %arg3: memref<1x128xf32, #tpu.memory_space<vmem>>, %arg4: memref<208x128xbf16, #tpu.memory_space<vmem>>) attributes {dimension_semantics = [#tpu.dimension_semantics<parallel>], iteration_bounds = array<i64: 2>, scalar_prefetch = 0 : i64, scratch_operands = 0 : i64, tpu.core_type = #tpu.core_type<tc>, window_params = [{transform_indices = @transform_0, window_bounds = array<i64: 208, 288>}, {pipeline_mode = #tpu.pipeline_mode<synchronous>, transform_indices = @transform_1, window_bounds = array<i64: 288, 128>}, {pipeline_mode = #tpu.pipeline_mode<synchronous>, transform_indices = @transform_2, window_bounds = array<i64: 1, 128>}, {transform_indices = @transform_3, window_bounds = array<i64: 208, 128>}]} {
    %c0 = arith.constant 0 : index
    %c0_0 = arith.constant 0 : index
    %0 = vector.load %arg1[%c0, %c0_0] : memref<208x288xbf16, #tpu.memory_space<vmem>>, vector<208x288xbf16>
    %c0_1 = arith.constant 0 : index
    %c0_2 = arith.constant 0 : index
    %1 = vector.load %arg2[%c0_1, %c0_2] : memref<288x128xbf16, #tpu.memory_space<vmem>>, vector<288x128xbf16>
    %cst = arith.constant dense<0.000000e+00> : vector<208x128xf32>
    %2 = tpu.matmul %0, %1, %cst {dimension_numbers = #tpu.dot_dimension_numbers<[1], [0], [0], [1], [0, 0, 1, 1], [], []>} : vector<208x288xbf16>, vector<288x128xbf16>, vector<208x128xf32> -> vector<208x128xf32>
    %c0_3 = arith.constant 0 : index
    %c0_4 = arith.constant 0 : index
    %3 = vector.load %arg3[%c0_3, %c0_4] : memref<1x128xf32, #tpu.memory_space<vmem>>, vector<1x128xf32>
    %4 = vector.broadcast %3 : vector<1x128xf32> to vector<208x128xf32>
    %5 = arith.addf %2, %4 : vector<208x128xf32>
    %cst_5 = arith.constant 0.000000e+00 : f32
    %6 = vector.broadcast %cst_5 : f32 to vector<208x128xf32>
    %7 = arith.maximumf %5, %6 : vector<208x128xf32>
    %8 = arith.truncf %7 : vector<208x128xf32> to vector<208x128xbf16>
    %c0_6 = arith.constant 0 : index
    %c0_7 = arith.constant 0 : index
    %9 = vector.load %arg4[%c0_6, %c0_7] : memref<208x128xbf16, #tpu.memory_space<vmem>>, vector<208x128xbf16>
    tpu.vector_store %arg4[%c0_6, %c0_7], %8 {strides = array<i32>} : memref<208x128xbf16, #tpu.memory_space<vmem>>, vector<208x128xbf16>,
    return
  }
  func.func @transform_0(%arg0: i32) -> (i32, i32) {
    %c0_i32 = arith.constant 0 : i32
    %c0_i32_0 = arith.constant 0 : i32
    return %arg0, %c0_i32 : i32, i32
  }
  func.func @transform_1(%arg0: i32) -> (i32, i32) {
    %c0_i32 = arith.constant 0 : i32
    %c0_i32_0 = arith.constant 0 : i32
    %c0_i32_1 = arith.constant 0 : i32
    return %c0_i32, %c0_i32_0 : i32, i32
  }
  func.func @transform_2(%arg0: i32) -> (i32, i32) {
    %c0_i32 = arith.constant 0 : i32
    %c0_i32_0 = arith.constant 0 : i32
    %c0_i32_1 = arith.constant 0 : i32
    return %c0_i32, %c0_i32_0 : i32, i32
  }
  func.func @transform_3(%arg0: i32) -> (i32, i32) {
    %c0_i32 = arith.constant 0 : i32
    %c0_i32_0 = arith.constant 0 : i32
    return %arg0, %c0_i32 : i32, i32
  }
}

module attributes {stable_mosaic.version = 11 : i64} {
  func.func @_matmul_bias_act_kernel(%arg0: i32, %arg1: memref<400x144xbf16, #tpu.memory_space<vmem>>, %arg2: memref<144x128xbf16, #tpu.memory_space<vmem>>, %arg3: memref<1x128xf32, #tpu.memory_space<vmem>>, %arg4: memref<400x128xf32, #tpu.memory_space<vmem>>) attributes {dimension_semantics = [#tpu.dimension_semantics<parallel>], iteration_bounds = array<i64: 4>, scalar_prefetch = 0 : i64, scratch_operands = 0 : i64, tpu.core_type = #tpu.core_type<tc>, window_params = [{transform_indices = @transform_0, window_bounds = array<i64: 400, 144>}, {pipeline_mode = #tpu.pipeline_mode<synchronous>, transform_indices = @transform_1, window_bounds = array<i64: 144, 128>}, {pipeline_mode = #tpu.pipeline_mode<synchronous>, transform_indices = @transform_2, window_bounds = array<i64: 1, 128>}, {transform_indices = @transform_3, window_bounds = array<i64: 400, 128>}]} {
    %c0 = arith.constant 0 : index
    %c0_0 = arith.constant 0 : index
    %0 = vector.load %arg1[%c0, %c0_0] : memref<400x144xbf16, #tpu.memory_space<vmem>>, vector<400x144xbf16>
    %c0_1 = arith.constant 0 : index
    %c0_2 = arith.constant 0 : index
    %1 = vector.load %arg2[%c0_1, %c0_2] : memref<144x128xbf16, #tpu.memory_space<vmem>>, vector<144x128xbf16>
    %cst = arith.constant dense<0.000000e+00> : vector<400x128xf32>
    %2 = tpu.matmul %0, %1, %cst {dimension_numbers = #tpu.dot_dimension_numbers<[1], [0], [0], [1], [0, 0, 1, 1], [], []>} : vector<400x144xbf16>, vector<144x128xbf16>, vector<400x128xf32> -> vector<400x128xf32>
    %c0_3 = arith.constant 0 : index
    %c0_4 = arith.constant 0 : index
    %3 = vector.load %arg3[%c0_3, %c0_4] : memref<1x128xf32, #tpu.memory_space<vmem>>, vector<1x128xf32>
    %4 = vector.broadcast %3 : vector<1x128xf32> to vector<400x128xf32>
    %5 = arith.addf %2, %4 : vector<400x128xf32>
    %6 = arith.negf %5 : vector<400x128xf32>
    %7 = math.exp %6 : vector<400x128xf32>
    %cst_5 = arith.constant 1.000000e+00 : f32
    %8 = vector.broadcast %cst_5 : f32 to vector<400x128xf32>
    %9 = arith.addf %8, %7 : vector<400x128xf32>
    %10 = arith.divf %8, %9 : vector<400x128xf32>
    %c0_6 = arith.constant 0 : index
    %c0_7 = arith.constant 0 : index
    %11 = vector.load %arg4[%c0_6, %c0_7] : memref<400x128xf32, #tpu.memory_space<vmem>>, vector<400x128xf32>
    tpu.vector_store %arg4[%c0_6, %c0_7], %10 {strides = array<i32>} : memref<400x128xf32, #tpu.memory_space<vmem>>, vector<400x128xf32>,
    return
  }
  func.func @transform_0(%arg0: i32) -> (i32, i32) {
    %c0_i32 = arith.constant 0 : i32
    %c0_i32_0 = arith.constant 0 : i32
    return %arg0, %c0_i32 : i32, i32
  }
  func.func @transform_1(%arg0: i32) -> (i32, i32) {
    %c0_i32 = arith.constant 0 : i32
    %c0_i32_0 = arith.constant 0 : i32
    %c0_i32_1 = arith.constant 0 : i32
    return %c0_i32, %c0_i32_0 : i32, i32
  }
  func.func @transform_2(%arg0: i32) -> (i32, i32) {
    %c0_i32 = arith.constant 0 : i32
    %c0_i32_0 = arith.constant 0 : i32
    %c0_i32_1 = arith.constant 0 : i32
    return %c0_i32, %c0_i32_0 : i32, i32
  }
  func.func @transform_3(%arg0: i32) -> (i32, i32) {
    %c0_i32 = arith.constant 0 : i32
    %c0_i32_0 = arith.constant 0 : i32
    return %arg0, %c0_i32 : i32, i32
  }
}

</mosaic_0001>

<bundles_post_ra>
// kernel: conv_re_ae_forward.6
= control target key start
LH: loop header
LB: loop body
LE: loop exit
PB: predicated region body
PF: predicated region fallthrough
CT: control target
= control target key end

     0   :  { %s751_s12 = smov 0   ;;  %s840_s0 = inlined_call_operand.vmem [shape: bf16[416,32], index: 0, kind: input, shape index: {}]   ;;  %s841_s1 = inlined_call_operand.vmem [shape: bf16[32,128], index: 1, kind: input, shape index: {}]   ;;  %s842_s2 = inlined_call_operand.vmem [shape: f32[1,128], index: 2, kind: input, shape index: {}]   ;;  %s843_s3 = inlined_call_operand.vmem [shape: bf16[416,128], index: 3, kind: output, shape index: {}]  }
   0x1 LB: > { %s534_s13 = sadd.s32 4294967295, %s729_s12   ;;  %p538_p0 = scmp.ge.s32.totalorder %s729_s12, 1  ;;  %s729_s12 = sphi %s751_s12, %s13_s12  }
   0x2   : > { %p138_p1 = scmp.lt.s32.totalorder %s729_s12, 3 }
   0x4   : > { %p139_p2 = pnand %p538_p0, %p138_p1 }
   0x5   : > { %s162_s16 = smul.u32 (!%p139_p2), 26, %s534_s13 }
   0x6   : > { %142 = sbr.rel (%p139_p2) target bundleno = 214 (0xd6), region = 32 }
   0x7   : > { %p163_p3 = scmp.lt.s32.totalorder (!%p139_p2), %s162_s16, 51 }
   0xb   : > { %v630_v0 = vld [vmem:[%s841_s1 + $0x8] sm:$0xff]  ;;  %v629_v1 = vld [vmem:[%s841_s1] sm:$0xff]  ;;  %s845_s16 = smov (!%p163_p3, %s162_s16), 51  ;;  %vm286_vm0 = vcmask 261120  }
   0xc   : > { %708 = vmatpush.bf16.msra.mxu1 %v630_v0  ;;  %709 = vmatpush.bf16.msra.mxu2 %v630_v0  ;;  %s539_s19 = sshll.u32 %s845_s16, 2  ;;  %v789_v17 = vld [vmem:[%s842_s2] ss:$0 sm:$0xff] }
   0xd   : > { %332 = vmatpush.bf16.msra.mxu0 %v630_v0  ;;  %710 = vmatpush.bf16.msra.mxu3 %v630_v0  ;;  %s166_s22 = scalar_lea.vmem %s840_s0, %s539_s19  ;;  %s800_s27 = scalar_lea.vmem %s843_s3, %s539_s19 }
   0xe   : > { %v619_v2 = vld [vmem:[%s166_s22 + $0x18] sm:$0xff]  ;;  %v616_v4 = vld [vmem:[%s166_s22] sm:$0xff]  ;;  %v617_v8 = vld [vmem:[%s166_s22 + $0x8] sm:$0xff] }
   0xf   : > { %v623_v3 = vld [vmem:[%s166_s22 + $0x38] sm:$0xff]  ;;  %v620_v6 = vld [vmem:[%s166_s22 + $0x20] sm:$0xff]  ;;  %v621_v10 = vld [vmem:[%s166_s22 + $0x28] sm:$0xff] }
  0x10   : > { %711 = vmatpush.bf16.msra.mxu1 %v629_v1  ;;  %712 = vmatpush.bf16.msra.mxu2 %v629_v1  ;;  %v627_v5 = vld [vmem:[%s166_s22 + $0x58] sm:$0xff]  ;;  %v624_v7 = vld [vmem:[%s166_s22 + $0x40] sm:$0xff]  ;;  %v625_v11 = vld [vmem:[%s166_s22 + $0x48] sm:$0xff] }
  0x11   : > { %333 = vmatpush.bf16.msra.mxu0 %v629_v1  ;;  %713 = vmatpush.bf16.msra.mxu3 %v629_v1  ;;  %v628_v9 = vld [vmem:[%s166_s22 + $0x60] sm:$0xff]  ;;  %v618_v12 = vld [vmem:[%s166_s22 + $0x10] sm:$0xff] }
  0x12   : > { %v622_v13 = vld [vmem:[%s166_s22 + $0x30] sm:$0xff] }
  0x13   : > { %604 = vmatmul.msk.bf16.vlgmr.msra.gmra.mxu1 %vm286_vm0, %v619_v2  ;;  %608 = vmatmul.msk.bf16.vlgmr.msra.gmra.mxu2 %vm286_vm0, %v623_v3  ;;  %v626_v14 = vld [vmem:[%s166_s22 + $0x50] sm:$0xff] }
  0x14   : > { %601 = vmatmul.msk.bf16.vlgmr.msra.gmra.mxu0 %vm286_vm0, %v616_v4  ;;  %612 = vmatmul.msk.bf16.vlgmr.msra.gmra.mxu3 %vm286_vm0, %v627_v5 }
  0x23   : > { %605 = vmatmul.msk.bf16.gmra.mxu1 %vm286_vm0, %v620_v6  ;;  %609 = vmatmul.msk.bf16.gmra.mxu2 %vm286_vm0, %v624_v7 }
  0x24   : > { %602 = vmatmul.msk.bf16.gmra.mxu0 %vm286_vm0, %v617_v8  ;;  %613 = vmatmul.msk.bf16.gmra.mxu3 %vm286_vm0, %v628_v9 }
  0x33   : > { %606 = vmatmul.msk.bf16.gmra.mxu1 %vm286_vm0, %v621_v10  ;;  %610 = vmatmul.msk.bf16.gmra.mxu2 %vm286_vm0, %v625_v11 }
  0x34   : > { %603 = vmatmul.msk.bf16.gmra.mxu0 %vm286_vm0, %v618_v12 }
  0x43   : > { %607 = vmatmul.msk.bf16.gmra.mxu1 %vm286_vm0, %v622_v13  ;;  %611 = vmatmul.msk.bf16.gmra.mxu2 %vm286_vm0, %v626_v14 }
  0x90   : > { %v350_v15 = vpop.f32.mrf.mxu1 }
  0x91   : > { %v335_v16 = vpop.f32.mrf.mxu0  ;;  %v351_v20 = vadd.f32 %v789_v17, %v350_v15 }
  0x92   : > { %v336_v19 = vadd.f32 %v789_v17, %v335_v16 }
  0x93   : > { %v406_v27 = vmax.f32 %v351_v20, 0.0 }
  0x94   : > { %v400_v25 = vmax.f32 %v336_v19, 0.0 }
  0x96   : > { %v370_v18 = vpop.f32.mrf.mxu2 }
  0x97   : > { %v390_v21 = vpop.f32.mrf.mxu3  ;;  %v371_v31 = vadd.f32 %v789_v17, %v370_v18 }
  0x98   : > { %v352_v22 = vpop.f32.mrf.mxu1  ;;  %v391_v30 = vadd.f32 %v789_v17, %v390_v21 }
  0x99   : > { %v353_v23 = vadd.f32 %v789_v17, %v352_v22  ;;  %v337_v24 = vpop.f32.mrf.mxu0  ;;  %v414_v40 = vmax.f32 %v371_v31, 0.0 }
  0x9a   : > { %v338_v26 = vadd.f32 %v789_v17, %v337_v24  ;;  %v422_v38 = vmax.f32 %v391_v30, 0.0 }
  0x9b   : > { %v407_v28 = vmax.f32 %v353_v23, 0.0 }
  0x9c   : > { %v401_v29 = vmax.f32 %v338_v26, 0.0 }
  0x9d   : > { %v649_v32 = vpack.c.bf16 %v407_v28, %v406_v27 }
  0x9e   : > { %v372_v33 = vpop.f32.mrf.mxu2  ;;  %v634_v34 = vpack.c.bf16 %v401_v29, %v400_v25 }
  0x9f   : > { %698 = vst [vmem:[%s800_s27 + $0x18] sm:$0xff] %v649_v32   ;;  %v373_v35 = vadd.f32 %v789_v17, %v372_v33  ;;  %v392_v36 = vpop.f32.mrf.mxu3 }
  0xa0   : > { %v355_v37 = vpop.f32.mrf.mxu1  ;;  %635 = vst [vmem:[%s800_s27] sm:$0xff] %v634_v34   ;;  %v393_v39 = vadd.f32 %v789_v17, %v392_v36 }
  0xa1   : > { %v415_v41 = vmax.f32 %v373_v35, 0.0  ;;  %v340_v42 = vpop.f32.mrf.mxu0  ;;  %v356_v48 = vadd.f32 %v789_v17, %v355_v37 }
  0xa2   : > { %v423_v43 = vmax.f32 %v393_v39, 0.0  ;;  %v341_v47 = vadd.f32 %v789_v17, %v340_v42 }
  0xa3   : > { %v669_v44 = vpack.c.bf16 %v415_v41, %v414_v40  ;;  %v408_v55 = vmax.f32 %v356_v48, 0.0 }
  0xa4   : > { %v689_v45 = vpack.c.bf16 %v423_v43, %v422_v38  ;;  %v402_v53 = vmax.f32 %v341_v47, 0.0 }
  0xa5   : > { %702 = vst [vmem:[%s800_s27 + $0x38] sm:$0xff] %v669_v44  }
  0xa6   : > { %v375_v46 = vpop.f32.mrf.mxu2  ;;  %706 = vst [vmem:[%s800_s27 + $0x58] sm:$0xff] %v689_v45  }
  0xa7   : > { %v395_v49 = vpop.f32.mrf.mxu3  ;;  %v376_v59 = vadd.f32 %v789_v17, %v375_v46 }
  0xa8   : > { %v357_v50 = vpop.f32.mrf.mxu1  ;;  %v396_v58 = vadd.f32 %v789_v17, %v395_v49 }
  0xa9   : > { %v358_v51 = vadd.f32 %v789_v17, %v357_v50  ;;  %v342_v52 = vpop.f32.mrf.mxu0  ;;  %v416_v4 = vmax.f32 %v376_v59, 0.0 }
  0xaa   : > { %v343_v54 = vadd.f32 %v789_v17, %v342_v52  ;;  %v424_v2 = vmax.f32 %v396_v58, 0.0 }
  0xab   : > { %v409_v56 = vmax.f32 %v358_v51, 0.0 }
  0xac   : > { %v403_v57 = vmax.f32 %v343_v54, 0.0 }
  0xad   : > { %v654_v60 = vpack.c.bf16 %v409_v56, %v408_v55 }
  0xae   : > { %v377_v61 = vpop.f32.mrf.mxu2  ;;  %v639_v62 = vpack.c.bf16 %v403_v57, %v402_v53 }
  0xaf   : > { %699 = vst [vmem:[%s800_s27 + $0x20] sm:$0xff] %v654_v60   ;;  %v378_v63 = vadd.f32 %v789_v17, %v377_v61  ;;  %v397_v0 = vpop.f32.mrf.mxu3 }
  0xb0   : > { %v360_v1 = vpop.f32.mrf.mxu1  ;;  %696 = vst [vmem:[%s800_s27 + $0x8] sm:$0xff] %v639_v62   ;;  %v398_v3 = vadd.f32 %v789_v17, %v397_v0 }
  0xb1   : > { %v417_v5 = vmax.f32 %v378_v63, 0.0  ;;  %v345_v6 = vpop.f32.mrf.mxu0  ;;  %v361_v12 = vadd.f32 %v789_v17, %v360_v1 }
  0xb2   : > { %v425_v7 = vmax.f32 %v398_v3, 0.0  ;;  %v346_v11 = vadd.f32 %v789_v17, %v345_v6 }
  0xb3   : > { %v674_v8 = vpack.c.bf16 %v417_v5, %v416_v4  ;;  %v410_v19 = vmax.f32 %v361_v12, 0.0 }
  0xb4   : > { %v694_v9 = vpack.c.bf16 %v425_v7, %v424_v2  ;;  %v404_v16 = vmax.f32 %v346_v11, 0.0 }
  0xb5   : > { %703 = vst [vmem:[%s800_s27 + $0x40] sm:$0xff] %v674_v8  }
  0xb6   : > { %v380_v10 = vpop.f32.mrf.mxu2  ;;  %707 = vst [vmem:[%s800_s27 + $0x60] sm:$0xff] %v694_v9  }
  0xb7   : > { %v381_v22 = vadd.f32 %v789_v17, %v380_v10 }
  0xb8   : > { %v362_v13 = vpop.f32.mrf.mxu1 }
  0xb9   : > { %v363_v14 = vadd.f32 %v789_v17, %v362_v13  ;;  %v347_v15 = vpop.f32.mrf.mxu0  ;;  %v418_v28 = vmax.f32 %v381_v22, 0.0 }
  0xba   : > { %v348_v18 = vadd.f32 %v789_v17, %v347_v15 }
  0xbb   : > { %v411_v20 = vmax.f32 %v363_v14, 0.0 }
  0xbc   : > { %v405_v21 = vmax.f32 %v348_v18, 0.0 }
  0xbd   : > { %v659_v23 = vpack.c.bf16 %v411_v20, %v410_v19 }
  0xbe   : > { %v382_v24 = vpop.f32.mrf.mxu2  ;;  %v644_v25 = vpack.c.bf16 %v405_v21, %v404_v16 }
  0xbf   : > { %700 = vst [vmem:[%s800_s27 + $0x28] sm:$0xff] %v659_v23   ;;  %v383_v26 = vadd.f32 %v789_v17, %v382_v24 }
  0xc0   : > { %v365_v27 = vpop.f32.mrf.mxu1  ;;  %697 = vst [vmem:[%s800_s27 + $0x10] sm:$0xff] %v644_v25  }
  0xc1   : > { %v419_v29 = vmax.f32 %v383_v26, 0.0  ;;  %v366_v32 = vadd.f32 %v789_v17, %v365_v27 }
  0xc3   : > { %v679_v30 = vpack.c.bf16 %v419_v29, %v418_v28  ;;  %v412_v35 = vmax.f32 %v366_v32, 0.0 }
  0xc5   : > { %704 = vst [vmem:[%s800_s27 + $0x48] sm:$0xff] %v679_v30  }
  0xc6   : > { %v385_v31 = vpop.f32.mrf.mxu2 }
  0xc7   : > { %v386_v37 = vadd.f32 %v789_v17, %v385_v31 }
  0xc8   : > { %v367_v33 = vpop.f32.mrf.mxu1 }
  0xc9   : > { %v368_v34 = vadd.f32 %v789_v17, %v367_v33  ;;  %v420_v41 = vmax.f32 %v386_v37, 0.0 }
  0xcb   : > { %v413_v36 = vmax.f32 %v368_v34, 0.0 }
  0xcd   : > { %v664_v38 = vpack.c.bf16 %v413_v36, %v412_v35 }
  0xce   : > { %v387_v39 = vpop.f32.mrf.mxu2 }
  0xcf   : > { %701 = vst [vmem:[%s800_s27 + $0x30] sm:$0xff] %v664_v38   ;;  %v388_v40 = vadd.f32 %v789_v17, %v387_v39 }
  0xd1   : > { %v421_v42 = vmax.f32 %v388_v40, 0.0 }
  0xd3   : > { %v684_v43 = vpack.c.bf16 %v421_v42, %v420_v41 }
  0xd5   : > { %705 = vst [vmem:[%s800_s27 + $0x50] sm:$0xff] %v684_v43  }
  0xd6 PF: > { %s13_s12 = sadd.s32 1, %s729_s12  }
  0xd7   : > { %p10_p4 = scmp.ge.s32.totalorder %s13_s12, 4  }
  0xd9   :  { %12 = sbr.rel (!%p10_p4) target bundleno = 1 (0x1), region = 62 }

// kernel: conv_re_ae_forward.7
= control target key start
LH: loop header
LB: loop body
LE: loop exit
PB: predicated region body
PF: predicated region fallthrough
CT: control target
= control target key end

     0   :  { %vm168_vm0 = vcmask 130048   ;;  %s675_s1 = inlined_call_operand.vmem [shape: bf16[144,128], index: 1, kind: input, shape index: {}]   ;;  %s676_s0 = inlined_call_operand.vmem [shape: bf16[112,144], index: 0, kind: input, shape index: {}]   ;;  %s677_s2 = inlined_call_operand.vmem [shape: f32[1,128], index: 2, kind: input, shape index: {}]   ;;  %s678_s3 = inlined_call_operand.vmem [shape: bf16[112,128], index: 3, kind: output, shape index: {}]  }
   0x1   :  { %v444_v0 = vld [vmem:[%s675_s1 + $0x38] sm:$0xff]  ;;  %v445_v1 = vld [vmem:[%s675_s1 + $0x40] sm:$0xff]  ;;  %v328_v3 = vld [vmem:[%s676_s0 + $0x8] sm:$0xf0] }
   0x2   :  { %v423_v2 = vld [vmem:[%s676_s0 + $0x4] sm:$0xf]  ;;  %190 = vmatpush.bf16.msra.mxu0 %v444_v0  ;;  %487 = vmatpush.bf16.msra.mxu2 %v444_v0  ;;  %v443_v5 = vld [vmem:[%s675_s1 + $0x30] sm:$0xff]  ;;  %v442_v6 = vld [vmem:[%s675_s1 + $0x28] sm:$0xff] }
   0x3   :  { %v331_v4 = vor.u32 %v423_v2, %v328_v3  ;;  %241 = vmatpush.bf16.msra.mxu1 %v445_v1  ;;  %495 = vmatpush.bf16.msra.mxu3 %v445_v1  ;;  %v441_v7 = vld [vmem:[%s675_s1 + $0x20] sm:$0xff]  ;;  %v440_v8 = vld [vmem:[%s675_s1 + $0x18] sm:$0xff]  ;;  %v425_v9 = vld [vmem:[%s676_s0 + $0x14] sm:$0xf] }
   0x4   :  { %v336_v10 = vld [vmem:[%s676_s0 + $0x18] sm:$0xf0]  ;;  %v439_v12 = vld [vmem:[%s675_s1 + $0x10] sm:$0xff]  ;;  %v438_v13 = vld [vmem:[%s675_s1 + $0x8] sm:$0xff] }
   0x5   :  { %v339_v11 = vor.u32 %v425_v9, %v336_v10  ;;  %v433_v14 = vld [vmem:[%s676_s0 + $0x54] sm:$0xf]  ;;  %v368_v15 = vld [vmem:[%s676_s0 + $0x58] sm:$0xf0]  ;;  %v437_v17 = vld [vmem:[%s675_s1] sm:$0xff] }
   0x6   :  { %416 = vmatmul.msk.bf16.vlgmr.msra.gmra.mxu1 %vm168_vm0, %v331_v4  ;;  %191 = vmatpush.bf16.msra.mxu0 %v443_v5  ;;  %v371_v16 = vor.u32 %v433_v14, %v368_v15  ;;  %v326_v18 = vld [vmem:[%s676_s0] sm:$0xf]  ;;  %v424_v19 = vld [vmem:[%s676_s0 + $0x4] sm:$0xf0]  ;;  %v350_v20 = vld [vmem:[%s676_s0 + $0x30] sm:$0xf] }
   0x7   :  { %488 = vmatpush.bf16.msra.mxu2 %v443_v5  ;;  %v430_v21 = vld [vmem:[%s676_s0 + $0x34] sm:$0xf0]  ;;  %v327_v22 = vor.u32 %v424_v19, %v326_v18  ;;  %v427_v24 = vld [vmem:[%s676_s0 + $0x24] sm:$0xf]  ;;  %v344_v25 = vld [vmem:[%s676_s0 + $0x28] sm:$0xf0] }
   0x8   :  { %421 = vmatmul.msk.bf16.vlgmr.msra.gmra.mxu3 %vm168_vm0, %v371_v16  ;;  %v351_v23 = vor.u32 %v430_v21, %v350_v20  ;;  %v347_v26 = vor.u32 %v427_v24, %v344_v25  ;;  %v435_v27 = vld [vmem:[%s676_s0 + $0x64] sm:$0xf]  ;;  %v376_v28 = vld [vmem:[%s676_s0 + $0x68] sm:$0xf0]  ;;  %v334_v30 = vld [vmem:[%s676_s0 + $0x10] sm:$0xf] }
   0x9   :  { %v379_v29 = vor.u32 %v435_v27, %v376_v28  ;;  %v426_v31 = vld [vmem:[%s676_s0 + $0x14] sm:$0xf0]  ;;  %v358_v32 = vld [vmem:[%s676_s0 + $0x40] sm:$0xf]  ;;  %v432_v33 = vld [vmem:[%s676_s0 + $0x44] sm:$0xf0] }
   0xa   :  { %192 = vmatpush.bf16.msra.mxu0 %v442_v6  ;;  %v335_v34 = vor.u32 %v426_v31, %v334_v30  ;;  %v359_v35 = vor.u32 %v432_v33, %v358_v32  ;;  %v429_v36 = vld [vmem:[%s676_s0 + $0x34] sm:$0xf]  ;;  %v352_v37 = vld [vmem:[%s676_s0 + $0x38] sm:$0xf0]  ;;  %v342_v39 = vld [vmem:[%s676_s0 + $0x20] sm:$0xf] }
   0xb   :  { %489 = vmatpush.bf16.msra.mxu2 %v442_v6  ;;  %v355_v38 = vor.u32 %v429_v36, %v352_v37  ;;  %v428_v40 = vld [vmem:[%s676_s0 + $0x24] sm:$0xf0]  ;;  %v366_v41 = vld [vmem:[%s676_s0 + $0x50] sm:$0xf]  ;;  %v434_v42 = vld [vmem:[%s676_s0 + $0x54] sm:$0xf0] }
   0xc   :  { %v343_v43 = vor.u32 %v428_v40, %v342_v39  ;;  %v367_v44 = vor.u32 %v434_v42, %v366_v41  ;;  %v431_v45 = vld [vmem:[%s676_s0 + $0x44] sm:$0xf]  ;;  %v360_v46 = vld [vmem:[%s676_s0 + $0x48] sm:$0xf0]  ;;  %v374_v48 = vld [vmem:[%s676_s0 + $0x60] sm:$0xf] }
   0xd   :  { %v363_v47 = vor.u32 %v431_v45, %v360_v46  ;;  %v436_v49 = vld [vmem:[%s676_s0 + $0x64] sm:$0xf0]  ;;  %v638_v56 = vld [vmem:[%s677_s2] ss:$0 sm:$0xff] }
   0xe   :  { %193 = vmatpush.bf16.msra.mxu0 %v441_v7  ;;  %v375_v50 = vor.u32 %v436_v49, %v374_v48 }
   0xf   :  { %490 = vmatpush.bf16.msra.mxu2 %v441_v7 }
  0x12   :  { %194 = vmatpush.bf16.msra.mxu0 %v440_v8 }
  0x13   :  { %491 = vmatpush.bf16.msra.mxu2 %v440_v8 }
  0x16   :  { %417 = vmatmul.msk.bf16.gmra.mxu1 %vm168_vm0, %v339_v11  ;;  %195 = vmatpush.bf16.msra.mxu0 %v439_v12 }
  0x17   :  { %492 = vmatpush.bf16.msra.mxu2 %v439_v12 }
  0x18   :  { %422 = vmatmul.msk.bf16.gmra.mxu3 %vm168_vm0, %v379_v29 }
  0x1a   :  { %196 = vmatpush.bf16.msra.mxu0 %v438_v13 }
  0x1b   :  { %493 = vmatpush.bf16.msra.mxu2 %v438_v13 }
  0x1e   :  { %197 = vmatpush.bf16.msra.mxu0 %v437_v17 }
  0x1f   :  { %494 = vmatpush.bf16.msra.mxu2 %v437_v17 }
  0x21   :  { %198 = vmatmul.bf16.vlgmr.msra.gmra.mxu0 %v327_v22 }
  0x22   :  { %213 = vmatmul.bf16.vlgmr.msra.gmra.mxu2 %v351_v23 }
  0x26   :  { %418 = vmatmul.msk.bf16.gmra.mxu1 %vm168_vm0, %v347_v26 }
  0x31   :  { %203 = vmatmul.bf16.gmra.mxu0 %v335_v34 }
  0x32   :  { %218 = vmatmul.bf16.gmra.mxu2 %v359_v35 }
  0x36   :  { %419 = vmatmul.msk.bf16.gmra.mxu1 %vm168_vm0, %v355_v38 }
  0x41   :  { %208 = vmatmul.bf16.gmra.mxu0 %v343_v43 }
  0x42   :  { %223 = vmatmul.bf16.gmra.mxu2 %v367_v44 }
  0x46   :  { %420 = vmatmul.msk.bf16.gmra.mxu1 %vm168_vm0, %v363_v47 }
  0x52   :  { %228 = vmatmul.bf16.gmra.mxu2 %v375_v50 }
  0x83   :  { %v243_v51 = vpop.f32.mrf.mxu1 }
  0x8b   :  { %v245_v52 = vpop.f32.mrf.mxu1  ;;  %v268_v26 = vpop.f32.mrf.mxu3 }
  0x93   :  { %v248_v53 = vpop.f32.mrf.mxu1  ;;  %v270_v40 = vpop.f32.mrf.mxu3 }
  0x9b   :  { %v250_v54 = vpop.f32.mrf.mxu1 }
  0x9e   :  { %v199_v55 = vpop.f32.mrf.mxu0 }
  0x9f   :  { %v200_v57 = vadd.f32 %v638_v56, %v199_v55 }
  0xa1   :  { %v244_v61 = vadd.f32 %v243_v51, %v200_v57 }
  0xa3   :  { %v253_v58 = vpop.f32.mrf.mxu1  ;;  %v278_v0 = vmax.f32 %v244_v61, 0.0 }
  0xa5   :  { %v214_v59 = vpop.f32.mrf.mxu2 }
  0xa6   :  { %v201_v60 = vpop.f32.mrf.mxu0  ;;  %v215_v12 = vadd.f32 %v638_v56, %v214_v59 }
  0xa7   :  { %v202_v62 = vadd.f32 %v638_v56, %v201_v60 }
  0xa9   :  { %v246_v63 = vadd.f32 %v245_v52, %v202_v62 }
  0xab   :  { %v279_v1 = vmax.f32 %v246_v63, 0.0  ;;  %v255_v2 = vpop.f32.mrf.mxu1 }
  0xad   :  { %v449_v3 = vpack.c.bf16 %v279_v1, %v278_v0  ;;  %v216_v4 = vpop.f32.mrf.mxu2 }
  0xae   :  { %v204_v5 = vpop.f32.mrf.mxu0  ;;  %v217_v14 = vadd.f32 %v638_v56, %v216_v4 }
  0xaf   :  { %450 = vst [vmem:[%s678_s3] sm:$0xff] %v449_v3   ;;  %v205_v6 = vadd.f32 %v638_v56, %v204_v5 }
  0xb1   :  { %v249_v10 = vadd.f32 %v248_v53, %v205_v6 }
  0xb3   :  { %v258_v7 = vpop.f32.mrf.mxu1  ;;  %v280_v16 = vmax.f32 %v249_v10, 0.0 }
  0xb4   :  { %v259_v15 = vadd.f32 %v258_v7, %v215_v12 }
  0xb5   :  { %v219_v8 = vpop.f32.mrf.mxu2 }
  0xb6   :  { %v206_v9 = vpop.f32.mrf.mxu0  ;;  %v284_v22 = vmax.f32 %v259_v15, 0.0  ;;  %v220_v33 = vadd.f32 %v638_v56, %v219_v8 }
  0xb7   :  { %v207_v11 = vadd.f32 %v638_v56, %v206_v9 }
  0xb9   :  { %v251_v13 = vadd.f32 %v250_v54, %v207_v11  ;;  %v273_v54 = vpop.f32.mrf.mxu3 }
  0xbb   :  { %v281_v17 = vmax.f32 %v251_v13, 0.0  ;;  %v260_v18 = vpop.f32.mrf.mxu1 }
  0xbc   :  { %v261_v19 = vadd.f32 %v260_v18, %v217_v14 }
  0xbd   :  { %v454_v20 = vpack.c.bf16 %v281_v17, %v280_v16  ;;  %v221_v21 = vpop.f32.mrf.mxu2 }
  0xbe   :  { %v285_v23 = vmax.f32 %v261_v19, 0.0  ;;  %v209_v24 = vpop.f32.mrf.mxu0  ;;  %v222_v35 = vadd.f32 %v638_v56, %v221_v21 }
  0xbf   :  { %481 = vst [vmem:[%s678_s3 + $0x8] sm:$0xff] %v454_v20   ;;  %v210_v27 = vadd.f32 %v638_v56, %v209_v24 }
  0xc0   :  { %v464_v25 = vpack.c.bf16 %v285_v23, %v284_v22 }
  0xc1   :  { %v254_v31 = vadd.f32 %v253_v58, %v210_v27  ;;  %v275_v61 = vpop.f32.mrf.mxu3 }
  0xc2   :  { %483 = vst [vmem:[%s678_s3 + $0x18] sm:$0xff] %v464_v25  }
  0xc3   :  { %v263_v28 = vpop.f32.mrf.mxu1  ;;  %v282_v38 = vmax.f32 %v254_v31, 0.0 }
  0xc4   :  { %v264_v36 = vadd.f32 %v263_v28, %v220_v33 }
  0xc5   :  { %v224_v29 = vpop.f32.mrf.mxu2 }
  0xc6   :  { %v211_v30 = vpop.f32.mrf.mxu0  ;;  %v225_v37 = vadd.f32 %v638_v56, %v224_v29  ;;  %v286_v45 = vmax.f32 %v264_v36, 0.0 }
  0xc7   :  { %v212_v32 = vadd.f32 %v638_v56, %v211_v30 }
  0xc8   :  { %v269_v46 = vadd.f32 %v268_v26, %v225_v37 }
  0xc9   :  { %v256_v34 = vadd.f32 %v255_v2, %v212_v32 }
  0xca   :  { %v288_v51 = vmax.f32 %v269_v46, 0.0 }
  0xcb   :  { %v283_v39 = vmax.f32 %v256_v34, 0.0  ;;  %v265_v41 = vpop.f32.mrf.mxu1 }
  0xcc   :  { %v266_v42 = vadd.f32 %v265_v41, %v222_v35 }
  0xcd   :  { %v459_v43 = vpack.c.bf16 %v283_v39, %v282_v38  ;;  %v226_v44 = vpop.f32.mrf.mxu2 }
  0xce   :  { %v287_v47 = vmax.f32 %v266_v42, 0.0  ;;  %v227_v48 = vadd.f32 %v638_v56, %v226_v44 }
  0xcf   :  { %482 = vst [vmem:[%s678_s3 + $0x10] sm:$0xff] %v459_v43  }
  0xd0   :  { %v469_v49 = vpack.c.bf16 %v287_v47, %v286_v45  ;;  %v271_v50 = vadd.f32 %v270_v40, %v227_v48 }
  0xd2   :  { %484 = vst [vmem:[%s678_s3 + $0x20] sm:$0xff] %v469_v49   ;;  %v289_v52 = vmax.f32 %v271_v50, 0.0 }
  0xd4   :  { %v474_v53 = vpack.c.bf16 %v289_v52, %v288_v51 }
  0xd5   :  { %v229_v55 = vpop.f32.mrf.mxu2 }
  0xd6   :  { %485 = vst [vmem:[%s678_s3 + $0x28] sm:$0xff] %v474_v53   ;;  %v230_v57 = vadd.f32 %v638_v56, %v229_v55 }
  0xd8   :  { %v274_v59 = vadd.f32 %v273_v54, %v230_v57 }
  0xda   :  { %v290_v63 = vmax.f32 %v274_v59, 0.0 }
  0xdd   :  { %v231_v58 = vpop.f32.mrf.mxu2 }
  0xde   :  { %v232_v60 = vadd.f32 %v638_v56, %v231_v58 }
  0xe0   :  { %v276_v62 = vadd.f32 %v275_v61, %v232_v60 }
  0xe2   :  { %v291_v0 = vmax.f32 %v276_v62, 0.0 }
  0xe4   :  { %v479_v1 = vpack.c.bf16 %v291_v0, %v290_v63 }
  0xe6   :  { %486 = vst [vmem:[%s678_s3 + $0x30] sm:$0xff] %v479_v1  }

// kernel: tile.8
= control target key start
LH: loop header
LB: loop body
LE: loop exit
PB: predicated region body
PF: predicated region fallthrough
CT: control target
= control target key end

     0   :  { %s58_s0 = inlined_call_operand.vmem [shape: f32[32], index: 0, kind: input, shape index: {}]   ;;  %s59_s1 = inlined_call_operand.vmem [shape: f32[49,32], index: 1, kind: output, shape index: {}]  }
   0x1   :  { %v4_v0 = vld [vmem:[%s58_s0] ss:$0 sm:$0xff] }
   0x2   :  { %5 = vst [vmem:[%s59_s1] sm:$0xff] %v4_v0 }
   0x3   :  { %18 = vst [vmem:[%s59_s1 + $0x8] sm:$0xff] %v4_v0 }
   0x4   :  { %19 = vst [vmem:[%s59_s1 + $0x10] sm:$0xff] %v4_v0 }
   0x5   :  { %20 = vst [vmem:[%s59_s1 + $0x18] sm:$0xff] %v4_v0 }
   0x6   :  { %21 = vst [vmem:[%s59_s1 + $0x20] sm:$0xff] %v4_v0 }
   0x7   :  { %22 = vst [vmem:[%s59_s1 + $0x28] sm:$0xff] %v4_v0 }
   0x8   :  { %23 = vst [vmem:[%s59_s1 + $0x30] sm:$0xff] %v4_v0 }

// kernel: tile.9
= control target key start
LH: loop header
LB: loop body
LE: loop exit
PB: predicated region body
PF: predicated region fallthrough
CT: control target
= control target key end

     0   :  { %s63_s12 = smov 96   ;;  %s64_s13 = smov 64   ;;  %vm3_vm0 = vcmask 261120   ;;  %vm14_vm1 = vcmask 1048320   ;;  %vm27_vm2 = vcmask 785920   ;;  %vm40_vm3 = vcmask 523520   ;;  %s124_s0 = inlined_call_operand.vmem [shape: f32[49,32], index: 0, kind: input, shape index: {}]   ;;  %s125_s1 = inlined_call_operand.vmem [shape: f32[1568], index: 1, kind: output, shape index: {}]  }
   0x1   :  { %v51_v0 = vld [vmem:[%s124_s0 + $0x3] ss:$4 sm:$0xff]   ;;  %v54_v1 = vld [vmem:[%s124_s0 + $0x2] ss:$4 sm:$0xff]   ;;  %v57_v2 = vld [vmem:[%s124_s0 + $0x1] ss:$4 sm:$0xff]  }
   0x2   :  { %12 = vrot.lane.b32.xlu0 %v51_v0, %s63_s12  ;;  %25 = vrot.lane.b32.xlu1 %v54_v1, %s64_s13  ;;  %s65_s14 = smov 32   ;;  %v52_v3 = vld [vmem:[%s124_s0 + $0x23] ss:$4 sm:$0xf]   ;;  %v2_v6 = vld [vmem:[%s124_s0] ss:$4 sm:$0xff]  }
   0x3   :  { %38 = vrot.lane.b32.xlu2 %v57_v2, %s65_s14  ;;  %v55_v4 = vld [vmem:[%s124_s0 + $0x22] ss:$4 sm:$0xf]   ;;  %v58_v5 = vld [vmem:[%s124_s0 + $0x21] ss:$4 sm:$0xf]  }
   0x4   :  { %4 = vst.msk [vmem:[%s125_s1] sm:$0xff] %vm3_vm0, %v2_v6   ;;  %v49_v7 = vld [vmem:[%s124_s0 + $0x20] ss:$4 sm:$0x1f]  }
   0x5   :  { %50 = vst.msk [vmem:[%s125_s1 + $0x8] sm:$0x1f] %vm3_vm0, %v49_v7  }
   0xa   :  { %18 = vrot.lane.b32.xlu0 %v52_v3, %s63_s12  ;;  %31 = vrot.lane.b32.xlu1 %v55_v4, %s64_s13 }
   0xb   :  { %44 = vrot.lane.b32.xlu2 %v58_v5, %s65_s14 }
  0x5d   :  { %v39_v8 = vpop.permute.xlu2 %38  }
  0x65   :  { %v45_v9 = vpop.permute.xlu2 %44  }
  0x74   :  { %v13_v10 = vpop.permute.xlu0 %12   ;;  %v26_v11 = vpop.permute.xlu1 %25  }
  0x75   :  { %15 = vst.msk [vmem:[%s125_s1] sm:$0xff] %vm14_vm1, %v13_v10  }
  0x76   :  { %28 = vst.msk [vmem:[%s125_s1] sm:$0xff] %vm27_vm2, %v26_v11  }
  0x77   :  { %41 = vst.msk [vmem:[%s125_s1] sm:$0xff] %vm40_vm3, %v39_v8  }
  0x7c   :  { %v19_v12 = vpop.permute.xlu0 %18   ;;  %v32_v13 = vpop.permute.xlu1 %31  }
  0x7d   :  { %53 = vst.msk [vmem:[%s125_s1 + $0x8] sm:$0xf] %vm14_vm1, %v19_v12  }
  0x7e   :  { %56 = vst.msk [vmem:[%s125_s1 + $0x8] sm:$0xf] %vm27_vm2, %v32_v13  }
  0x7f   :  { %59 = vst.msk [vmem:[%s125_s1 + $0x8] sm:$0xf] %vm40_vm3, %v45_v9  }

// kernel: conv_re_ae_forward.8
= control target key start
LH: loop header
LB: loop body
LE: loop exit
PB: predicated region body
PF: predicated region fallthrough
CT: control target
= control target key end

     0   :  { %vm882_vm0 = vcmask 261120   ;;  %s2036_s1 = inlined_call_operand.vmem [shape: bf16[1568,128], index: 1, kind: input, shape index: {}]   ;;  %s2037_s2 = inlined_call_operand.vmem [shape: f32[1,128], index: 2, kind: input, shape index: {}]   ;;  %s2038_s0 = inlined_call_operand.vmem [shape: bf16[16,1568], index: 0, kind: input, shape index: {}]   ;;  %s2039_s3 = inlined_call_operand.vmem [shape: bf16[16,128], index: 3, kind: output, shape index: {}]  }
   0x1   :  { %v1541_v0 = vld [vmem:[%s2036_s1 + $0x38] sm:$0xff]  ;;  %v1540_v4 = vld [vmem:[%s2036_s1 + $0x30] sm:$0xff]  ;;  %v1539_v8 = vld [vmem:[%s2036_s1 + $0x28] sm:$0xff] }
   0x2   :  { %v1557_v1 = vld [vmem:[%s2036_s1 + $0xb8] sm:$0xff]  ;;  %886 = vmatpush.bf16.msra.mxu0 %v1541_v0  ;;  %v1556_v5 = vld [vmem:[%s2036_s1 + $0xb0] sm:$0xff]  ;;  %v1555_v9 = vld [vmem:[%s2036_s1 + $0xa8] sm:$0xff] }
   0x3   :  { %v1565_v2 = vld [vmem:[%s2036_s1 + $0xf8] sm:$0xff]  ;;  %914 = vmatpush.bf16.msra.mxu2 %v1557_v1  ;;  %v1564_v6 = vld [vmem:[%s2036_s1 + $0xf0] sm:$0xff]  ;;  %v1563_v10 = vld [vmem:[%s2036_s1 + $0xe8] sm:$0xff] }
   0x4   :  { %v1549_v3 = vld [vmem:[%s2036_s1 + $0x78] sm:$0xff]  ;;  %928 = vmatpush.bf16.msra.mxu3 %v1565_v2  ;;  %v1548_v7 = vld [vmem:[%s2036_s1 + $0x70] sm:$0xff]  ;;  %v1547_v11 = vld [vmem:[%s2036_s1 + $0x68] sm:$0xff] }
   0x5   :  { %900 = vmatpush.bf16.msra.mxu1 %v1549_v3  ;;  %v1538_v12 = vld [vmem:[%s2036_s1 + $0x20] sm:$0xff]  ;;  %v1537_v16 = vld [vmem:[%s2036_s1 + $0x18] sm:$0xff]  ;;  %v1536_v20 = vld [vmem:[%s2036_s1 + $0x10] sm:$0xff] }
   0x6   :  { %887 = vmatpush.bf16.msra.mxu0 %v1540_v4  ;;  %v1554_v13 = vld [vmem:[%s2036_s1 + $0xa0] sm:$0xff]  ;;  %v1553_v17 = vld [vmem:[%s2036_s1 + $0x98] sm:$0xff]  ;;  %v1552_v21 = vld [vmem:[%s2036_s1 + $0x90] sm:$0xff] }
   0x7   :  { %915 = vmatpush.bf16.msra.mxu2 %v1556_v5  ;;  %v1562_v14 = vld [vmem:[%s2036_s1 + $0xe0] sm:$0xff]  ;;  %v1561_v18 = vld [vmem:[%s2036_s1 + $0xd8] sm:$0xff]  ;;  %v1560_v22 = vld [vmem:[%s2036_s1 + $0xd0] sm:$0xff] }
   0x8   :  { %929 = vmatpush.bf16.msra.mxu3 %v1564_v6  ;;  %v1546_v15 = vld [vmem:[%s2036_s1 + $0x60] sm:$0xff]  ;;  %v1545_v19 = vld [vmem:[%s2036_s1 + $0x58] sm:$0xff]  ;;  %v1544_v23 = vld [vmem:[%s2036_s1 + $0x50] sm:$0xff] }
   0x9   :  { %901 = vmatpush.bf16.msra.mxu1 %v1548_v7  ;;  %v1535_v24 = vld [vmem:[%s2036_s1 + $0x8] sm:$0xff]  ;;  %v1534_v28 = vld [vmem:[%s2036_s1] sm:$0xff]  ;;  %v1573_v31 = vld [vmem:[%s2036_s1 + $0x138] sm:$0xff] }
   0xa   :  { %888 = vmatpush.bf16.msra.mxu0 %v1539_v8  ;;  %v1551_v25 = vld [vmem:[%s2036_s1 + $0x88] sm:$0xff]  ;;  %v1550_v29 = vld [vmem:[%s2036_s1 + $0x80] sm:$0xff]  ;;  %v1527_v33 = vld [vmem:[%s2038_s0 + $0x30] sm:$0xf0] }
   0xb   :  { %916 = vmatpush.bf16.msra.mxu2 %v1555_v9  ;;  %v1559_v26 = vld [vmem:[%s2036_s1 + $0xc8] sm:$0xff]  ;;  %v1558_v30 = vld [vmem:[%s2036_s1 + $0xc0] sm:$0xff]  ;;  %v1589_v34 = vld [vmem:[%s2036_s1 + $0x1b8] sm:$0xff] }
   0xc   :  { %930 = vmatpush.bf16.msra.mxu3 %v1563_v10  ;;  %v1543_v27 = vld [vmem:[%s2036_s1 + $0x48] sm:$0xff]  ;;  %v1078_v32 = vld [vmem:[%s2038_s0] sm:$0xf]  ;;  %v1528_v36 = vld [vmem:[%s2038_s0 + $0x38] sm:$0xf0] }
   0xd   :  { %902 = vmatpush.bf16.msra.mxu1 %v1547_v11  ;;  %v1086_v35 = vld [vmem:[%s2038_s0 + $0x8] sm:$0xf]  ;;  %v1597_v37 = vld [vmem:[%s2036_s1 + $0x1f8] sm:$0xff]  ;;  %v1522_v38 = vld [vmem:[%s2038_s0 + $0xc] sm:$0xf]  ;;  %v1079_v41 = vor.u32 %v1527_v33, %v1078_v32 }
   0xe   :  { %889 = vmatpush.bf16.msra.mxu0 %v1538_v12  ;;  %v1088_v39 = vld [vmem:[%s2038_s0 + $0x3c] sm:$0xf0]  ;;  %v1581_v42 = vld [vmem:[%s2036_s1 + $0x178] sm:$0xff]  ;;  %v1087_v43 = vor.u32 %v1528_v36, %v1086_v35  ;;  %v1521_v44 = vld [vmem:[%s2038_s0 + $0x4] sm:$0xf] }
   0xf   :  { %917 = vmatpush.bf16.msra.mxu2 %v1554_v13  ;;  %v1542_v40 = vld [vmem:[%s2036_s1 + $0x40] sm:$0xff]  ;;  %v1080_v45 = vld [vmem:[%s2038_s0 + $0x34] sm:$0xf0]  ;;  %v1572_v46 = vld [vmem:[%s2036_s1 + $0x130] sm:$0xff]  ;;  %v1091_v47 = vor.u32 %v1522_v38, %v1088_v39 }
  0x10   :  { %931 = vmatpush.bf16.msra.mxu3 %v1562_v14  ;;  %v1588_v48 = vld [vmem:[%s2036_s1 + $0x1b0] sm:$0xff]  ;;  %v1083_v50 = vor.u32 %v1521_v44, %v1080_v45  ;;  %v1571_v52 = vld [vmem:[%s2036_s1 + $0x128] sm:$0xff]  ;;  %v1570_v56 = vld [vmem:[%s2036_s1 + $0x120] sm:$0xff] }
  0x11   :  { %903 = vmatpush.bf16.msra.mxu1 %v1546_v15  ;;  %v1596_v49 = vld [vmem:[%s2036_s1 + $0x1f0] sm:$0xff]  ;;  %v1587_v53 = vld [vmem:[%s2036_s1 + $0x1a8] sm:$0xff]  ;;  %v1586_v57 = vld [vmem:[%s2036_s1 + $0x1a0] sm:$0xff] }
  0x12   :  { %890 = vmatpush.bf16.msra.mxu0 %v1537_v16  ;;  %v1580_v51 = vld [vmem:[%s2036_s1 + $0x170] sm:$0xff]  ;;  %v1595_v54 = vld [vmem:[%s2036_s1 + $0x1e8] sm:$0xff]  ;;  %v1594_v58 = vld [vmem:[%s2036_s1 + $0x1e0] sm:$0xff] }
  0x13   :  { %918 = vmatpush.bf16.msra.mxu2 %v1553_v17  ;;  %v1579_v55 = vld [vmem:[%s2036_s1 + $0x168] sm:$0xff]  ;;  %v1578_v59 = vld [vmem:[%s2036_s1 + $0x160] sm:$0xff]  ;;  %v1569_v60 = vld [vmem:[%s2036_s1 + $0x118] sm:$0xff] }
  0x14   :  { %932 = vmatpush.bf16.msra.mxu3 %v1561_v18  ;;  %v1585_v61 = vld [vmem:[%s2036_s1 + $0x198] sm:$0xff]  ;;  %v1568_v0 = vld [vmem:[%s2036_s1 + $0x110] sm:$0xff]  ;;  %v1567_v4 = vld [vmem:[%s2036_s1 + $0x108] sm:$0xff] }
  0x15   :  { %904 = vmatpush.bf16.msra.mxu1 %v1545_v19  ;;  %v1593_v62 = vld [vmem:[%s2036_s1 + $0x1d8] sm:$0xff]  ;;  %v1584_v1 = vld [vmem:[%s2036_s1 + $0x190] sm:$0xff]  ;;  %v1583_v5 = vld [vmem:[%s2036_s1 + $0x188] sm:$0xff] }
  0x16   :  { %891 = vmatpush.bf16.msra.mxu0 %v1536_v20  ;;  %v1577_v63 = vld [vmem:[%s2036_s1 + $0x158] sm:$0xff]  ;;  %v1592_v2 = vld [vmem:[%s2036_s1 + $0x1d0] sm:$0xff]  ;;  %v1591_v6 = vld [vmem:[%s2036_s1 + $0x1c8] sm:$0xff] }
  0x17   :  { %919 = vmatpush.bf16.msra.mxu2 %v1552_v21  ;;  %v1576_v3 = vld [vmem:[%s2036_s1 + $0x150] sm:$0xff]  ;;  %v1575_v7 = vld [vmem:[%s2036_s1 + $0x148] sm:$0xff]  ;;  %v1566_v8 = vld [vmem:[%s2036_s1 + $0x100] sm:$0xff] }
  0x18   :  { %933 = vmatpush.bf16.msra.mxu3 %v1560_v22  ;;  %v1582_v9 = vld [vmem:[%s2036_s1 + $0x180] sm:$0xff]  ;;  %v1605_v11 = vld [vmem:[%s2036_s1 + $0x238] sm:$0xff]  ;;  %v1094_v13 = vld [vmem:[%s2038_s0 + $0x10] sm:$0xf] }
  0x19   :  { %905 = vmatpush.bf16.msra.mxu1 %v1544_v23  ;;  %v1590_v10 = vld [vmem:[%s2036_s1 + $0x1c0] sm:$0xff]  ;;  %v1621_v12 = vld [vmem:[%s2036_s1 + $0x2b8] sm:$0xff]  ;;  %v1530_v16 = vld [vmem:[%s2038_s0 + $0x48] sm:$0xf0] }
  0x1a   :  { %892 = vmatpush.bf16.msra.mxu0 %v1535_v24  ;;  %v1529_v14 = vld [vmem:[%s2038_s0 + $0x40] sm:$0xf0]  ;;  %v1102_v15 = vld [vmem:[%s2038_s0 + $0x18] sm:$0xf]  ;;  %v1524_v18 = vld [vmem:[%s2038_s0 + $0x1c] sm:$0xf] }
  0x1b   :  { %920 = vmatpush.bf16.msra.mxu2 %v1551_v25  ;;  %v1629_v17 = vld [vmem:[%s2036_s1 + $0x2f8] sm:$0xff]  ;;  %v1104_v19 = vld [vmem:[%s2038_s0 + $0x4c] sm:$0xf0]  ;;  %v1574_v20 = vld [vmem:[%s2036_s1 + $0x140] sm:$0xff]  ;;  %v1095_v23 = vor.u32 %v1529_v14, %v1094_v13  ;;  %v1103_v24 = vor.u32 %v1530_v16, %v1102_v15 }
  0x1c   :  { %934 = vmatpush.bf16.msra.mxu3 %v1559_v26  ;;  %v1523_v21 = vld [vmem:[%s2038_s0 + $0x14] sm:$0xf]  ;;  %v1096_v22 = vld [vmem:[%s2038_s0 + $0x44] sm:$0xf0]  ;;  %v1613_v25 = vld [vmem:[%s2036_s1 + $0x278] sm:$0xff]  ;;  %v1107_v26 = vor.u32 %v1524_v18, %v1104_v19 }
  0x1d   :  { %906 = vmatpush.bf16.msra.mxu1 %v1543_v27  ;;  %v1099_v27 = vor.u32 %v1523_v21, %v1096_v22  ;;  %v1603_v32 = vld [vmem:[%s2036_s1 + $0x228] sm:$0xff]  ;;  %v1602_v36 = vld [vmem:[%s2036_s1 + $0x220] sm:$0xff]  ;;  %v1600_v44 = vld [vmem:[%s2036_s1 + $0x210] sm:$0xff] }
  0x1e   :  { %893 = vmatpush.bf16.msra.mxu0 %v1534_v28  ;;  %v1604_v28 = vld [vmem:[%s2036_s1 + $0x230] sm:$0xff]  ;;  %v1619_v33 = vld [vmem:[%s2036_s1 + $0x2a8] sm:$0xff]  ;;  %v1626_v38 = vld [vmem:[%s2036_s1 + $0x2e0] sm:$0xff] }
  0x1f   :  { %921 = vmatpush.bf16.msra.mxu2 %v1550_v29  ;;  %v1620_v29 = vld [vmem:[%s2036_s1 + $0x2b0] sm:$0xff]  ;;  %v1611_v35 = vld [vmem:[%s2036_s1 + $0x268] sm:$0xff]  ;;  %v1610_v39 = vld [vmem:[%s2036_s1 + $0x260] sm:$0xff] }
  0x20   :  { %935 = vmatpush.bf16.msra.mxu3 %v1558_v30  ;;  %v1628_v30 = vld [vmem:[%s2036_s1 + $0x2f0] sm:$0xff]  ;;  %v1637_v15 = vld [vmem:[%s2037_s2] ss:$0 sm:$0xff] }
  0x21   :  { %907 = vmatpush.bf16.msra.mxu1 %v1542_v40  ;;  %894 = vmatmul.bf16.vlgmr.msra.gmra.mxu0 %v1079_v41  ;;  %v1601_v40 = vld [vmem:[%s2036_s1 + $0x218] sm:$0xff]  ;;  %v1616_v45 = vld [vmem:[%s2036_s1 + $0x290] sm:$0xff] }
  0x22   :  { %942 = vmatpush.bf16.msrb.mxu0 %v1573_v31  ;;  %922 = vmatmul.bf16.vlgmr.msra.gmra.mxu2 %v1087_v43  ;;  %v1612_v31 = vld [vmem:[%s2036_s1 + $0x270] sm:$0xff]  ;;  %v1617_v41 = vld [vmem:[%s2036_s1 + $0x298] sm:$0xff] }
  0x23   :  { %970 = vmatpush.bf16.msrb.mxu2 %v1589_v34  ;;  %936 = vmatmul.bf16.vlgmr.msra.gmra.mxu3 %v1091_v47  ;;  %v1627_v34 = vld [vmem:[%s2036_s1 + $0x2e8] sm:$0xff]  ;;  %v1609_v43 = vld [vmem:[%s2036_s1 + $0x258] sm:$0xff]  ;;  %v1608_v47 = vld [vmem:[%s2036_s1 + $0x250] sm:$0xff] }
  0x24   :  { %984 = vmatpush.bf16.msrb.mxu3 %v1597_v37  ;;  %908 = vmatmul.bf16.vlgmr.msra.gmra.mxu1 %v1083_v50  ;;  %v1618_v37 = vld [vmem:[%s2036_s1 + $0x2a0] sm:$0xff]  ;;  %v1623_v50 = vld [vmem:[%s2036_s1 + $0x2c8] sm:$0xff] }
  0x25   :  { %956 = vmatpush.bf16.msrb.mxu1 %v1581_v42  ;;  %v1625_v42 = vld [vmem:[%s2036_s1 + $0x2d8] sm:$0xff] }
  0x26   :  { %943 = vmatpush.bf16.msrb.mxu0 %v1572_v46  ;;  %v1624_v46 = vld [vmem:[%s2036_s1 + $0x2d0] sm:$0xff] }
  0x27   :  { %971 = vmatpush.bf16.msrb.mxu2 %v1588_v48  ;;  %v1599_v48 = vld [vmem:[%s2036_s1 + $0x208] sm:$0xff] }
  0x28   :  { %985 = vmatpush.bf16.msrb.mxu3 %v1596_v49  ;;  %v1615_v49 = vld [vmem:[%s2036_s1 + $0x288] sm:$0xff] }
  0x29   :  { %957 = vmatpush.bf16.msrb.mxu1 %v1580_v51  ;;  %v1607_v51 = vld [vmem:[%s2036_s1 + $0x248] sm:$0xff] }
  0x2a   :  { %944 = vmatpush.bf16.msrb.mxu0 %v1571_v52  ;;  %v1598_v52 = vld [vmem:[%s2036_s1 + $0x200] sm:$0xff] }
  0x2b   :  { %972 = vmatpush.bf16.msrb.mxu2 %v1587_v53  ;;  %v1614_v53 = vld [vmem:[%s2036_s1 + $0x280] sm:$0xff] }
  0x2c   :  { %986 = vmatpush.bf16.msrb.mxu3 %v1595_v54  ;;  %v1622_v54 = vld [vmem:[%s2036_s1 + $0x2c0] sm:$0xff] }
  0x2d   :  { %958 = vmatpush.bf16.msrb.mxu1 %v1579_v55  ;;  %v1110_v55 = vld [vmem:[%s2038_s0 + $0x20] sm:$0xf] }
  0x2e   :  { %945 = vmatpush.bf16.msrb.mxu0 %v1570_v56  ;;  %v1531_v56 = vld [vmem:[%s2038_s0 + $0x50] sm:$0xf0] }
  0x2f   :  { %973 = vmatpush.bf16.msrb.mxu2 %v1586_v57  ;;  %v1118_v57 = vld [vmem:[%s2038_s0 + $0x28] sm:$0xf] }
  0x30   :  { %987 = vmatpush.bf16.msrb.mxu3 %v1594_v58  ;;  %v1532_v58 = vld [vmem:[%s2038_s0 + $0x58] sm:$0xf0] }
  0x31   :  { %959 = vmatpush.bf16.msrb.mxu1 %v1578_v59  ;;  %v1526_v59 = vld [vmem:[%s2038_s0 + $0x2c] sm:$0xf] }
  0x32   :  { %946 = vmatpush.bf16.msrb.mxu0 %v1569_v60  ;;  %v1120_v60 = vld [vmem:[%s2038_s0 + $0x5c] sm:$0xf0] }
  0x33   :  { %974 = vmatpush.bf16.msrb.mxu2 %v1585_v61  ;;  %v1631_v61 = vld [vmem:[%s2036_s1 + $0x308] sm:$0xff] }
  0x34   :  { %988 = vmatpush.bf16.msrb.mxu3 %v1593_v62  ;;  %v1606_v62 = vld [vmem:[%s2036_s1 + $0x240] sm:$0xff] }
  0x35   :  { %960 = vmatpush.bf16.msrb.mxu1 %v1577_v63  ;;  %v1111_v63 = vor.u32 %v1531_v56, %v1110_v55 }
  0x36   :  { %947 = vmatpush.bf16.msrb.mxu0 %v1568_v0  ;;  %v1525_v0 = vld [vmem:[%s2038_s0 + $0x24] sm:$0xf] }
  0x37   :  { %975 = vmatpush.bf16.msrb.mxu2 %v1584_v1  ;;  %v1112_v1 = vld [vmem:[%s2038_s0 + $0x54] sm:$0xf0] }
  0x38   :  { %989 = vmatpush.bf16.msrb.mxu3 %v1592_v2  ;;  %v1119_v2 = vor.u32 %v1532_v58, %v1118_v57 }
  0x39   :  { %961 = vmatpush.bf16.msrb.mxu1 %v1576_v3  ;;  %v1123_v3 = vor.u32 %v1526_v59, %v1120_v60 }
  0x3a   :  { %948 = vmatpush.bf16.msrb.mxu0 %v1567_v4  ;;  %v1115_v4 = vor.u32 %v1525_v0, %v1112_v1 }
  0x3b   :  { %976 = vmatpush.bf16.msrb.mxu2 %v1583_v5  ;;  %v1630_v5 = vld [vmem:[%s2036_s1 + $0x300] sm:$0xff] }
  0x3c   :  { %990 = vmatpush.bf16.msrb.mxu3 %v1591_v6  ;;  %v1126_v6 = vld [vmem:[%s2038_s0 + $0x30] sm:$0xf] }
  0x3d   :  { %962 = vmatpush.bf16.msrb.mxu1 %v1575_v7  ;;  %v1533_v7 = vld [vmem:[%s2038_s0 + $0x60] sm:$0xf0] }
  0x3e   :  { %949 = vmatpush.bf16.msrb.mxu0 %v1566_v8  ;;  %v1127_v8 = vor.u32 %v1533_v7, %v1126_v6 }
  0x3f   :  { %977 = vmatpush.bf16.msrb.mxu2 %v1582_v9 }
  0x40   :  { %991 = vmatpush.bf16.msrb.mxu3 %v1590_v10 }
  0x41   :  { %963 = vmatpush.bf16.msrb.mxu1 %v1574_v20  ;;  %950 = vmatmul.bf16.vlgmr.msrb.gmra.mxu0 %v1095_v23 }
  0x42   :  { %998 = vmatpush.bf16.msra.mxu0 %v1605_v11  ;;  %978 = vmatmul.bf16.vlgmr.msrb.gmra.mxu2 %v1103_v24 }
  0x43   :  { %1026 = vmatpush.bf16.msra.mxu2 %v1621_v12  ;;  %992 = vmatmul.bf16.vlgmr.msrb.gmra.mxu3 %v1107_v26 }
  0x44   :  { %1040 = vmatpush.bf16.msra.mxu3 %v1629_v17  ;;  %964 = vmatmul.bf16.vlgmr.msrb.gmra.mxu1 %v1099_v27 }
  0x45   :  { %1012 = vmatpush.bf16.msra.mxu1 %v1613_v25 }
  0x46   :  { %999 = vmatpush.bf16.msra.mxu0 %v1604_v28 }
  0x47   :  { %1027 = vmatpush.bf16.msra.mxu2 %v1620_v29 }
  0x48   :  { %1041 = vmatpush.bf16.msra.mxu3 %v1628_v30 }
  0x49   :  { %1013 = vmatpush.bf16.msra.mxu1 %v1612_v31 }
  0x4a   :  { %1000 = vmatpush.bf16.msra.mxu0 %v1603_v32 }
  0x4b   :  { %1028 = vmatpush.bf16.msra.mxu2 %v1619_v33 }
  0x4c   :  { %1042 = vmatpush.bf16.msra.mxu3 %v1627_v34 }
  0x4d   :  { %1014 = vmatpush.bf16.msra.mxu1 %v1611_v35 }
  0x4e   :  { %1001 = vmatpush.bf16.msra.mxu0 %v1602_v36 }
  0x4f   :  { %1029 = vmatpush.bf16.msra.mxu2 %v1618_v37 }
  0x50   :  { %1043 = vmatpush.bf16.msra.mxu3 %v1626_v38 }
  0x51   :  { %1015 = vmatpush.bf16.msra.mxu1 %v1610_v39 }
  0x52   :  { %1002 = vmatpush.bf16.msra.mxu0 %v1601_v40 }
  0x53   :  { %1030 = vmatpush.bf16.msra.mxu2 %v1617_v41 }
  0x54   :  { %1044 = vmatpush.bf16.msra.mxu3 %v1625_v42 }
  0x55   :  { %1016 = vmatpush.bf16.msra.mxu1 %v1609_v43 }
  0x56   :  { %1003 = vmatpush.bf16.msra.mxu0 %v1600_v44 }
  0x57   :  { %1031 = vmatpush.bf16.msra.mxu2 %v1616_v45 }
  0x58   :  { %1045 = vmatpush.bf16.msra.mxu3 %v1624_v46 }
  0x59   :  { %1017 = vmatpush.bf16.msra.mxu1 %v1608_v47 }
  0x5a   :  { %1004 = vmatpush.bf16.msra.mxu0 %v1599_v48 }
  0x5b   :  { %1032 = vmatpush.bf16.msra.mxu2 %v1615_v49 }
  0x5c   :  { %1046 = vmatpush.bf16.msra.mxu3 %v1623_v50 }
  0x5d   :  { %1018 = vmatpush.bf16.msra.mxu1 %v1607_v51 }
  0x5e   :  { %1005 = vmatpush.bf16.msra.mxu0 %v1598_v52 }
  0x5f   :  { %1033 = vmatpush.bf16.msra.mxu2 %v1614_v53 }
  0x60   :  { %1047 = vmatpush.bf16.msra.mxu3 %v1622_v54 }
  0x61   :  { %1019 = vmatpush.bf16.msra.mxu1 %v1606_v62  ;;  %1006 = vmatmul.bf16.vlgmr.msra.gmra.mxu0 %v1111_v63 }
  0x62   :  { %1060 = vmatpush.bf16.msrb.mxu0 %v1631_v61  ;;  %1034 = vmatmul.bf16.vlgmr.msra.gmra.mxu2 %v1119_v2 }
  0x63   :  { %1048 = vmatmul.bf16.vlgmr.msra.gmra.mxu3 %v1123_v3 }
  0x64   :  { %1020 = vmatmul.bf16.vlgmr.msra.gmra.mxu1 %v1115_v4 }
  0x66   :  { %1061 = vmatpush.bf16.msrb.mxu0 %v1630_v5 }
  0x71   :  { %1520 = vmatmul.msk.bf16.vlgmr.msrb.gmra.mxu0 %vm882_vm0, %v1127_v8 }
  0x9e   :  { %v895_v9 = vpop.f32.mrf.mxu0 }
  0x9f   :  { %v896_v18 = vadd.f32 %v1637_v15, %v895_v9 }
  0xa1   :  { %v909_v10 = vpop.f32.mrf.mxu1 }
  0xa2   :  { %v910_v21 = vadd.f32 %v909_v10, %v896_v18 }
  0xa5   :  { %v923_v11 = vpop.f32.mrf.mxu2 }
  0xa6   :  { %v897_v12 = vpop.f32.mrf.mxu0  ;;  %v937_v13 = vpop.f32.mrf.mxu3  ;;  %v924_v24 = vadd.f32 %v923_v11, %v910_v21 }
  0xa7   :  { %v898_v22 = vadd.f32 %v1637_v15, %v897_v12 }
  0xa8   :  { %v938_v28 = vadd.f32 %v937_v13, %v924_v24 }
  0xa9   :  { %v911_v14 = vpop.f32.mrf.mxu1 }
  0xaa   :  { %v912_v25 = vadd.f32 %v911_v14, %v898_v22 }
  0xad   :  { %v925_v16 = vpop.f32.mrf.mxu2 }
  0xae   :  { %v939_v19 = vpop.f32.mrf.mxu3  ;;  %v926_v29 = vadd.f32 %v925_v16, %v912_v25 }
  0xb0   :  { %v940_v31 = vadd.f32 %v939_v19, %v926_v29 }
  0xbe   :  { %v951_v17 = vpop.f32.mrf.mxu0 }
  0xbf   :  { %v952_v32 = vadd.f32 %v951_v17, %v938_v28 }
  0xc1   :  { %v965_v20 = vpop.f32.mrf.mxu1 }
  0xc2   :  { %v966_v36 = vadd.f32 %v965_v20, %v952_v32 }
  0xc5   :  { %v979_v23 = vpop.f32.mrf.mxu2 }
  0xc6   :  { %v953_v26 = vpop.f32.mrf.mxu0  ;;  %v993_v27 = vpop.f32.mrf.mxu3  ;;  %v980_v40 = vadd.f32 %v979_v23, %v966_v36 }
  0xc7   :  { %v954_v35 = vadd.f32 %v953_v26, %v940_v31 }
  0xc8   :  { %v994_v44 = vadd.f32 %v993_v27, %v980_v40 }
  0xc9   :  { %v967_v30 = vpop.f32.mrf.mxu1 }
  0xca   :  { %v968_v39 = vadd.f32 %v967_v30, %v954_v35 }
  0xcd   :  { %v981_v33 = vpop.f32.mrf.mxu2 }
  0xce   :  { %v995_v37 = vpop.f32.mrf.mxu3  ;;  %v982_v41 = vadd.f32 %v981_v33, %v968_v39 }
  0xd0   :  { %v996_v45 = vadd.f32 %v995_v37, %v982_v41 }
  0xde   :  { %v1007_v34 = vpop.f32.mrf.mxu0 }
  0xdf   :  { %v1008_v47 = vadd.f32 %v1007_v34, %v994_v44 }
  0xe1   :  { %v1021_v38 = vpop.f32.mrf.mxu1 }
  0xe2   :  { %v1022_v52 = vadd.f32 %v1021_v38, %v1008_v47 }
  0xe5   :  { %v1035_v42 = vpop.f32.mrf.mxu2 }
  0xe6   :  { %v1009_v43 = vpop.f32.mrf.mxu0  ;;  %v1049_v46 = vpop.f32.mrf.mxu3  ;;  %v1036_v54 = vadd.f32 %v1035_v42, %v1022_v52 }
  0xe7   :  { %v1010_v48 = vadd.f32 %v1009_v43, %v996_v45 }
  0xe8   :  { %v1050_v57 = vadd.f32 %v1049_v46, %v1036_v54 }
  0xe9   :  { %v1023_v49 = vpop.f32.mrf.mxu1 }
  0xea   :  { %v1024_v53 = vadd.f32 %v1023_v49, %v1010_v48 }
  0xed   :  { %v1037_v50 = vpop.f32.mrf.mxu2 }
  0xee   :  { %v1063_v51 = vpop.f32.mrf.mxu0  ;;  %v1038_v55 = vadd.f32 %v1037_v50, %v1024_v53  ;;  %v1051_v56 = vpop.f32.mrf.mxu3 }
  0xef   :  { %v1064_v60 = vadd.f32 %v1063_v51, %v1050_v57 }
  0xf0   :  { %v1052_v58 = vadd.f32 %v1051_v56, %v1038_v55 }
  0xf6   :  { %v1065_v59 = vpop.f32.mrf.mxu0 }
  0xf7   :  { %v1066_v61 = vadd.f32 %v1065_v59, %v1052_v58 }
  0xf9   :  { %v1635_v62 = vpack.c.bf16 %v1066_v61, %v1064_v60 }
  0xfb   :  { %1636 = vst [vmem:[%s2039_s3] sm:$0xff] %v1635_v62  }

// kernel: conv_re_ae_forward.9
= control target key start
LH: loop header
LB: loop body
LE: loop exit
PB: predicated region body
PF: predicated region fallthrough
CT: control target
= control target key end

     0   :  { %vm372_vm0 = vcmask 523264   ;;  %s1315_s1 = inlined_call_operand.vmem [shape: bf16[64,1664], index: 1, kind: input, shape index: {}]   ;;  %s1316_s0 = inlined_call_operand.vmem [shape: bf16[16,64], index: 0, kind: input, shape index: {}]   ;;  %s1317_s2 = inlined_call_operand.vmem [shape: f32[1,1664], index: 2, kind: input, shape index: {}]   ;;  %s1318_s3 = inlined_call_operand.vmem [shape: bf16[16,1664], index: 3, kind: output, shape index: {}]  }
   0x1   :  { %v778_v0 = vld [vmem:[%s1315_s1 + $0x138] sm:$0xf]  ;;  %v887_v1 = vld [vmem:[%s1315_s1 + $0x168] sm:$0xf0]  ;;  %v881_v2 = vld [vmem:[%s1315_s1 + $0x13c] sm:$0xf] }
   0x2   :  { %v779_v3 = vor.u32 %v887_v1, %v778_v0  ;;  %v780_v4 = vld [vmem:[%s1315_s1 + $0x16c] sm:$0xf0]  ;;  %v786_v5 = vld [vmem:[%s1315_s1 + $0x140] sm:$0xf]  ;;  %v888_v6 = vld [vmem:[%s1315_s1 + $0x170] sm:$0xf0] }
   0x3   :  { %v783_v7 = vor.u32 %v881_v2, %v780_v4  ;;  %v787_v8 = vor.u32 %v888_v6, %v786_v5  ;;  %v882_v9 = vld [vmem:[%s1315_s1 + $0x144] sm:$0xf]  ;;  %v788_v10 = vld [vmem:[%s1315_s1 + $0x174] sm:$0xf0]  ;;  %v726_v11 = vld [vmem:[%s1315_s1 + $0xd0] sm:$0xf] }
   0x4   :  { %380 = vmatpush.bf16.msra.mxu0 %v779_v3  ;;  %v791_v12 = vor.u32 %v882_v9, %v788_v10  ;;  %v874_v13 = vld [vmem:[%s1315_s1 + $0x100] sm:$0xf0]  ;;  %v868_v14 = vld [vmem:[%s1315_s1 + $0xd4] sm:$0xf]  ;;  %v728_v15 = vld [vmem:[%s1315_s1 + $0x104] sm:$0xf0] }
   0x5   :  { %394 = vmatpush.bf16.msra.mxu1 %v783_v7  ;;  %408 = vmatpush.bf16.msra.mxu2 %v787_v8  ;;  %v727_v16 = vor.u32 %v874_v13, %v726_v11  ;;  %v731_v17 = vor.u32 %v868_v14, %v728_v15  ;;  %v734_v18 = vld [vmem:[%s1315_s1 + $0xd8] sm:$0xf]  ;;  %v875_v19 = vld [vmem:[%s1315_s1 + $0x108] sm:$0xf0]  ;;  %v869_v20 = vld [vmem:[%s1315_s1 + $0xdc] sm:$0xf] }
   0x6   :  { %422 = vmatpush.bf16.msra.mxu3 %v791_v12  ;;  %v735_v21 = vor.u32 %v875_v19, %v734_v18  ;;  %v736_v22 = vld [vmem:[%s1315_s1 + $0x10c] sm:$0xf0]  ;;  %v674_v23 = vld [vmem:[%s1315_s1 + $0x68] sm:$0xf]  ;;  %v861_v24 = vld [vmem:[%s1315_s1 + $0x98] sm:$0xf0] }
   0x7   :  { %v739_v25 = vor.u32 %v869_v20, %v736_v22  ;;  %v855_v26 = vld [vmem:[%s1315_s1 + $0x6c] sm:$0xf]  ;;  %v676_v27 = vld [vmem:[%s1315_s1 + $0x9c] sm:$0xf0]  ;;  %v682_v28 = vld [vmem:[%s1315_s1 + $0x70] sm:$0xf]  ;;  %v675_v29 = vor.u32 %v861_v24, %v674_v23 }
   0x8   :  { %381 = vmatpush.bf16.msra.mxu0 %v727_v16  ;;  %v862_v30 = vld [vmem:[%s1315_s1 + $0xa0] sm:$0xf0]  ;;  %v856_v31 = vld [vmem:[%s1315_s1 + $0x74] sm:$0xf]  ;;  %v684_v32 = vld [vmem:[%s1315_s1 + $0xa4] sm:$0xf0]  ;;  %v679_v33 = vor.u32 %v855_v26, %v676_v27 }
   0x9   :  { %395 = vmatpush.bf16.msra.mxu1 %v731_v17  ;;  %409 = vmatpush.bf16.msra.mxu2 %v735_v21  ;;  %v683_v34 = vor.u32 %v862_v30, %v682_v28  ;;  %v622_v35 = vld [vmem:[%s1315_s1] sm:$0xf]  ;;  %v848_v36 = vld [vmem:[%s1315_s1 + $0x30] sm:$0xf0]  ;;  %v842_v37 = vld [vmem:[%s1315_s1 + $0x4] sm:$0xf]  ;;  %v687_v38 = vor.u32 %v856_v31, %v684_v32 }
   0xa   :  { %423 = vmatpush.bf16.msra.mxu3 %v739_v25  ;;  %v624_v39 = vld [vmem:[%s1315_s1 + $0x34] sm:$0xf0]  ;;  %v630_v40 = vld [vmem:[%s1315_s1 + $0x8] sm:$0xf]  ;;  %v849_v41 = vld [vmem:[%s1315_s1 + $0x38] sm:$0xf0]  ;;  %v623_v44 = vor.u32 %v848_v36, %v622_v35 }
   0xb   :  { %v843_v42 = vld [vmem:[%s1315_s1 + $0xc] sm:$0xf]  ;;  %v632_v43 = vld [vmem:[%s1315_s1 + $0x3c] sm:$0xf0]  ;;  %v794_v45 = vld [vmem:[%s1315_s1 + $0x148] sm:$0xf]  ;;  %v627_v48 = vor.u32 %v842_v37, %v624_v39  ;;  %v631_v49 = vor.u32 %v849_v41, %v630_v40 }
   0xc   :  { %382 = vmatpush.bf16.msra.mxu0 %v675_v29  ;;  %v889_v46 = vld [vmem:[%s1315_s1 + $0x178] sm:$0xf0]  ;;  %v883_v47 = vld [vmem:[%s1315_s1 + $0x14c] sm:$0xf]  ;;  %v1022_v50 = vld [vmem:[%s1316_s0] sm:$0xff]  ;;  %v635_v52 = vor.u32 %v843_v42, %v632_v43 }
   0xd   :  { %396 = vmatpush.bf16.msra.mxu1 %v679_v33  ;;  %410 = vmatpush.bf16.msra.mxu2 %v683_v34  ;;  %v796_v51 = vld [vmem:[%s1315_s1 + $0x17c] sm:$0xf0]  ;;  %v795_v53 = vor.u32 %v889_v46, %v794_v45  ;;  %v802_v54 = vld [vmem:[%s1315_s1 + $0x150] sm:$0xf]  ;;  %v890_v55 = vld [vmem:[%s1315_s1 + $0x180] sm:$0xf0] }
   0xe   :  { %424 = vmatpush.bf16.msra.mxu3 %v687_v38  ;;  %v884_v56 = vld [vmem:[%s1315_s1 + $0x154] sm:$0xf]  ;;  %v799_v57 = vor.u32 %v883_v47, %v796_v51  ;;  %v804_v58 = vld [vmem:[%s1315_s1 + $0x184] sm:$0xf0]  ;;  %v742_v59 = vld [vmem:[%s1315_s1 + $0xe0] sm:$0xf]  ;;  %v803_v63 = vor.u32 %v890_v55, %v802_v54 }
   0xf   :  { %v876_v60 = vld [vmem:[%s1315_s1 + $0x110] sm:$0xf0]  ;;  %v870_v61 = vld [vmem:[%s1315_s1 + $0xe4] sm:$0xf]  ;;  %v744_v62 = vld [vmem:[%s1315_s1 + $0x114] sm:$0xf0]  ;;  %v807_v0 = vor.u32 %v884_v56, %v804_v58 }
  0x10   :  { %383 = vmatpush.bf16.msra.mxu0 %v623_v44  ;;  %v743_v1 = vor.u32 %v876_v60, %v742_v59  ;;  %v750_v2 = vld [vmem:[%s1315_s1 + $0xe8] sm:$0xf]  ;;  %v877_v3 = vld [vmem:[%s1315_s1 + $0x118] sm:$0xf0]  ;;  %v871_v4 = vld [vmem:[%s1315_s1 + $0xec] sm:$0xf]  ;;  %v747_v5 = vor.u32 %v870_v61, %v744_v62 }
  0x11   :  { %397 = vmatpush.bf16.msra.mxu1 %v627_v48  ;;  %411 = vmatpush.bf16.msra.mxu2 %v631_v49  ;;  %v752_v6 = vld [vmem:[%s1315_s1 + $0x11c] sm:$0xf0]  ;;  %v690_v7 = vld [vmem:[%s1315_s1 + $0x78] sm:$0xf]  ;;  %v863_v8 = vld [vmem:[%s1315_s1 + $0xa8] sm:$0xf0]  ;;  %v751_v11 = vor.u32 %v877_v3, %v750_v2 }
  0x12   :  { %425 = vmatpush.bf16.msra.mxu3 %v635_v52  ;;  %v857_v9 = vld [vmem:[%s1315_s1 + $0x7c] sm:$0xf]  ;;  %v692_v10 = vld [vmem:[%s1315_s1 + $0xac] sm:$0xf0]  ;;  %v698_v12 = vld [vmem:[%s1315_s1 + $0x80] sm:$0xf]  ;;  %v755_v13 = vor.u32 %v871_v4, %v752_v6  ;;  %v691_v14 = vor.u32 %v863_v8, %v690_v7 }
  0x13   :  { %828 = vmatmul.msk.bf16.vlgmr.msra.gmra.mxu0 %vm372_vm0, %v1022_v50  ;;  %v864_v15 = vld [vmem:[%s1315_s1 + $0xb0] sm:$0xf0]  ;;  %v858_v16 = vld [vmem:[%s1315_s1 + $0x84] sm:$0xf]  ;;  %v700_v17 = vld [vmem:[%s1315_s1 + $0xb4] sm:$0xf0]  ;;  %v695_v18 = vor.u32 %v857_v9, %v692_v10 }
  0x14   :  { %436 = vmatpush.bf16.msrb.mxu0 %v795_v53  ;;  %829 = vmatmul.msk.bf16.vlgmr.msra.gmra.mxu1 %vm372_vm0, %v1022_v50  ;;  %v638_v19 = vld [vmem:[%s1315_s1 + $0x10] sm:$0xf]  ;;  %v850_v20 = vld [vmem:[%s1315_s1 + $0x40] sm:$0xf0]  ;;  %v844_v21 = vld [vmem:[%s1315_s1 + $0x14] sm:$0xf]  ;;  %v699_v25 = vor.u32 %v864_v15, %v698_v12  ;;  %v703_v28 = vor.u32 %v858_v16, %v700_v17 }
  0x15   :  { %450 = vmatpush.bf16.msrb.mxu1 %v799_v57  ;;  %830 = vmatmul.msk.bf16.vlgmr.msra.gmra.mxu2 %vm372_vm0, %v1022_v50  ;;  %v640_v22 = vld [vmem:[%s1315_s1 + $0x44] sm:$0xf0]  ;;  %v810_v23 = vld [vmem:[%s1315_s1 + $0x158] sm:$0xf]  ;;  %v891_v24 = vld [vmem:[%s1315_s1 + $0x188] sm:$0xf0]  ;;  %v639_v29 = vor.u32 %v850_v20, %v638_v19 }
  0x16   :  { %831 = vmatmul.msk.bf16.vlgmr.msra.gmra.mxu3 %vm372_vm0, %v1022_v50  ;;  %464 = vmatpush.bf16.msrb.mxu2 %v803_v63  ;;  %v885_v26 = vld [vmem:[%s1315_s1 + $0x15c] sm:$0xf]  ;;  %v812_v27 = vld [vmem:[%s1315_s1 + $0x18c] sm:$0xf0]  ;;  %v646_v30 = vld [vmem:[%s1315_s1 + $0x18] sm:$0xf]  ;;  %v643_v33 = vor.u32 %v844_v21, %v640_v22  ;;  %v811_v35 = vor.u32 %v891_v24, %v810_v23 }
  0x17   :  { %478 = vmatpush.bf16.msrb.mxu3 %v807_v0  ;;  %v851_v31 = vld [vmem:[%s1315_s1 + $0x48] sm:$0xf0]  ;;  %v845_v32 = vld [vmem:[%s1315_s1 + $0x1c] sm:$0xf]  ;;  %v648_v34 = vld [vmem:[%s1315_s1 + $0x4c] sm:$0xf0]  ;;  %v815_v38 = vor.u32 %v885_v26, %v812_v27 }
  0x18   :  { %437 = vmatpush.bf16.msrb.mxu0 %v743_v1  ;;  %v818_v36 = vld [vmem:[%s1315_s1 + $0x160] sm:$0xf]  ;;  %v892_v37 = vld [vmem:[%s1315_s1 + $0x190] sm:$0xf0]  ;;  %v886_v39 = vld [vmem:[%s1315_s1 + $0x164] sm:$0xf]  ;;  %v647_v41 = vor.u32 %v851_v31, %v646_v30  ;;  %v651_v42 = vor.u32 %v845_v32, %v648_v34 }
  0x19   :  { %451 = vmatpush.bf16.msrb.mxu1 %v747_v5  ;;  %v820_v40 = vld [vmem:[%s1315_s1 + $0x194] sm:$0xf0]  ;;  %v819_v43 = vor.u32 %v892_v37, %v818_v36  ;;  %v758_v44 = vld [vmem:[%s1315_s1 + $0xf0] sm:$0xf]  ;;  %v878_v45 = vld [vmem:[%s1315_s1 + $0x120] sm:$0xf0] }
  0x1a   :  { %465 = vmatpush.bf16.msrb.mxu2 %v751_v11  ;;  %v872_v46 = vld [vmem:[%s1315_s1 + $0xf4] sm:$0xf]  ;;  %v823_v47 = vor.u32 %v886_v39, %v820_v40  ;;  %v760_v48 = vld [vmem:[%s1315_s1 + $0x124] sm:$0xf0]  ;;  %v766_v49 = vld [vmem:[%s1315_s1 + $0xf8] sm:$0xf]  ;;  %v759_v54 = vor.u32 %v878_v45, %v758_v44 }
  0x1b   :  { %479 = vmatpush.bf16.msrb.mxu3 %v755_v13  ;;  %v879_v51 = vld [vmem:[%s1315_s1 + $0x128] sm:$0xf0]  ;;  %v873_v52 = vld [vmem:[%s1315_s1 + $0xfc] sm:$0xf]  ;;  %v768_v53 = vld [vmem:[%s1315_s1 + $0x12c] sm:$0xf0]  ;;  %v763_v55 = vor.u32 %v872_v46, %v760_v48 }
  0x1c   :  { %438 = vmatpush.bf16.msrb.mxu0 %v691_v14  ;;  %v767_v56 = vor.u32 %v879_v51, %v766_v49  ;;  %v706_v57 = vld [vmem:[%s1315_s1 + $0x88] sm:$0xf]  ;;  %v865_v58 = vld [vmem:[%s1315_s1 + $0xb8] sm:$0xf0]  ;;  %v859_v59 = vld [vmem:[%s1315_s1 + $0x8c] sm:$0xf]  ;;  %v771_v60 = vor.u32 %v873_v52, %v768_v53 }
  0x1d   :  { %452 = vmatpush.bf16.msrb.mxu1 %v695_v18  ;;  %v708_v61 = vld [vmem:[%s1315_s1 + $0xbc] sm:$0xf0]  ;;  %v714_v62 = vld [vmem:[%s1315_s1 + $0x90] sm:$0xf]  ;;  %v866_v63 = vld [vmem:[%s1315_s1 + $0xc0] sm:$0xf0]  ;;  %v707_v2 = vor.u32 %v865_v58, %v706_v57 }
  0x1e   :  { %466 = vmatpush.bf16.msrb.mxu2 %v699_v25  ;;  %v860_v0 = vld [vmem:[%s1315_s1 + $0x94] sm:$0xf]  ;;  %v716_v1 = vld [vmem:[%s1315_s1 + $0xc4] sm:$0xf0]  ;;  %v654_v3 = vld [vmem:[%s1315_s1 + $0x20] sm:$0xf]  ;;  %v711_v4 = vor.u32 %v859_v59, %v708_v61  ;;  %v715_v5 = vor.u32 %v866_v63, %v714_v62 }
  0x1f   :  { %480 = vmatpush.bf16.msrb.mxu3 %v703_v28  ;;  %v852_v6 = vld [vmem:[%s1315_s1 + $0x50] sm:$0xf0]  ;;  %v846_v7 = vld [vmem:[%s1315_s1 + $0x24] sm:$0xf]  ;;  %v656_v8 = vld [vmem:[%s1315_s1 + $0x54] sm:$0xf0]  ;;  %v719_v9 = vor.u32 %v860_v0, %v716_v1 }
  0x20   :  { %439 = vmatpush.bf16.msrb.mxu0 %v639_v29  ;;  %v662_v10 = vld [vmem:[%s1315_s1 + $0x28] sm:$0xf]  ;;  %v853_v11 = vld [vmem:[%s1315_s1 + $0x58] sm:$0xf0]  ;;  %v847_v12 = vld [vmem:[%s1315_s1 + $0x2c] sm:$0xf]  ;;  %v655_v16 = vor.u32 %v852_v6, %v654_v3  ;;  %v659_v17 = vor.u32 %v846_v7, %v656_v8 }
  0x21   :  { %453 = vmatpush.bf16.msrb.mxu1 %v643_v33  ;;  %v664_v13 = vld [vmem:[%s1315_s1 + $0x5c] sm:$0xf0]  ;;  %v826_v14 = vld [vmem:[%s1315_s1 + $0x168] sm:$0xf]  ;;  %v893_v15 = vld [vmem:[%s1315_s1 + $0x198] sm:$0xf0]  ;;  %v663_v18 = vor.u32 %v853_v11, %v662_v10 }
  0x22   :  { %467 = vmatpush.bf16.msrb.mxu2 %v647_v41  ;;  %v667_v19 = vor.u32 %v847_v12, %v664_v13  ;;  %v827_v20 = vor.u32 %v893_v15, %v826_v14  ;;  %v774_v21 = vld [vmem:[%s1315_s1 + $0x100] sm:$0xf]  ;;  %v880_v22 = vld [vmem:[%s1315_s1 + $0x130] sm:$0xf0]  ;;  %v722_v24 = vld [vmem:[%s1315_s1 + $0x98] sm:$0xf] }
  0x23   :  { %481 = vmatpush.bf16.msrb.mxu3 %v651_v42  ;;  %832 = vmatmul.msk.bf16.vlgmr.msrb.gmra.mxu0 %vm372_vm0, %v1022_v50  ;;  %v775_v23 = vor.u32 %v880_v22, %v774_v21  ;;  %v867_v25 = vld [vmem:[%s1315_s1 + $0xc8] sm:$0xf0]  ;;  %v670_v27 = vld [vmem:[%s1315_s1 + $0x30] sm:$0xf]  ;;  %v854_v28 = vld [vmem:[%s1315_s1 + $0x60] sm:$0xf0] }
  0x24   :  { %492 = vmatpush.bf16.msra.mxu0 %v811_v35  ;;  %833 = vmatmul.msk.bf16.vlgmr.msrb.gmra.mxu1 %vm372_vm0, %v1022_v50  ;;  %v723_v26 = vor.u32 %v867_v25, %v722_v24  ;;  %v671_v29 = vor.u32 %v854_v28, %v670_v27  ;;  %v1260_v30 = vld [vmem:[%s1317_s2] sm:$0xff] }
  0x25   :  { %506 = vmatpush.bf16.msra.mxu1 %v815_v38  ;;  %834 = vmatmul.msk.bf16.vlgmr.msrb.gmra.mxu2 %vm372_vm0, %v1022_v50  ;;  %v77_v31 = vperm.slane %v1260_v30, 0  ;;  %v78_v32 = vperm.slane %v1260_v30, 1  ;;  %v79_v39 = vperm.slane %v1260_v30, 2  ;;  %v80_v40 = vperm.slane %v1260_v30, 3 }
  0x26   :  { %520 = vmatpush.bf16.msra.mxu2 %v819_v43  ;;  %835 = vmatmul.msk.bf16.vlgmr.msrb.gmra.mxu3 %vm372_vm0, %v1022_v50  ;;  %v82_v57 = vperm.slane %v1260_v30, 5  ;;  %v83_v6 = vperm.slane %v1260_v30, 6  ;;  %v84_v8 = vperm.slane %v1260_v30, 7 }
  0x27   :  { %534 = vmatpush.bf16.msra.mxu3 %v823_v47 }
  0x28   :  { %493 = vmatpush.bf16.msra.mxu0 %v759_v54 }
  0x29   :  { %507 = vmatpush.bf16.msra.mxu1 %v763_v55  ;;  %v81_v55 = vperm.slane %v1260_v30, 4 }
  0x2a   :  { %521 = vmatpush.bf16.msra.mxu2 %v767_v56 }
  0x2b   :  { %535 = vmatpush.bf16.msra.mxu3 %v771_v60 }
  0x2c   :  { %494 = vmatpush.bf16.msra.mxu0 %v707_v2 }
  0x2d   :  { %508 = vmatpush.bf16.msra.mxu1 %v711_v4 }
  0x2e   :  { %522 = vmatpush.bf16.msra.mxu2 %v715_v5 }
  0x2f   :  { %536 = vmatpush.bf16.msra.mxu3 %v719_v9 }
  0x30   :  { %495 = vmatpush.bf16.msra.mxu0 %v655_v16 }
  0x31   :  { %509 = vmatpush.bf16.msra.mxu1 %v659_v17 }
  0x32   :  { %523 = vmatpush.bf16.msra.mxu2 %v663_v18 }
  0x33   :  { %537 = vmatpush.bf16.msra.mxu3 %v667_v19  ;;  %836 = vmatmul.msk.bf16.vlgmr.msra.gmra.mxu0 %vm372_vm0, %v1022_v50  ;;  %v74_v19 = vld [vmem:[%s1317_s2 + $0x8] sm:$0x1f] }
  0x34   :  { %548 = vmatpush.bf16.msrb.mxu0 %v827_v20  ;;  %837 = vmatmul.msk.bf16.vlgmr.msra.gmra.mxu1 %vm372_vm0, %v1022_v50  ;;  %v85_v24 = vperm.slane %v74_v19, 0 }
  0x35   :  { %838 = vmatmul.msk.bf16.vlgmr.msra.gmra.mxu2 %vm372_vm0, %v1022_v50 }
  0x36   :  { %839 = vmatmul.msk.bf16.vlgmr.msra.gmra.mxu3 %vm372_vm0, %v1022_v50 }
  0x38   :  { %549 = vmatpush.bf16.msrb.mxu0 %v775_v23 }
  0x3c   :  { %550 = vmatpush.bf16.msrb.mxu0 %v723_v26  ;;  %v86_v26 = vperm.slane %v74_v19, 1 }
  0x40   :  { %551 = vmatpush.bf16.msrb.mxu0 %v671_v29 }
  0x43   :  { %840 = vmatmul.msk.bf16.vlgmr.msrb.gmra.mxu0 %vm372_vm0, %v1022_v50 }
  0x90   :  { %v385_v33 = vpop.f32.mrf.mxu0 }
  0x91   :  { %v386_v34 = vadd.f32 %v385_v33, %v77_v31  ;;  %v399_v35 = vpop.f32.mrf.mxu1 }
  0x92   :  { %v400_v36 = vadd.f32 %v399_v35, %v78_v32 }
  0x93   :  { %v558_v37 = vmax.f32 %v386_v34, 0.0 }
  0x94   :  { %v559_v38 = vmax.f32 %v400_v36, 0.0 }
  0x96   :  { %v584_v50 = vpack.c.bf16 %v559_v38, %v558_v37 }
  0x98   :  { %v413_v41 = vpop.f32.mrf.mxu2  ;;  %598 = vst [vmem:[%s1318_s3] sm:$0xff] %v584_v50  ;;  %v387_v42 = vpop.f32.mrf.mxu0  ;;  %v88_v50 = vperm.slane %v74_v19, 3 }
  0x99   :  { %v414_v43 = vadd.f32 %v413_v41, %v79_v39  ;;  %v427_v44 = vpop.f32.mrf.mxu3  ;;  %v388_v45 = vadd.f32 %v387_v42, %v77_v31  ;;  %v401_v46 = vpop.f32.mrf.mxu1 }
  0x9a   :  { %v428_v47 = vadd.f32 %v427_v44, %v80_v40  ;;  %v402_v48 = vadd.f32 %v401_v46, %v78_v32 }
  0x9b   :  { %v560_v49 = vmax.f32 %v414_v43, 0.0  ;;  %v571_v51 = vmax.f32 %v388_v45, 0.0 }
  0x9c   :  { %v561_v52 = vmax.f32 %v428_v47, 0.0  ;;  %v572_v53 = vmax.f32 %v402_v48, 0.0 }
  0x9e   :  { %v585_v54 = vpack.c.bf16 %v561_v52, %v560_v49  ;;  %v591_v56 = vpack.c.bf16 %v572_v53, %v571_v51 }
  0xa0   :  { %599 = vst [vmem:[%s1318_s3 + $0x8] sm:$0xff] %v585_v54  ;;  %v415_v58 = vpop.f32.mrf.mxu2  ;;  %v441_v61 = vpop.f32.mrf.mxu0 }
  0xa1   :  { %605 = vst [vmem:[%s1318_s3 + $0x34] sm:$0xff] %v591_v56  ;;  %v416_v59 = vadd.f32 %v415_v58, %v79_v39  ;;  %v429_v60 = vpop.f32.mrf.mxu3  ;;  %v442_v63 = vadd.f32 %v441_v61, %v81_v55  ;;  %v455_v0 = vpop.f32.mrf.mxu1  ;;  %v87_v39 = vperm.slane %v74_v19, 2  ;;  %v89_v56 = vperm.slane %v74_v19, 4 }
  0xa2   :  { %v430_v62 = vadd.f32 %v429_v60, %v80_v40  ;;  %v456_v2 = vadd.f32 %v455_v0, %v82_v57 }
  0xa3   :  { %v573_v1 = vmax.f32 %v416_v59, 0.0  ;;  %v562_v4 = vmax.f32 %v442_v63, 0.0 }
  0xa4   :  { %v574_v3 = vmax.f32 %v430_v62, 0.0  ;;  %v563_v5 = vmax.f32 %v456_v2, 0.0 }
  0xa6   :  { %v592_v7 = vpack.c.bf16 %v574_v3, %v573_v1  ;;  %v586_v9 = vpack.c.bf16 %v563_v5, %v562_v4 }
  0xa8   :  { %606 = vst [vmem:[%s1318_s3 + $0x3c] sm:$0xff] %v592_v7  ;;  %v469_v10 = vpop.f32.mrf.mxu2  ;;  %v443_v11 = vpop.f32.mrf.mxu0 }
  0xa9   :  { %600 = vst [vmem:[%s1318_s3 + $0x10] sm:$0xff] %v586_v9  ;;  %v470_v12 = vadd.f32 %v469_v10, %v83_v6  ;;  %v483_v13 = vpop.f32.mrf.mxu3  ;;  %v444_v14 = vadd.f32 %v443_v11, %v81_v55  ;;  %v457_v15 = vpop.f32.mrf.mxu1 }
  0xaa   :  { %v484_v16 = vadd.f32 %v483_v13, %v84_v8  ;;  %v458_v17 = vadd.f32 %v457_v15, %v82_v57 }
  0xab   :  { %v564_v18 = vmax.f32 %v470_v12, 0.0  ;;  %v575_v20 = vmax.f32 %v444_v14, 0.0 }
  0xac   :  { %v565_v21 = vmax.f32 %v484_v16, 0.0  ;;  %v576_v22 = vmax.f32 %v458_v17, 0.0 }
  0xae   :  { %v587_v23 = vpack.c.bf16 %v565_v21, %v564_v18  ;;  %v593_v25 = vpack.c.bf16 %v576_v22, %v575_v20 }
  0xb0   :  { %601 = vst [vmem:[%s1318_s3 + $0x18] sm:$0xff] %v587_v23  ;;  %v471_v27 = vpop.f32.mrf.mxu2  ;;  %v497_v30 = vpop.f32.mrf.mxu0 }
  0xb1   :  { %607 = vst [vmem:[%s1318_s3 + $0x44] sm:$0xff] %v593_v25  ;;  %v472_v28 = vadd.f32 %v471_v27, %v83_v6  ;;  %v485_v29 = vpop.f32.mrf.mxu3  ;;  %v498_v32 = vadd.f32 %v497_v30, %v85_v24  ;;  %v511_v33 = vpop.f32.mrf.mxu1 }
  0xb2   :  { %v486_v31 = vadd.f32 %v485_v29, %v84_v8  ;;  %v512_v35 = vadd.f32 %v511_v33, %v86_v26 }
  0xb3   :  { %v577_v34 = vmax.f32 %v472_v28, 0.0  ;;  %v566_v37 = vmax.f32 %v498_v32, 0.0 }
  0xb4   :  { %v578_v36 = vmax.f32 %v486_v31, 0.0  ;;  %v567_v38 = vmax.f32 %v512_v35, 0.0 }
  0xb6   :  { %v594_v40 = vpack.c.bf16 %v578_v36, %v577_v34  ;;  %v588_v41 = vpack.c.bf16 %v567_v38, %v566_v37 }
  0xb8   :  { %608 = vst [vmem:[%s1318_s3 + $0x4c] sm:$0xff] %v594_v40  ;;  %v525_v42 = vpop.f32.mrf.mxu2  ;;  %v499_v43 = vpop.f32.mrf.mxu0 }
  0xb9   :  { %602 = vst [vmem:[%s1318_s3 + $0x20] sm:$0xff] %v588_v41  ;;  %v526_v44 = vadd.f32 %v525_v42, %v87_v39  ;;  %v539_v45 = vpop.f32.mrf.mxu3  ;;  %v500_v46 = vadd.f32 %v499_v43, %v85_v24  ;;  %v513_v47 = vpop.f32.mrf.mxu1 }
  0xba   :  { %v540_v48 = vadd.f32 %v539_v45, %v88_v50  ;;  %v514_v49 = vadd.f32 %v513_v47, %v86_v26 }
  0xbb   :  { %v568_v51 = vmax.f32 %v526_v44, 0.0  ;;  %v579_v52 = vmax.f32 %v500_v46, 0.0 }
  0xbc   :  { %v569_v53 = vmax.f32 %v540_v48, 0.0  ;;  %v580_v54 = vmax.f32 %v514_v49, 0.0 }
  0xbe   :  { %v589_v55 = vpack.c.bf16 %v569_v53, %v568_v51  ;;  %v595_v57 = vpack.c.bf16 %v580_v54, %v579_v52 }
  0xc0   :  { %603 = vst [vmem:[%s1318_s3 + $0x28] sm:$0xff] %v589_v55  ;;  %v527_v58 = vpop.f32.mrf.mxu2  ;;  %v553_v61 = vpop.f32.mrf.mxu0 }
  0xc1   :  { %609 = vst [vmem:[%s1318_s3 + $0x54] sm:$0xff] %v595_v57  ;;  %v528_v59 = vadd.f32 %v527_v58, %v87_v39  ;;  %v541_v60 = vpop.f32.mrf.mxu3  ;;  %v554_v63 = vadd.f32 %v553_v61, %v89_v56 }
  0xc2   :  { %v542_v62 = vadd.f32 %v541_v60, %v88_v50 }
  0xc3   :  { %v581_v0 = vmax.f32 %v528_v59, 0.0  ;;  %v570_v2 = vmax.f32 %v554_v63, 0.0 }
  0xc4   :  { %v582_v1 = vmax.f32 %v542_v62, 0.0 }
  0xc5   :  { %v590_v4 = vpack.c.bf16 %v570_v2, %v570_v2 }
  0xc6   :  { %v596_v3 = vpack.c.bf16 %v582_v1, %v581_v0 }
  0xc7   :  { %604 = vst [vmem:[%s1318_s3 + $0x30] sm:$0xf] %v590_v4 }
  0xc8   :  { %610 = vst [vmem:[%s1318_s3 + $0x5c] sm:$0xff] %v596_v3  ;;  %v555_v5 = vpop.f32.mrf.mxu0 }
  0xc9   :  { %v556_v6 = vadd.f32 %v555_v5, %v89_v56 }
  0xcb   :  { %v583_v7 = vmax.f32 %v556_v6, 0.0 }
  0xcd   :  { %v597_v8 = vpack.c.bf16 %v583_v7, %v583_v7 }
  0xcf   :  { %611 = vst [vmem:[%s1318_s3 + $0x64] sm:$0xf] %v597_v8 }

// kernel: conv_re_ae_forward.10
= control target key start
LH: loop header
LB: loop body
LE: loop exit
PB: predicated region body
PF: predicated region fallthrough
CT: control target
= control target key end

     0   :  { %s1409_s12 = smov 0   ;;  %s1656_s0 = inlined_call_operand.vmem [shape: bf16[416,288], index: 0, kind: input, shape index: {}]   ;;  %s1657_s1 = inlined_call_operand.vmem [shape: bf16[288,128], index: 1, kind: input, shape index: {}]   ;;  %s1658_s2 = inlined_call_operand.vmem [shape: f32[1,128], index: 2, kind: input, shape index: {}]   ;;  %s1659_s3 = inlined_call_operand.vmem [shape: bf16[416,128], index: 3, kind: output, shape index: {}]  }
   0x1 LB: > { %s969_s13 = sadd.s32 4294967295, %s1387_s12   ;;  %p973_p0 = scmp.ge.s32.totalorder %s1387_s12, 1  ;;  %s1387_s12 = sphi %s1409_s12, %s13_s12  }
   0x2   : > { %p139_p1 = scmp.lt.s32.totalorder %s1387_s12, 3 }
   0x4   : > { %p140_p2 = pnand %p973_p0, %p139_p1 }
   0x5   : > { %s164_s20 = smul.u32 (!%p140_p2), 26, %s969_s13 }
   0x6   : > { %143 = sbr.rel (%p140_p2) target bundleno = 332 (0x14c), region = 32 }
   0x7   : > { %p165_p3 = scmp.lt.s32.totalorder (!%p140_p2), %s164_s20, 51 }
   0xb   : > { %v1265_v0 = vld [vmem:[%s1657_s1 + $0x38] sm:$0xff]  ;;  %v1428_v2 = vld [vmem:[%s1657_s1 + $0x88] sm:$0xff]  ;;  %v1264_v3 = vld [vmem:[%s1657_s1 + $0x30] sm:$0xff]  ;;  %s1661_s20 = smov (!%p165_p3, %s164_s20), 51  ;;  %vm573_vm0 = vcmask 261120  }
   0xc   : > { %v1423_v1 = vld [vmem:[%s1657_s1 + $0x78] sm:$0xff]  ;;  %613 = vmatpush.bf16.msra.mxu0 %v1265_v0  ;;  %1353 = vmatpush.bf16.msra.mxu3 %v1265_v0  ;;  %v1272_v4 = vld [vmem:[%s1657_s1 + $0x70] sm:$0xff]  ;;  %v1441_v5 = vld [vmem:[%s1657_s1 + $0x80] sm:$0xff]  ;;  %s1371_s29 = smul.u32 12, %s1661_s20  ;;  %s975_s5 = sshll.u32 %s1661_s20, 2 }
   0xd   : > { %687 = vmatpush.bf16.msra.mxu1 %v1423_v1  ;;  %767 = vmatpush.bf16.msra.mxu2 %v1428_v2  ;;  %v1263_v6 = vld [vmem:[%s1657_s1 + $0x28] sm:$0xff]  ;;  %v1262_v11 = vld [vmem:[%s1657_s1 + $0x20] sm:$0xff]  ;;  %v1261_v13 = vld [vmem:[%s1657_s1 + $0x18] sm:$0xff]  ;;  %s1595_s9 = scalar_lea.vmem %s1659_s3, %s975_s5 }
   0xe   : > { %v1271_v7 = vld [vmem:[%s1657_s1 + $0x68] sm:$0xff]  ;;  %s1456_s7 = scalar_lea.vmem %s1656_s0, %s1371_s29  ;;  %v1270_v12 = vld [vmem:[%s1657_s1 + $0x60] sm:$0xff]  ;;  %v1269_v14 = vld [vmem:[%s1657_s1 + $0x58] sm:$0xff] }
   0xf   : > { %v986_v8 = vld [vmem:[%s1456_s7 + $0x8] sm:$0xf]  ;;  %v1221_v9 = vld [vmem:[%s1456_s7 + $0x10] sm:$0xf0]  ;;  %v998_v17 = vld [vmem:[%s1456_s7 + $0x20] sm:$0xf] }
  0x10   : > { %614 = vmatpush.bf16.msra.mxu0 %v1264_v3  ;;  %1354 = vmatpush.bf16.msra.mxu3 %v1264_v3  ;;  %v987_v10 = vor.u32 %v1221_v9, %v986_v8  ;;  %v1260_v15 = vld [vmem:[%s1657_s1 + $0x10] sm:$0xff]  ;;  %v1224_v18 = vld [vmem:[%s1456_s7 + $0x28] sm:$0xf0]  ;;  %v1258_v22 = vld [vmem:[%s1657_s1] sm:$0xff] }
  0x11   : > { %688 = vmatpush.bf16.msra.mxu1 %v1272_v4  ;;  %768 = vmatpush.bf16.msra.mxu2 %v1441_v5  ;;  %v1268_v16 = vld [vmem:[%s1657_s1 + $0x50] sm:$0xff]  ;;  %v1259_v19 = vld [vmem:[%s1657_s1 + $0x8] sm:$0xff]  ;;  %v999_v21 = vor.u32 %v1224_v18, %v998_v17  ;;  %v978_v23 = vld [vmem:[%s1456_s7] sm:$0xf] }
  0x12   : > { %v1267_v20 = vld [vmem:[%s1657_s1 + $0x48] sm:$0xff]  ;;  %v1098_v25 = vld [vmem:[%s1456_s7 + $0xf0] sm:$0xf]  ;;  %v1250_v26 = vld [vmem:[%s1456_s7 + $0xf8] sm:$0xf0] }
  0x13   : > { %v1220_v24 = vld [vmem:[%s1456_s7 + $0x8] sm:$0xf0]  ;;  %v1266_v27 = vld [vmem:[%s1657_s1 + $0x40] sm:$0xff]  ;;  %v980_v29 = vld [vmem:[%s1456_s7 + $0xc] sm:$0xf0]  ;;  %v1099_v31 = vor.u32 %v1250_v26, %v1098_v25 }
  0x14   : > { %615 = vmatpush.bf16.msra.mxu0 %v1263_v6  ;;  %1355 = vmatpush.bf16.msra.mxu3 %v1263_v6  ;;  %v1219_v28 = vld [vmem:[%s1456_s7 + $0x4] sm:$0xf]  ;;  %v979_v30 = vor.u32 %v1220_v24, %v978_v23  ;;  %v1010_v33 = vld [vmem:[%s1456_s7 + $0x38] sm:$0xf]  ;;  %v1110_v38 = vld [vmem:[%s1456_s7 + $0x108] sm:$0xf] }
  0x15   : > { %689 = vmatpush.bf16.msra.mxu1 %v1271_v7  ;;  %1204 = vmatmul.msk.bf16.vlgmr.msra.gmra.mxu2 %vm573_vm0, %v987_v10  ;;  %v983_v32 = vor.u32 %v1219_v28, %v980_v29  ;;  %v1227_v34 = vld [vmem:[%s1456_s7 + $0x40] sm:$0xf0]  ;;  %v990_v36 = vld [vmem:[%s1456_s7 + $0x18] sm:$0xf]  ;;  %v1253_v39 = vld [vmem:[%s1456_s7 + $0x110] sm:$0xf0] }
  0x16   : > { %v1011_v35 = vor.u32 %v1227_v34, %v1010_v33  ;;  %v1223_v37 = vld [vmem:[%s1456_s7 + $0x20] sm:$0xf0]  ;;  %v1222_v40 = vld [vmem:[%s1456_s7 + $0x1c] sm:$0xf]  ;;  %v992_v41 = vld [vmem:[%s1456_s7 + $0x24] sm:$0xf0]  ;;  %v1111_v43 = vor.u32 %v1253_v39, %v1110_v38 }
  0x17   : > { %v991_v42 = vor.u32 %v1223_v37, %v990_v36  ;;  %v995_v44 = vor.u32 %v1222_v40, %v992_v41  ;;  %v1022_v45 = vld [vmem:[%s1456_s7 + $0x50] sm:$0xf]  ;;  %v1230_v46 = vld [vmem:[%s1456_s7 + $0x58] sm:$0xf0]  ;;  %v1122_v50 = vld [vmem:[%s1456_s7 + $0x120] sm:$0xf] }
  0x18   : > { %616 = vmatpush.bf16.msra.mxu0 %v1262_v11  ;;  %1356 = vmatpush.bf16.msra.mxu3 %v1262_v11  ;;  %v1023_v47 = vor.u32 %v1230_v46, %v1022_v45  ;;  %v1002_v48 = vld [vmem:[%s1456_s7 + $0x30] sm:$0xf]  ;;  %v1226_v49 = vld [vmem:[%s1456_s7 + $0x38] sm:$0xf0]  ;;  %v1256_v51 = vld [vmem:[%s1456_s7 + $0x128] sm:$0xf0] }
  0x19   : > { %690 = vmatpush.bf16.msra.mxu1 %v1270_v12  ;;  %v1225_v52 = vld [vmem:[%s1456_s7 + $0x34] sm:$0xf]  ;;  %v1004_v53 = vld [vmem:[%s1456_s7 + $0x3c] sm:$0xf0]  ;;  %v1003_v54 = vor.u32 %v1226_v49, %v1002_v48  ;;  %v1123_v55 = vor.u32 %v1256_v51, %v1122_v50  ;;  %v1034_v57 = vld [vmem:[%s1456_s7 + $0x68] sm:$0xf] }
  0x1a   : > { %v1007_v56 = vor.u32 %v1225_v52, %v1004_v53  ;;  %v1233_v58 = vld [vmem:[%s1456_s7 + $0x70] sm:$0xf0]  ;;  %v1014_v60 = vld [vmem:[%s1456_s7 + $0x48] sm:$0xf]  ;;  %v1100_v63 = vld [vmem:[%s1456_s7 + $0xfc] sm:$0xf0] }
  0x1b   : > { %v1035_v59 = vor.u32 %v1233_v58, %v1034_v57  ;;  %v1229_v61 = vld [vmem:[%s1456_s7 + $0x50] sm:$0xf0]  ;;  %v1228_v0 = vld [vmem:[%s1456_s7 + $0x4c] sm:$0xf]  ;;  %v1026_v8 = vld [vmem:[%s1456_s7 + $0x60] sm:$0xf] }
  0x1c   : > { %617 = vmatpush.bf16.msra.mxu0 %v1261_v13  ;;  %1357 = vmatpush.bf16.msra.mxu3 %v1261_v13  ;;  %v1249_v62 = vld [vmem:[%s1456_s7 + $0xf4] sm:$0xf]  ;;  %v1236_v6 = vld [vmem:[%s1456_s7 + $0x88] sm:$0xf0]  ;;  %v1112_v11 = vld [vmem:[%s1456_s7 + $0x114] sm:$0xf0] }
  0x1d   : > { %691 = vmatpush.bf16.msra.mxu1 %v1269_v14  ;;  %v1103_v3 = vor.u32 %v1249_v62, %v1100_v63  ;;  %v1232_v9 = vld [vmem:[%s1456_s7 + $0x68] sm:$0xf0]  ;;  %v1028_v13 = vld [vmem:[%s1456_s7 + $0x6c] sm:$0xf0]  ;;  %v1058_v17 = vld [vmem:[%s1456_s7 + $0x98] sm:$0xf] }
  0x1e   : > { %v1252_v10 = vld [vmem:[%s1456_s7 + $0x10c] sm:$0xf]  ;;  %v1239_v18 = vld [vmem:[%s1456_s7 + $0xa0] sm:$0xf0]  ;;  %v1124_v23 = vld [vmem:[%s1456_s7 + $0x12c] sm:$0xf0] }
  0x1f   : > { %v1234_v24 = vld [vmem:[%s1456_s7 + $0x7c] sm:$0xf]  ;;  %v1040_v25 = vld [vmem:[%s1456_s7 + $0x84] sm:$0xf0]  ;;  %v1070_v29 = vld [vmem:[%s1456_s7 + $0xb0] sm:$0xf] }
  0x20   : > { %618 = vmatpush.bf16.msra.mxu0 %v1260_v15  ;;  %1358 = vmatpush.bf16.msra.mxu3 %v1260_v15  ;;  %v1115_v15 = vor.u32 %v1252_v10, %v1112_v11  ;;  %v1043_v28 = vor.u32 %v1234_v24, %v1040_v25  ;;  %v1238_v33 = vld [vmem:[%s1456_s7 + $0x98] sm:$0xf0]  ;;  %v1118_v34 = vld [vmem:[%s1456_s7 + $0x110] sm:$0xf]  ;;  %v1237_v36 = vld [vmem:[%s1456_s7 + $0x94] sm:$0xf] }
  0x21   : > { %692 = vmatpush.bf16.msra.mxu1 %v1268_v16  ;;  %v1052_v37 = vld [vmem:[%s1456_s7 + $0x9c] sm:$0xf0]  ;;  %v1082_v41 = vld [vmem:[%s1456_s7 + $0xc8] sm:$0xf]  ;;  %v1241_v45 = vld [vmem:[%s1456_s7 + $0xb0] sm:$0xf0] }
  0x22   : > { %v1055_v40 = vor.u32 %v1237_v36, %v1052_v37  ;;  %v1130_v46 = vld [vmem:[%s1456_s7 + $0x128] sm:$0xf]  ;;  %v1240_v48 = vld [vmem:[%s1456_s7 + $0xac] sm:$0xf]  ;;  %v1064_v49 = vld [vmem:[%s1456_s7 + $0xb4] sm:$0xf0] }
  0x23   : > { %v1067_v52 = vor.u32 %v1240_v48, %v1064_v49  ;;  %v1074_v58 = vld [vmem:[%s1456_s7 + $0xc0] sm:$0xf] }
  0x24   : > { %619 = vmatpush.bf16.msra.mxu0 %v1259_v19  ;;  %1359 = vmatpush.bf16.msra.mxu3 %v1259_v19  ;;  %v1059_v19 = vor.u32 %v1239_v18, %v1058_v17  ;;  %v1578_v62 = vld [vmem:[%s1658_s2] ss:$0 sm:$0xff]  ;;  %v1247_v17 = vld [vmem:[%s1456_s7 + $0xe0] sm:$0xf0] }
  0x25   : > { %693 = vmatpush.bf16.msra.mxu1 %v1267_v20  ;;  %1205 = vmatmul.msk.bf16.gmra.mxu2 %vm573_vm0, %v999_v21  ;;  %v1235_v21 = vld [vmem:[%s1456_s7 + $0x80] sm:$0xf0] }
  0x28   : > { %620 = vmatpush.bf16.msra.mxu0 %v1258_v22  ;;  %1360 = vmatpush.bf16.msra.mxu3 %v1258_v22  ;;  %v1255_v22 = vld [vmem:[%s1456_s7 + $0x124] sm:$0xf] }
  0x29   : > { %694 = vmatpush.bf16.msra.mxu1 %v1266_v27 }
  0x2b   : > { %621 = vmatmul.bf16.vlgmr.msra.gmra.mxu0 %v979_v30  ;;  %671 = vmatmul.bf16.vlgmr.msra.gmra.mxu3 %v1099_v31  ;;  %v1242_v30 = vld [vmem:[%s1456_s7 + $0xb8] sm:$0xf0] }
  0x2c   : > { %1361 = vmatpush.bf16.msrb.mxu3 %v1423_v1  ;;  %695 = vmatmul.bf16.vlgmr.msra.gmra.mxu1 %v983_v32  ;;  %v1016_v1 = vld [vmem:[%s1456_s7 + $0x54] sm:$0xf0]  ;;  %v1071_v31 = vor.u32 %v1242_v30, %v1070_v29  ;;  %v1050_v32 = vld [vmem:[%s1456_s7 + $0x90] sm:$0xf] }
  0x2d   : > { %v1051_v38 = vor.u32 %v1238_v33, %v1050_v32 }
  0x30   : > { %1362 = vmatpush.bf16.msrb.mxu3 %v1272_v4  ;;  %v1019_v4 = vor.u32 %v1228_v0, %v1016_v1 }
  0x34   : > { %1363 = vmatpush.bf16.msrb.mxu3 %v1271_v7 }
  0x35   : > { %1206 = vmatmul.msk.bf16.gmra.mxu2 %vm573_vm0, %v1011_v35  ;;  %v1254_v35 = vld [vmem:[%s1456_s7 + $0x118] sm:$0xf0] }
  0x36   : > { %v1119_v39 = vor.u32 %v1254_v35, %v1118_v34 }
  0x38   : > { %1364 = vmatpush.bf16.msrb.mxu3 %v1270_v12  ;;  %v1231_v12 = vld [vmem:[%s1456_s7 + $0x64] sm:$0xf] }
  0x3b   : > { %626 = vmatmul.bf16.gmra.mxu0 %v991_v42  ;;  %676 = vmatmul.bf16.gmra.mxu3 %v1111_v43  ;;  %v1245_v42 = vld [vmem:[%s1456_s7 + $0xd0] sm:$0xf0] }
  0x3c   : > { %1365 = vmatpush.bf16.msrb.mxu3 %v1269_v14  ;;  %700 = vmatmul.bf16.gmra.mxu1 %v995_v44  ;;  %v1027_v14 = vor.u32 %v1232_v9, %v1026_v8  ;;  %v1083_v43 = vor.u32 %v1245_v42, %v1082_v41  ;;  %v1062_v44 = vld [vmem:[%s1456_s7 + $0xa8] sm:$0xf]  ;;  %v1251_v8 = vld [vmem:[%s1456_s7 + $0x100] sm:$0xf0] }
  0x3d   : > { %v1063_v50 = vor.u32 %v1241_v45, %v1062_v44 }
  0x40   : > { %1366 = vmatpush.bf16.msrb.mxu3 %v1268_v16  ;;  %v1031_v16 = vor.u32 %v1231_v12, %v1028_v13 }
  0x44   : > { %1367 = vmatpush.bf16.msrb.mxu3 %v1267_v20  ;;  %v1038_v20 = vld [vmem:[%s1456_s7 + $0x78] sm:$0xf] }
  0x45   : > { %1207 = vmatmul.msk.bf16.gmra.mxu2 %vm573_vm0, %v1023_v47  ;;  %v1039_v26 = vor.u32 %v1235_v21, %v1038_v20  ;;  %v1257_v47 = vld [vmem:[%s1456_s7 + $0x130] sm:$0xf0]  ;;  %v1088_v20 = vld [vmem:[%s1456_s7 + $0xe4] sm:$0xf0] }
  0x46   : > { %v1131_v51 = vor.u32 %v1257_v47, %v1130_v46 }
  0x48   : > { %1368 = vmatpush.bf16.msrb.mxu3 %v1266_v27  ;;  %v1127_v27 = vor.u32 %v1255_v22, %v1124_v23 }
  0x4b   : > { %631 = vmatmul.bf16.gmra.mxu0 %v1003_v54  ;;  %681 = vmatmul.bf16.gmra.mxu3 %v1123_v55  ;;  %v1094_v54 = vld [vmem:[%s1456_s7 + $0xe0] sm:$0xf]  ;;  %v1248_v55 = vld [vmem:[%s1456_s7 + $0xe8] sm:$0xf0] }
  0x4c   : > { %1369 = vmatpush.bf16.msra.mxu3 %v1428_v2  ;;  %705 = vmatmul.bf16.gmra.mxu1 %v1007_v56  ;;  %v1015_v2 = vor.u32 %v1229_v61, %v1014_v60  ;;  %v1095_v57 = vor.u32 %v1248_v55, %v1094_v54  ;;  %v1243_v60 = vld [vmem:[%s1456_s7 + $0xc4] sm:$0xf]  ;;  %v1076_v61 = vld [vmem:[%s1456_s7 + $0xcc] sm:$0xf0] }
  0x4d   : > { %v1079_v1 = vor.u32 %v1243_v60, %v1076_v61 }
  0x50   : > { %1370 = vmatpush.bf16.msra.mxu3 %v1441_v5  ;;  %v1046_v5 = vld [vmem:[%s1456_s7 + $0x80] sm:$0xf] }
  0x51   : > { %v1047_v7 = vor.u32 %v1236_v6, %v1046_v5 }
  0x55   : > { %1208 = vmatmul.msk.bf16.gmra.mxu2 %vm573_vm0, %v1035_v59  ;;  %v1244_v59 = vld [vmem:[%s1456_s7 + $0xc8] sm:$0xf0] }
  0x56   : > { %v1075_v63 = vor.u32 %v1244_v59, %v1074_v58 }
  0x5b   : > { %636 = vmatmul.bf16.gmra.mxu0 %v1015_v2  ;;  %745 = vmatmul.bf16.vlgmr.msrb.gmra.mxu3 %v1103_v3 }
  0x5c   : > { %710 = vmatmul.bf16.gmra.mxu1 %v1019_v4 }
  0x65   : > { %1209 = vmatmul.msk.bf16.gmra.mxu2 %vm573_vm0, %v1047_v7  ;;  %v1106_v7 = vld [vmem:[%s1456_s7 + $0xf8] sm:$0xf] }
  0x66   : > { %v1107_v13 = vor.u32 %v1251_v8, %v1106_v7 }
  0x6b   : > { %641 = vmatmul.bf16.gmra.mxu0 %v1027_v14  ;;  %750 = vmatmul.bf16.gmra.mxu3 %v1115_v15 }
  0x6c   : > { %715 = vmatmul.bf16.gmra.mxu1 %v1031_v16  ;;  %v1086_v16 = vld [vmem:[%s1456_s7 + $0xd8] sm:$0xf] }
  0x6d   : > { %v1087_v24 = vor.u32 %v1247_v17, %v1086_v16 }
  0x75   : > { %1210 = vmatmul.msk.bf16.gmra.mxu2 %vm573_vm0, %v1059_v19  ;;  %v1246_v19 = vld [vmem:[%s1456_s7 + $0xdc] sm:$0xf] }
  0x7b   : > { %646 = vmatmul.bf16.gmra.mxu0 %v1039_v26  ;;  %755 = vmatmul.bf16.gmra.mxu3 %v1127_v27  ;;  %v1091_v26 = vor.u32 %v1246_v19, %v1088_v20 }
  0x7c   : > { %720 = vmatmul.bf16.gmra.mxu1 %v1043_v28 }
  0x85   : > { %1211 = vmatmul.msk.bf16.gmra.mxu2 %vm573_vm0, %v1071_v31 }
  0x8b   : > { %651 = vmatmul.bf16.gmra.mxu0 %v1051_v38  ;;  %1215 = vmatmul.msk.bf16.vlgmr.msra.gmra.mxu3 %vm573_vm0, %v1119_v39 }
  0x8c   : > { %725 = vmatmul.bf16.gmra.mxu1 %v1055_v40 }
  0x95   : > { %1212 = vmatmul.msk.bf16.gmra.mxu2 %vm573_vm0, %v1083_v43 }
  0x98   : > { %v770_v53 = vpop.f32.mrf.mxu2 }
  0x9b   : > { %656 = vmatmul.bf16.gmra.mxu0 %v1063_v50  ;;  %1216 = vmatmul.msk.bf16.gmra.mxu3 %vm573_vm0, %v1131_v51 }
  0x9c   : > { %730 = vmatmul.bf16.gmra.mxu1 %v1067_v52 }
  0xa0   : > { %v772_v56 = vpop.f32.mrf.mxu2 }
  0xa5   : > { %1213 = vmatmul.msk.bf16.gmra.mxu2 %vm573_vm0, %v1095_v57 }
  0xa8   : > { %v622_v0 = vpop.f32.mrf.mxu0  ;;  %v775_v3 = vpop.f32.mrf.mxu2 }
  0xa9   : > { %v696_v2 = vpop.f32.mrf.mxu1  ;;  %v623_v4 = vadd.f32 %v1578_v62, %v622_v0 }
  0xab   : > { %661 = vmatmul.bf16.gmra.mxu0 %v1075_v63  ;;  %v697_v6 = vadd.f32 %v696_v2, %v623_v4 }
  0xac   : > { %735 = vmatmul.bf16.gmra.mxu1 %v1079_v1 }
  0xad   : > { %v771_v14 = vadd.f32 %v770_v53, %v697_v6 }
  0xae   : > { %v1581_v5 = vpop.f32.mrf.mxu3 }
  0xaf   : > { %v835_v22 = vmax.f32 %v771_v14, 0.0  ;;  %v673_v2 = vadd.f32 %v1578_v62, %v1581_v5 }
  0xb0   : > { %v624_v9 = vpop.f32.mrf.mxu0  ;;  %v777_v12 = vpop.f32.mrf.mxu2 }
  0xb1   : > { %v625_v10 = vadd.f32 %v1578_v62, %v624_v9  ;;  %v698_v11 = vpop.f32.mrf.mxu1 }
  0xb3   : > { %v699_v15 = vadd.f32 %v698_v11, %v625_v10 }
  0xb5   : > { %v773_v18 = vadd.f32 %v772_v56, %v699_v15  ;;  %1214 = vmatmul.msk.bf16.gmra.mxu2 %vm573_vm0, %v1107_v13 }
  0xb6   : > { %v674_v21 = vpop.f32.mrf.mxu3 }
  0xb7   : > { %v836_v23 = vmax.f32 %v773_v18, 0.0  ;;  %v675_v13 = vadd.f32 %v1578_v62, %v674_v21 }
  0xb8   : > { %v627_v25 = vpop.f32.mrf.mxu0  ;;  %v780_v29 = vpop.f32.mrf.mxu2 }
  0xb9   : > { %v1279_v27 = vpack.c.bf16 %v836_v23, %v835_v22  ;;  %v701_v28 = vpop.f32.mrf.mxu1  ;;  %v628_v30 = vadd.f32 %v1578_v62, %v627_v25 }
  0xbb   : > { %1280 = vst [vmem:[%s1595_s9] sm:$0xff] %v1279_v27   ;;  %666 = vmatmul.bf16.gmra.mxu0 %v1087_v24  ;;  %v702_v32 = vadd.f32 %v701_v28, %v628_v30 }
  0xbc   : > { %740 = vmatmul.bf16.gmra.mxu1 %v1091_v26 }
  0xbd   : > { %v776_v37 = vadd.f32 %v775_v3, %v702_v32 }
  0xbe   : > { %v1599_v31 = vpop.f32.mrf.mxu3 }
  0xbf   : > { %v837_v41 = vmax.f32 %v776_v37, 0.0 }
  0xc0   : > { %v629_v33 = vpop.f32.mrf.mxu0  ;;  %v782_v36 = vpop.f32.mrf.mxu2 }
  0xc1   : > { %v630_v34 = vadd.f32 %v1578_v62, %v629_v33  ;;  %v703_v35 = vpop.f32.mrf.mxu1 }
  0xc3   : > { %v704_v38 = vadd.f32 %v703_v35, %v630_v34 }
  0xc5   : > { %v778_v39 = vadd.f32 %v777_v12, %v704_v38 }
  0xc6   : > { %v1602_v40 = vpop.f32.mrf.mxu3 }
  0xc7   : > { %v838_v42 = vmax.f32 %v778_v39, 0.0 }
  0xc8   : > { %v632_v43 = vpop.f32.mrf.mxu0  ;;  %v785_v46 = vpop.f32.mrf.mxu2 }
  0xc9   : > { %v1284_v44 = vpack.c.bf16 %v838_v42, %v837_v41  ;;  %v706_v45 = vpop.f32.mrf.mxu1  ;;  %v633_v47 = vadd.f32 %v1578_v62, %v632_v43 }
  0xcb   : > { %1341 = vst [vmem:[%s1595_s9 + $0x8] sm:$0xff] %v1284_v44   ;;  %v707_v49 = vadd.f32 %v706_v45, %v633_v47 }
  0xcd   : > { %v781_v54 = vadd.f32 %v780_v29, %v707_v49 }
  0xce   : > { %v1606_v48 = vpop.f32.mrf.mxu3 }
  0xcf   : > { %v839_v58 = vmax.f32 %v781_v54, 0.0 }
  0xd0   : > { %v634_v50 = vpop.f32.mrf.mxu0  ;;  %v787_v53 = vpop.f32.mrf.mxu2 }
  0xd1   : > { %v635_v51 = vadd.f32 %v1578_v62, %v634_v50  ;;  %v708_v52 = vpop.f32.mrf.mxu1 }
  0xd3   : > { %v709_v55 = vadd.f32 %v708_v52, %v635_v51 }
  0xd5   : > { %v783_v56 = vadd.f32 %v782_v36, %v709_v55 }
  0xd6   : > { %v1609_v57 = vpop.f32.mrf.mxu3 }
  0xd7   : > { %v840_v59 = vmax.f32 %v783_v56, 0.0 }
  0xd8   : > { %v637_v60 = vpop.f32.mrf.mxu0  ;;  %v790_v0 = vpop.f32.mrf.mxu2 }
  0xd9   : > { %v1289_v61 = vpack.c.bf16 %v840_v59, %v839_v58  ;;  %v711_v63 = vpop.f32.mrf.mxu1  ;;  %v638_v1 = vadd.f32 %v1578_v62, %v637_v60 }
  0xdb   : > { %1342 = vst [vmem:[%s1595_s9 + $0x10] sm:$0xff] %v1289_v61   ;;  %v712_v4 = vadd.f32 %v711_v63, %v638_v1  ;;  %v678_v1 = vadd.f32 %v1578_v62, %v1599_v31 }
  0xdd   : > { %v786_v11 = vadd.f32 %v785_v46, %v712_v4 }
  0xde   : > { %v746_v3 = vpop.f32.mrf.mxu3 }
  0xdf   : > { %v1615_v6 = vadd.f32 %v746_v3, %v673_v2  ;;  %v841_v16 = vmax.f32 %v786_v11, 0.0 }
  0xe0   : > { %v639_v7 = vpop.f32.mrf.mxu0  ;;  %v792_v10 = vpop.f32.mrf.mxu2 }
  0xe1   : > { %v640_v8 = vadd.f32 %v1578_v62, %v639_v7  ;;  %v713_v9 = vpop.f32.mrf.mxu1  ;;  %v680_v7 = vadd.f32 %v1578_v62, %v1602_v40 }
  0xe3   : > { %v714_v12 = vadd.f32 %v713_v9, %v640_v8 }
  0xe5   : > { %v788_v14 = vadd.f32 %v787_v53, %v714_v12 }
  0xe6   : > { %v748_v15 = vpop.f32.mrf.mxu3 }
  0xe7   : > { %v842_v17 = vmax.f32 %v788_v14, 0.0  ;;  %v1619_v18 = vadd.f32 %v748_v15, %v675_v13 }
  0xe8   : > { %v642_v5 = vpop.f32.mrf.mxu0  ;;  %v795_v22 = vpop.f32.mrf.mxu2 }
  0xe9   : > { %v1294_v19 = vpack.c.bf16 %v842_v17, %v841_v16  ;;  %v716_v20 = vpop.f32.mrf.mxu1  ;;  %v643_v23 = vadd.f32 %v1578_v62, %v642_v5 }
  0xeb   : > { %1343 = vst [vmem:[%s1595_s9 + $0x18] sm:$0xff] %v1294_v19   ;;  %v717_v25 = vadd.f32 %v716_v20, %v643_v23 }
  0xed   : > { %v791_v29 = vadd.f32 %v790_v0, %v717_v25 }
  0xee   : > { %v751_v24 = vpop.f32.mrf.mxu3 }
  0xef   : > { %v843_v34 = vmax.f32 %v791_v29, 0.0  ;;  %v752_v8 = vadd.f32 %v751_v24, %v678_v1 }
  0xf0   : > { %v644_v26 = vpop.f32.mrf.mxu0  ;;  %v797_v28 = vpop.f32.mrf.mxu2 }
  0xf1   : > { %v645_v27 = vadd.f32 %v1578_v62, %v644_v26  ;;  %v718_v21 = vpop.f32.mrf.mxu1 }
  0xf3   : > { %v719_v30 = vadd.f32 %v718_v21, %v645_v27  ;;  %v683_v21 = vadd.f32 %v1578_v62, %v1606_v48 }
  0xf5   : > { %v793_v32 = vadd.f32 %v792_v10, %v719_v30 }
  0xf6   : > { %v753_v33 = vpop.f32.mrf.mxu3 }
  0xf7   : > { %v844_v35 = vmax.f32 %v793_v32, 0.0  ;;  %v754_v11 = vadd.f32 %v753_v33, %v680_v7  ;;  %v685_v32 = vadd.f32 %v1578_v62, %v1609_v57 }
  0xf8   : > { %v647_v36 = vpop.f32.mrf.mxu0  ;;  %v800_v39 = vpop.f32.mrf.mxu2 }
  0xf9   : > { %v1299_v37 = vpack.c.bf16 %v844_v35, %v843_v34  ;;  %v721_v38 = vpop.f32.mrf.mxu1  ;;  %v648_v41 = vadd.f32 %v1578_v62, %v647_v36 }
  0xfb   : > { %1344 = vst [vmem:[%s1595_s9 + $0x20] sm:$0xff] %v1299_v37   ;;  %v722_v43 = vadd.f32 %v721_v38, %v648_v41 }
  0xfd   : > { %v796_v49 = vadd.f32 %v795_v22, %v722_v43 }
  0xfe   : > { %v756_v42 = vpop.f32.mrf.mxu3 }
  0xff   : > { %v845_v53 = vmax.f32 %v796_v49, 0.0  ;;  %v757_v33 = vadd.f32 %v756_v42, %v683_v21 }
 0x100   : > { %v649_v44 = vpop.f32.mrf.mxu0  ;;  %v802_v47 = vpop.f32.mrf.mxu2 }
 0x101   : > { %v650_v45 = vadd.f32 %v1578_v62, %v649_v44  ;;  %v723_v46 = vpop.f32.mrf.mxu1 }
 0x103   : > { %v724_v50 = vadd.f32 %v723_v46, %v650_v45 }
 0x105   : > { %v798_v51 = vadd.f32 %v797_v28, %v724_v50 }
 0x106   : > { %v758_v52 = vpop.f32.mrf.mxu3 }
 0x107   : > { %v846_v54 = vmax.f32 %v798_v51, 0.0  ;;  %v759_v36 = vadd.f32 %v758_v52, %v685_v32 }
 0x108   : > { %v652_v55 = vpop.f32.mrf.mxu0  ;;  %v805_v59 = vpop.f32.mrf.mxu2 }
 0x109   : > { %v1304_v56 = vpack.c.bf16 %v846_v54, %v845_v53  ;;  %v726_v58 = vpop.f32.mrf.mxu1  ;;  %v653_v60 = vadd.f32 %v1578_v62, %v652_v55 }
 0x10b   : > { %1345 = vst [vmem:[%s1595_s9 + $0x28] sm:$0xff] %v1304_v56   ;;  %v727_v63 = vadd.f32 %v726_v58, %v653_v60 }
 0x10d   : > { %v801_v9 = vadd.f32 %v800_v39, %v727_v63 }
 0x10e   : > { %v825_v61 = vpop.f32.mrf.mxu3 }
 0x10f   : > { %v826_v12 = vadd.f32 %v825_v61, %v752_v8  ;;  %v847_v15 = vmax.f32 %v801_v9, 0.0 }
 0x110   : > { %v654_v0 = vpop.f32.mrf.mxu0  ;;  %v807_v4 = vpop.f32.mrf.mxu2 }
 0x111   : > { %v655_v2 = vadd.f32 %v1578_v62, %v654_v0  ;;  %v728_v3 = vpop.f32.mrf.mxu1  ;;  %v857_v5 = vmax.f32 %v826_v12, 0.0 }
 0x113   : > { %v729_v10 = vadd.f32 %v728_v3, %v655_v2 }
 0x115   : > { %v803_v13 = vadd.f32 %v802_v47, %v729_v10 }
 0x116   : > { %v827_v14 = vpop.f32.mrf.mxu3 }
 0x117   : > { %v848_v16 = vmax.f32 %v803_v13, 0.0  ;;  %v828_v17 = vadd.f32 %v827_v14, %v754_v11 }
 0x118   : > { %v657_v31 = vpop.f32.mrf.mxu0  ;;  %v810_v23 = vpop.f32.mrf.mxu2 }
 0x119   : > { %v1309_v19 = vpack.c.bf16 %v848_v16, %v847_v15  ;;  %v858_v20 = vmax.f32 %v828_v17, 0.0  ;;  %v731_v22 = vpop.f32.mrf.mxu1  ;;  %v658_v24 = vadd.f32 %v1578_v62, %v657_v31 }
 0x11b   : > { %1346 = vst [vmem:[%s1595_s9 + $0x30] sm:$0xff] %v1309_v19   ;;  %v1334_v40 = vpack.c.bf16 %v858_v20, %v857_v5  ;;  %v732_v26 = vadd.f32 %v731_v22, %v658_v24 }
 0x11d   : > { %1351 = vst [vmem:[%s1595_s9 + $0x58] sm:$0xff] %v1334_v40   ;;  %v806_v34 = vadd.f32 %v805_v59, %v732_v26 }
 0x11e   : > { %v830_v25 = vpop.f32.mrf.mxu3 }
 0x11f   : > { %v831_v37 = vadd.f32 %v830_v25, %v757_v33  ;;  %v849_v41 = vmax.f32 %v806_v34, 0.0 }
 0x120   : > { %v659_v27 = vpop.f32.mrf.mxu0  ;;  %v812_v30 = vpop.f32.mrf.mxu2 }
 0x121   : > { %v660_v28 = vadd.f32 %v1578_v62, %v659_v27  ;;  %v733_v29 = vpop.f32.mrf.mxu1  ;;  %v859_v45 = vmax.f32 %v831_v37, 0.0 }
 0x123   : > { %v734_v35 = vadd.f32 %v733_v29, %v660_v28 }
 0x125   : > { %v808_v38 = vadd.f32 %v807_v4, %v734_v35 }
 0x126   : > { %v832_v39 = vpop.f32.mrf.mxu3 }
 0x127   : > { %v850_v43 = vmax.f32 %v808_v38, 0.0  ;;  %v833_v44 = vadd.f32 %v832_v39, %v759_v36 }
 0x128   : > { %v662_v48 = vpop.f32.mrf.mxu0  ;;  %v815_v50 = vpop.f32.mrf.mxu2 }
 0x129   : > { %v1314_v46 = vpack.c.bf16 %v850_v43, %v849_v41  ;;  %v860_v47 = vmax.f32 %v833_v44, 0.0  ;;  %v736_v49 = vpop.f32.mrf.mxu1  ;;  %v663_v42 = vadd.f32 %v1578_v62, %v662_v48 }
 0x12b   : > { %1347 = vst [vmem:[%s1595_s9 + $0x38] sm:$0xff] %v1314_v46   ;;  %v1339_v57 = vpack.c.bf16 %v860_v47, %v859_v45  ;;  %v737_v51 = vadd.f32 %v736_v49, %v663_v42 }
 0x12d   : > { %1352 = vst [vmem:[%s1595_s9 + $0x60] sm:$0xff] %v1339_v57   ;;  %v811_v56 = vadd.f32 %v810_v23, %v737_v51 }
 0x12f   : > { %v851_v60 = vmax.f32 %v811_v56, 0.0 }
 0x130   : > { %v664_v52 = vpop.f32.mrf.mxu0  ;;  %v817_v55 = vpop.f32.mrf.mxu2 }
 0x131   : > { %v665_v53 = vadd.f32 %v1578_v62, %v664_v52  ;;  %v738_v54 = vpop.f32.mrf.mxu1 }
 0x133   : > { %v739_v58 = vadd.f32 %v738_v54, %v665_v53 }
 0x135   : > { %v813_v59 = vadd.f32 %v812_v30, %v739_v58 }
 0x137   : > { %v852_v61 = vmax.f32 %v813_v59, 0.0 }
 0x138   : > { %v667_v63 = vpop.f32.mrf.mxu0  ;;  %v820_v2 = vpop.f32.mrf.mxu2 }
 0x139   : > { %v1319_v0 = vpack.c.bf16 %v852_v61, %v851_v60  ;;  %v741_v1 = vpop.f32.mrf.mxu1  ;;  %v668_v3 = vadd.f32 %v1578_v62, %v667_v63  ;;  %v821_v7 = vadd.f32 %v820_v2, %v1615_v6 }
 0x13b   : > { %1348 = vst [vmem:[%s1595_s9 + $0x40] sm:$0xff] %v1319_v0   ;;  %v742_v4 = vadd.f32 %v741_v1, %v668_v3  ;;  %v855_v15 = vmax.f32 %v821_v7, 0.0 }
 0x13d   : > { %v816_v13 = vadd.f32 %v815_v50, %v742_v4 }
 0x13f   : > { %v853_v5 = vmax.f32 %v816_v13, 0.0 }
 0x140   : > { %v669_v8 = vpop.f32.mrf.mxu0  ;;  %v822_v10 = vpop.f32.mrf.mxu2 }
 0x141   : > { %v670_v9 = vadd.f32 %v1578_v62, %v669_v8  ;;  %v743_v11 = vpop.f32.mrf.mxu1  ;;  %v823_v12 = vadd.f32 %v822_v10, %v1619_v18 }
 0x143   : > { %v744_v14 = vadd.f32 %v743_v11, %v670_v9  ;;  %v856_v16 = vmax.f32 %v823_v12, 0.0 }
 0x145   : > { %v818_v17 = vadd.f32 %v817_v55, %v744_v14  ;;  %v1329_v31 = vpack.c.bf16 %v856_v16, %v855_v15 }
 0x147   : > { %v854_v19 = vmax.f32 %v818_v17, 0.0  ;;  %1350 = vst [vmem:[%s1595_s9 + $0x50] sm:$0xff] %v1329_v31  }
 0x149   : > { %v1324_v20 = vpack.c.bf16 %v854_v19, %v853_v5 }
 0x14b   : > { %1349 = vst [vmem:[%s1595_s9 + $0x48] sm:$0xff] %v1324_v20  }
 0x14c PF: > { %s13_s12 = sadd.s32 1, %s1387_s12  }
 0x14d   : > { %p10_p4 = scmp.ge.s32.totalorder %s13_s12, 4  }
 0x14f   :  { %12 = sbr.rel (!%p10_p4) target bundleno = 1 (0x1), region = 62 }

// kernel: conv_re_ae_forward.11
= control target key start
LH: loop header
LB: loop body
LE: loop exit
PB: predicated region body
PF: predicated region fallthrough
CT: control target
= control target key end

     0   :  { %s2558_s12 = smov 0   ;;  %s3622_s0 = inlined_call_operand.vmem [shape: bf16[1600,144], index: 0, kind: input, shape index: {}]   ;;  %s3623_s1 = inlined_call_operand.vmem [shape: bf16[144,128], index: 1, kind: input, shape index: {}]   ;;  %s3624_s2 = inlined_call_operand.vmem [shape: f32[1,128], index: 2, kind: input, shape index: {}]   ;;  %s3625_s3 = inlined_call_operand.vmem [shape: f32[1600,128], index: 3, kind: output, shape index: {}]  }
   0x1 LB: > { %s1929_s13 = sadd.s32 4294967295, %s2536_s12   ;;  %p1933_p0 = scmp.ge.s32.totalorder %s2536_s12, 1  ;;  %s2536_s12 = sphi %s2558_s12, %s13_s12  }
   0x2   : > { %p139_p1 = scmp.lt.s32.totalorder %s2536_s12, 5 }
   0x4   : > { %p140_p2 = pnand %p1933_p0, %p139_p1 }
   0x5   : > { %s164_s18 = smul.u32 (!%p140_p2), 50, %s1929_s13 }
   0x6   : > { %143 = sbr.rel (%p140_p2) target bundleno = 438 (0x1b6), region = 32 }
   0x7   : > { %p165_p3 = scmp.lt.s32.totalorder (!%p140_p2), %s164_s18, 199 }
   0xb   : > { %v2308_v0 = vld [vmem:[%s3623_s1 + $0x38] sm:$0xff]  ;;  %v2309_v1 = vld [vmem:[%s3623_s1 + $0x40] sm:$0xff]  ;;  %v2307_v2 = vld [vmem:[%s3623_s1 + $0x30] sm:$0xff]  ;;  %s3695_s18 = smov (!%p165_p3, %s164_s18), 199  ;;  %vm529_vm0 = vcmask 130048  }
   0xc   : > { %605 = vmatpush.bf16.msra.mxu0 %v2308_v0  ;;  %2310 = vmatpush.bf16.msra.mxu2 %v2308_v0  ;;  %v2306_v3 = vld [vmem:[%s3623_s1 + $0x28] sm:$0xff]  ;;  %s2250_s23 = sshll.u32 %s3695_s18, 3  ;;  %v2305_v7 = vld [vmem:[%s3623_s1 + $0x20] sm:$0xff]  ;;  %v2304_v8 = vld [vmem:[%s3623_s1 + $0x18] sm:$0xff] }
   0xd   : > { %746 = vmatpush.bf16.msra.mxu1 %v2309_v1  ;;  %2318 = vmatpush.bf16.msra.mxu3 %v2309_v1  ;;  %s2586_s26 = scalar_lea.vmem %s3622_s0, %s2250_s23  ;;  %v2303_v9 = vld [vmem:[%s3623_s1 + $0x10] sm:$0xff]  ;;  %v2302_v12 = vld [vmem:[%s3623_s1 + $0x8] sm:$0xff]  ;;  %v2301_v16 = vld [vmem:[%s3623_s1] sm:$0xff]  ;;  %s2744_s15 = scalar_lea.vmem %s3625_s3, %s2250_s23 }
   0xe   : > { %v2251_v4 = vld [vmem:[%s2586_s26 + $0x4] sm:$0xf]  ;;  %v1941_v5 = vld [vmem:[%s2586_s26 + $0x8] sm:$0xf0]  ;;  %v2253_v10 = vld [vmem:[%s2586_s26 + $0x14] sm:$0xf] }
   0xf   : > { %v1944_v6 = vor.u32 %v2251_v4, %v1941_v5  ;;  %v1949_v11 = vld [vmem:[%s2586_s26 + $0x18] sm:$0xf0]  ;;  %v2279_v14 = vld [vmem:[%s2586_s26 + $0xe4] sm:$0xf]  ;;  %v2053_v15 = vld [vmem:[%s2586_s26 + $0xe8] sm:$0xf0] }
  0x10   : > { %606 = vmatpush.bf16.msra.mxu0 %v2307_v2  ;;  %2311 = vmatpush.bf16.msra.mxu2 %v2307_v2  ;;  %v1952_v13 = vor.u32 %v2253_v10, %v1949_v11  ;;  %v1939_v17 = vld [vmem:[%s2586_s26] sm:$0xf]  ;;  %v2056_v18 = vor.u32 %v2279_v14, %v2053_v15  ;;  %v2252_v19 = vld [vmem:[%s2586_s26 + $0x4] sm:$0xf0]  ;;  %v2255_v24 = vld [vmem:[%s2586_s26 + $0x24] sm:$0xf] }
  0x11   : > { %2173 = vmatmul.msk.bf16.vlgmr.msra.gmra.mxu1 %vm529_vm0, %v1944_v6  ;;  %v2035_v20 = vld [vmem:[%s2586_s26 + $0xc0] sm:$0xf]  ;;  %v2276_v21 = vld [vmem:[%s2586_s26 + $0xc4] sm:$0xf0]  ;;  %v1940_v22 = vor.u32 %v2252_v19, %v1939_v17  ;;  %v1957_v25 = vld [vmem:[%s2586_s26 + $0x28] sm:$0xf0] }
  0x12   : > { %2187 = vmatmul.msk.bf16.vlgmr.msra.gmra.mxu3 %vm529_vm0, %v2056_v18  ;;  %v2036_v23 = vor.u32 %v2276_v21, %v2035_v20  ;;  %v1960_v26 = vor.u32 %v2255_v24, %v1957_v25  ;;  %v2281_v27 = vld [vmem:[%s2586_s26 + $0xf4] sm:$0xf]  ;;  %v2061_v28 = vld [vmem:[%s2586_s26 + $0xf8] sm:$0xf0]  ;;  %v1947_v29 = vld [vmem:[%s2586_s26 + $0x10] sm:$0xf] }
  0x13   : > { %v2064_v30 = vor.u32 %v2281_v27, %v2061_v28  ;;  %v2254_v31 = vld [vmem:[%s2586_s26 + $0x14] sm:$0xf0]  ;;  %v2043_v32 = vld [vmem:[%s2586_s26 + $0xd0] sm:$0xf]  ;;  %v2257_v36 = vld [vmem:[%s2586_s26 + $0x34] sm:$0xf] }
  0x14   : > { %607 = vmatpush.bf16.msra.mxu0 %v2306_v3  ;;  %2312 = vmatpush.bf16.msra.mxu2 %v2306_v3  ;;  %v2278_v33 = vld [vmem:[%s2586_s26 + $0xd4] sm:$0xf0]  ;;  %v1948_v34 = vor.u32 %v2254_v31, %v1947_v29  ;;  %v1965_v37 = vld [vmem:[%s2586_s26 + $0x38] sm:$0xf0]  ;;  %v2283_v39 = vld [vmem:[%s2586_s26 + $0x104] sm:$0xf] }
  0x15   : > { %v2044_v35 = vor.u32 %v2278_v33, %v2043_v32  ;;  %v1968_v38 = vor.u32 %v2257_v36, %v1965_v37  ;;  %v2069_v40 = vld [vmem:[%s2586_s26 + $0x108] sm:$0xf0]  ;;  %v1955_v41 = vld [vmem:[%s2586_s26 + $0x20] sm:$0xf]  ;;  %v2256_v43 = vld [vmem:[%s2586_s26 + $0x24] sm:$0xf0] }
  0x16   : > { %v2072_v42 = vor.u32 %v2283_v39, %v2069_v40  ;;  %v2051_v44 = vld [vmem:[%s2586_s26 + $0xe0] sm:$0xf]  ;;  %v2280_v45 = vld [vmem:[%s2586_s26 + $0xe4] sm:$0xf0]  ;;  %v1956_v46 = vor.u32 %v2256_v43, %v1955_v41  ;;  %v2259_v48 = vld [vmem:[%s2586_s26 + $0x44] sm:$0xf] }
  0x17   : > { %v2052_v47 = vor.u32 %v2280_v45, %v2051_v44  ;;  %v1973_v49 = vld [vmem:[%s2586_s26 + $0x48] sm:$0xf0]  ;;  %v2285_v51 = vld [vmem:[%s2586_s26 + $0x114] sm:$0xf]  ;;  %v2077_v52 = vld [vmem:[%s2586_s26 + $0x118] sm:$0xf0] }
  0x18   : > { %608 = vmatpush.bf16.msra.mxu0 %v2305_v7  ;;  %2313 = vmatpush.bf16.msra.mxu2 %v2305_v7  ;;  %v1976_v50 = vor.u32 %v2259_v48, %v1973_v49  ;;  %v1963_v53 = vld [vmem:[%s2586_s26 + $0x30] sm:$0xf]  ;;  %v2080_v54 = vor.u32 %v2285_v51, %v2077_v52  ;;  %v2258_v55 = vld [vmem:[%s2586_s26 + $0x34] sm:$0xf0]  ;;  %v2261_v60 = vld [vmem:[%s2586_s26 + $0x54] sm:$0xf] }
  0x19   : > { %v2059_v56 = vld [vmem:[%s2586_s26 + $0xf0] sm:$0xf]  ;;  %v2282_v57 = vld [vmem:[%s2586_s26 + $0xf4] sm:$0xf0]  ;;  %v1964_v58 = vor.u32 %v2258_v55, %v1963_v53  ;;  %v1981_v61 = vld [vmem:[%s2586_s26 + $0x58] sm:$0xf0] }
  0x1a   : > { %v2060_v59 = vor.u32 %v2282_v57, %v2059_v56  ;;  %v1984_v62 = vor.u32 %v2261_v60, %v1981_v61  ;;  %v2287_v63 = vld [vmem:[%s2586_s26 + $0x124] sm:$0xf]  ;;  %v2085_v0 = vld [vmem:[%s2586_s26 + $0x128] sm:$0xf0]  ;;  %v1971_v1 = vld [vmem:[%s2586_s26 + $0x40] sm:$0xf] }
  0x1b   : > { %v2088_v2 = vor.u32 %v2287_v63, %v2085_v0  ;;  %v2260_v3 = vld [vmem:[%s2586_s26 + $0x44] sm:$0xf0]  ;;  %v2067_v4 = vld [vmem:[%s2586_s26 + $0x100] sm:$0xf]  ;;  %v2289_v11 = vld [vmem:[%s2586_s26 + $0x134] sm:$0xf] }
  0x1c   : > { %609 = vmatpush.bf16.msra.mxu0 %v2304_v8  ;;  %2314 = vmatpush.bf16.msra.mxu2 %v2304_v8  ;;  %v2284_v5 = vld [vmem:[%s2586_s26 + $0x104] sm:$0xf0]  ;;  %v1972_v6 = vor.u32 %v2260_v3, %v1971_v1  ;;  %v2263_v8 = vld [vmem:[%s2586_s26 + $0x64] sm:$0xf]  ;;  %v2262_v14 = vld [vmem:[%s2586_s26 + $0x54] sm:$0xf0] }
  0x1d   : > { %v2068_v7 = vor.u32 %v2284_v5, %v2067_v4  ;;  %v2075_v15 = vld [vmem:[%s2586_s26 + $0x110] sm:$0xf]  ;;  %v2265_v20 = vld [vmem:[%s2586_s26 + $0x74] sm:$0xf]  ;;  %v1997_v21 = vld [vmem:[%s2586_s26 + $0x78] sm:$0xf0] }
  0x1e   : > { %v1987_v24 = vld [vmem:[%s2586_s26 + $0x60] sm:$0xf]  ;;  %v2101_v25 = vld [vmem:[%s2586_s26 + $0x148] sm:$0xf0]  ;;  %v2288_v28 = vld [vmem:[%s2586_s26 + $0x124] sm:$0xf0] }
  0x1f   : > { %v2083_v27 = vld [vmem:[%s2586_s26 + $0x120] sm:$0xf]  ;;  %v2267_v32 = vld [vmem:[%s2586_s26 + $0x84] sm:$0xf]  ;;  %v2005_v33 = vld [vmem:[%s2586_s26 + $0x88] sm:$0xf0] }
  0x20   : > { %610 = vmatpush.bf16.msra.mxu0 %v2303_v9  ;;  %2315 = vmatpush.bf16.msra.mxu2 %v2303_v9  ;;  %v1989_v9 = vld [vmem:[%s2586_s26 + $0x68] sm:$0xf0]  ;;  %v2084_v31 = vor.u32 %v2288_v28, %v2083_v27  ;;  %v2293_v36 = vld [vmem:[%s2586_s26 + $0x154] sm:$0xf]  ;;  %v1995_v37 = vld [vmem:[%s2586_s26 + $0x70] sm:$0xf] }
  0x21   : > { %2174 = vmatmul.msk.bf16.gmra.mxu1 %vm529_vm0, %v1952_v13  ;;  %v1992_v10 = vor.u32 %v2263_v8, %v1989_v9  ;;  %v2093_v13 = vld [vmem:[%s2586_s26 + $0x138] sm:$0xf0]  ;;  %v2266_v39 = vld [vmem:[%s2586_s26 + $0x74] sm:$0xf0]  ;;  %v2091_v40 = vld [vmem:[%s2586_s26 + $0x130] sm:$0xf] }
  0x22   : > { %2188 = vmatmul.msk.bf16.gmra.mxu3 %vm529_vm0, %v2064_v30  ;;  %v2096_v17 = vor.u32 %v2289_v11, %v2093_v13  ;;  %v2290_v41 = vld [vmem:[%s2586_s26 + $0x134] sm:$0xf0]  ;;  %v1996_v43 = vor.u32 %v2266_v39, %v1995_v37  ;;  %v2268_v51 = vld [vmem:[%s2586_s26 + $0x84] sm:$0xf0]  ;;  %v2295_v52 = vld [vmem:[%s2586_s26 + $0x164] sm:$0xf] }
  0x23   : > { %v2092_v44 = vor.u32 %v2290_v41, %v2091_v40  ;;  %v2099_v53 = vld [vmem:[%s2586_s26 + $0x140] sm:$0xf]  ;;  %v2117_v55 = vld [vmem:[%s2586_s26 + $0x168] sm:$0xf0]  ;;  %v2011_v9 = vld [vmem:[%s2586_s26 + $0x90] sm:$0xf] }
  0x24   : > { %611 = vmatpush.bf16.msra.mxu0 %v2302_v12  ;;  %2316 = vmatpush.bf16.msra.mxu2 %v2302_v12  ;;  %v1979_v12 = vld [vmem:[%s2586_s26 + $0x50] sm:$0xf]  ;;  %v2698_v56 = vld [vmem:[%s3624_s2] ss:$0 sm:$0xff]  ;;  %v2120_v57 = vor.u32 %v2295_v52, %v2117_v55  ;;  %v2021_v3 = vld [vmem:[%s2586_s26 + $0xa8] sm:$0xf0] }
  0x25   : > { %v1980_v18 = vor.u32 %v2262_v14, %v1979_v12  ;;  %v2107_v11 = vld [vmem:[%s2586_s26 + $0x150] sm:$0xf]  ;;  %v2294_v12 = vld [vmem:[%s2586_s26 + $0x154] sm:$0xf0]  ;;  %v2019_v41 = vld [vmem:[%s2586_s26 + $0xa0] sm:$0xf] }
  0x28   : > { %612 = vmatpush.bf16.msra.mxu0 %v2301_v16  ;;  %2317 = vmatpush.bf16.msra.mxu2 %v2301_v16  ;;  %v2286_v16 = vld [vmem:[%s2586_s26 + $0x114] sm:$0xf0] }
  0x29   : > { %v2076_v19 = vor.u32 %v2286_v16, %v2075_v15 }
  0x2b   : > { %613 = vmatmul.bf16.vlgmr.msra.gmra.mxu0 %v1940_v22  ;;  %673 = vmatmul.bf16.vlgmr.msra.gmra.mxu2 %v2036_v23  ;;  %v2000_v22 = vor.u32 %v2265_v20, %v1997_v21  ;;  %v2291_v23 = vld [vmem:[%s2586_s26 + $0x144] sm:$0xf]  ;;  %v2125_v20 = vld [vmem:[%s2586_s26 + $0x178] sm:$0xf0] }
  0x2c   : > { %v2104_v29 = vor.u32 %v2291_v23, %v2101_v25 }
  0x31   : > { %2175 = vmatmul.msk.bf16.gmra.mxu1 %vm529_vm0, %v1960_v26  ;;  %v2264_v26 = vld [vmem:[%s2586_s26 + $0x64] sm:$0xf0] }
  0x32   : > { %2189 = vmatmul.msk.bf16.gmra.mxu3 %vm529_vm0, %v2072_v42  ;;  %v1988_v30 = vor.u32 %v2264_v26, %v1987_v24 }
  0x3b   : > { %618 = vmatmul.bf16.gmra.mxu0 %v1948_v34  ;;  %678 = vmatmul.bf16.gmra.mxu2 %v2044_v35  ;;  %v2008_v34 = vor.u32 %v2267_v32, %v2005_v33  ;;  %v2029_v32 = vld [vmem:[%s2586_s26 + $0xb8] sm:$0xf0] }
  0x41   : > { %2176 = vmatmul.msk.bf16.gmra.mxu1 %vm529_vm0, %v1968_v38  ;;  %v2109_v38 = vld [vmem:[%s2586_s26 + $0x158] sm:$0xf0] }
  0x42   : > { %2190 = vmatmul.msk.bf16.gmra.mxu3 %vm529_vm0, %v2080_v54  ;;  %v2112_v42 = vor.u32 %v2293_v36, %v2109_v38  ;;  %v2292_v54 = vld [vmem:[%s2586_s26 + $0x144] sm:$0xf0] }
  0x4b   : > { %623 = vmatmul.bf16.gmra.mxu0 %v1956_v46  ;;  %683 = vmatmul.bf16.gmra.mxu2 %v2052_v47  ;;  %v2269_v46 = vld [vmem:[%s2586_s26 + $0x94] sm:$0xf]  ;;  %v2013_v47 = vld [vmem:[%s2586_s26 + $0x98] sm:$0xf0] }
  0x4c   : > { %v2016_v48 = vor.u32 %v2269_v46, %v2013_v47  ;;  %v2115_v46 = vld [vmem:[%s2586_s26 + $0x160] sm:$0xf]  ;;  %v2296_v47 = vld [vmem:[%s2586_s26 + $0x164] sm:$0xf0] }
  0x51   : > { %2177 = vmatmul.msk.bf16.gmra.mxu1 %vm529_vm0, %v1976_v50  ;;  %v2003_v50 = vld [vmem:[%s2586_s26 + $0x80] sm:$0xf] }
  0x52   : > { %2191 = vmatmul.msk.bf16.gmra.mxu3 %vm529_vm0, %v2088_v2  ;;  %v2271_v2 = vld [vmem:[%s2586_s26 + $0xa4] sm:$0xf] }
  0x5b   : > { %628 = vmatmul.bf16.gmra.mxu0 %v1964_v58  ;;  %688 = vmatmul.bf16.gmra.mxu2 %v2060_v59  ;;  %v2004_v58 = vor.u32 %v2268_v51, %v2003_v50  ;;  %v2100_v59 = vor.u32 %v2292_v54, %v2099_v53 }
  0x61   : > { %2178 = vmatmul.msk.bf16.gmra.mxu1 %vm529_vm0, %v1984_v62 }
  0x62   : > { %2192 = vmatmul.msk.bf16.gmra.mxu3 %vm529_vm0, %v2096_v17 }
  0x6b   : > { %633 = vmatmul.bf16.gmra.mxu0 %v1972_v6  ;;  %693 = vmatmul.bf16.gmra.mxu2 %v2068_v7  ;;  %v2024_v6 = vor.u32 %v2271_v2, %v2021_v3  ;;  %v2299_v2 = vld [vmem:[%s2586_s26 + $0x184] sm:$0xf]  ;;  %v2133_v3 = vld [vmem:[%s2586_s26 + $0x188] sm:$0xf0] }
  0x71   : > { %2179 = vmatmul.msk.bf16.gmra.mxu1 %vm529_vm0, %v1992_v10  ;;  %v2270_v10 = vld [vmem:[%s2586_s26 + $0x94] sm:$0xf0] }
  0x72   : > { %2193 = vmatmul.msk.bf16.gmra.mxu3 %vm529_vm0, %v2104_v29  ;;  %v2012_v17 = vor.u32 %v2270_v10, %v2011_v9 }
  0x7b   : > { %638 = vmatmul.bf16.gmra.mxu0 %v1980_v18  ;;  %698 = vmatmul.bf16.gmra.mxu2 %v2076_v19  ;;  %v2108_v18 = vor.u32 %v2294_v12, %v2107_v11  ;;  %v2297_v19 = vld [vmem:[%s2586_s26 + $0x174] sm:$0xf] }
  0x7c   : > { %v2128_v23 = vor.u32 %v2297_v19, %v2125_v20  ;;  %v2275_v19 = vld [vmem:[%s2586_s26 + $0xc4] sm:$0xf]  ;;  %v2037_v20 = vld [vmem:[%s2586_s26 + $0xc8] sm:$0xf0] }
  0x81   : > { %2180 = vmatmul.msk.bf16.gmra.mxu1 %vm529_vm0, %v2000_v22 }
  0x82   : > { %2194 = vmatmul.msk.bf16.gmra.mxu3 %vm529_vm0, %v2112_v42  ;;  %v2272_v42 = vld [vmem:[%s2586_s26 + $0xa4] sm:$0xf0] }
  0x83   : > { %v2020_v55 = vor.u32 %v2272_v42, %v2019_v41  ;;  %v2123_v41 = vld [vmem:[%s2586_s26 + $0x170] sm:$0xf]  ;;  %v2298_v42 = vld [vmem:[%s2586_s26 + $0x174] sm:$0xf0] }
  0x8b   : > { %643 = vmatmul.bf16.gmra.mxu0 %v1988_v30  ;;  %703 = vmatmul.bf16.gmra.mxu2 %v2084_v31  ;;  %v2273_v31 = vld [vmem:[%s2586_s26 + $0xb4] sm:$0xf] }
  0x8c   : > { %v2032_v38 = vor.u32 %v2273_v31, %v2029_v32 }
  0x8e   : > { %v748_v35 = vpop.f32.mrf.mxu1 }
  0x91   : > { %2181 = vmatmul.msk.bf16.gmra.mxu1 %vm529_vm0, %v2008_v34 }
  0x92   : > { %2195 = vmatmul.msk.bf16.gmra.mxu3 %vm529_vm0, %v2120_v57  ;;  %v2116_v57 = vor.u32 %v2296_v47, %v2115_v46 }
  0x95   : > { %v2728_v33 = vpop.f32.mrf.mxu3 }
  0x96   : > { %v750_v45 = vpop.f32.mrf.mxu1 }
  0x9b   : > { %648 = vmatmul.bf16.gmra.mxu0 %v1996_v43  ;;  %708 = vmatmul.bf16.gmra.mxu2 %v2092_v44 }
  0x9e   : > { %v753_v49 = vpop.f32.mrf.mxu1 }
  0xa1   : > { %2182 = vmatmul.msk.bf16.gmra.mxu1 %vm529_vm0, %v2016_v48 }
  0xa2   : > { %2196 = vmatmul.msk.bf16.gmra.mxu3 %vm529_vm0, %v2128_v23 }
  0xa6   : > { %v755_v62 = vpop.f32.mrf.mxu1 }
  0xa8   : > { %v614_v60 = vpop.f32.mrf.mxu0 }
  0xa9   : > { %v615_v61 = vadd.f32 %v2698_v56, %v614_v60 }
  0xab   : > { %v749_v63 = vadd.f32 %v748_v35, %v615_v61  ;;  %653 = vmatmul.bf16.gmra.mxu0 %v2004_v58  ;;  %713 = vmatmul.bf16.gmra.mxu2 %v2100_v59 }
  0xad   : > { %v2198_v0 = vmul.f32 -1.442695, %v749_v63 }
  0xae   : > { %v2702_v1 = vpop.f32.mrf.mxu2  ;;  %v2707_v7 = vpop.f32.mrf.mxu1 }
  0xaf   : > { %2328 = vpow2.f32 %v2198_v0 }
  0xb0   : > { %v616_v4 = vpop.f32.mrf.mxu0 }
  0xb1   : > { %v617_v5 = vadd.f32 %v2698_v56, %v616_v4  ;;  %2183 = vmatmul.msk.bf16.gmra.mxu1 %vm529_vm0, %v2024_v6  ;;  %v2136_v6 = vor.u32 %v2299_v2, %v2133_v3 }
  0xb3   : > { %v751_v8 = vadd.f32 %v750_v45, %v617_v5  ;;  %2197 = vmatmul.msk.bf16.gmra.mxu3 %vm529_vm0, %v2136_v6 }
  0xb5   : > { %v2329_v13 = vpop.eup %2328  ;;  %v2199_v14 = vmul.f32 -1.442695, %v751_v8 }
  0xb6   : > { %v1023_v15 = vadd.f32 1.0, %v2329_v13  ;;  %v2714_v16 = vpop.f32.mrf.mxu2  ;;  %v2719_v24 = vpop.f32.mrf.mxu1 }
  0xb7   : > { %2330 = vpow2.f32 %v2199_v14 }
  0xb8   : > { %2332 = vrcp.f32 %v1023_v15  ;;  %v619_v21 = vpop.f32.mrf.mxu0  ;;  %v1084_v39 = vand.u32 2147483648, %v1023_v15  ;;  %v1082_v44 = vand.u32 2147483647, %v1023_v15  ;;  %vm1078_vm2 = vweird.f32 %v1023_v15 }
  0xb9   : > { %v620_v22 = vadd.f32 %v2698_v56, %v619_v21 }
  0xba   : > { %v1085_v52 = vor.u32 1.1754944e-38, %v1084_v39  ;;  %vm1083_vm4 = vcmp.eq.f32.partialorder %v1082_v44, 8.507059e+37  ;;  %v2274_v39 = vld [vmem:[%s2586_s26 + $0xb4] sm:$0xf0] }
  0xbb   : > { %v754_v25 = vadd.f32 %v753_v49, %v620_v22  ;;  %658 = vmatmul.bf16.gmra.mxu0 %v2012_v17  ;;  %718 = vmatmul.bf16.gmra.mxu2 %v2108_v18 }
  0xbd   : > { %v2331_v26 = vpop.eup %2330  ;;  %v2200_v27 = vmul.f32 -1.442695, %v754_v25 }
  0xbe   : > { %v2333_v28 = vpop.eup %2332  ;;  %v2722_v29 = vadd.f32 1.0, %v2331_v26  ;;  %v2724_v30 = vpop.f32.mrf.mxu2 }
  0xbf   : > { %v1074_v34 = vmul.f32 %v2333_v28, %v1023_v15  ;;  %2334 = vpow2.f32 %v2200_v27  ;;  %v2732_v40 = vpop.f32.mrf.mxu1  ;;  %vm1079_vm1 = vweird.f32 %v2333_v28 }
  0xc0   : > { %2336 = vrcp.f32 %v2722_v29  ;;  %v621_v35 = vpop.f32.mrf.mxu0  ;;  %vm1080_vm3 = vmor %vm1078_vm2, %vm1079_vm1  ;;  %v1099_v4 = vand.u32 2147483648, %v2722_v29  ;;  %v1097_v9 = vand.u32 2147483647, %v2722_v29  ;;  %vm1093_vm6 = vweird.f32 %v2722_v29 }
  0xc1   : > { %v1075_v36 = vsub.f32 1.0, %v1074_v34  ;;  %v622_v37 = vadd.f32 %v2698_v56, %v621_v35  ;;  %2184 = vmatmul.msk.bf16.gmra.mxu1 %vm529_vm0, %v2032_v38  ;;  %v2027_v35 = vld [vmem:[%s2586_s26 + $0xb0] sm:$0xf] }
  0xc2   : > { %v1100_v15 = vor.u32 1.1754944e-38, %v1099_v4  ;;  %vm1098_vm8 = vcmp.eq.f32.partialorder %v1097_v9, 8.507059e+37 }
  0xc3   : > { %v1076_v43 = vmul.f32 %v2333_v28, %v1075_v36  ;;  %v756_v45 = vadd.f32 %v755_v62, %v622_v37  ;;  %v2752_v62 = vpop.f32.mrf.mxu3 }
  0xc5   : > { %v2335_v48 = vpop.eup %2334  ;;  %v1077_v49 = vadd.f32 %v2333_v28, %v1076_v43  ;;  %v2201_v50 = vmul.f32 -1.442695, %v756_v45 }
  0xc6   : > { %v2337_v51 = vpop.eup %2336  ;;  %v2746_v53 = vadd.f32 1.0, %v2335_v48  ;;  %v2748_v54 = vpop.f32.mrf.mxu2 }
  0xc7   : > { %v1081_v58 = vsel %vm1080_vm3, %v2333_v28, %v1077_v49  ;;  %v1089_v59 = vmul.f32 %v2337_v51, %v2722_v29  ;;  %2338 = vpow2.f32 %v2201_v50  ;;  %v2759_v5 = vpop.f32.mrf.mxu1  ;;  %vm1094_vm5 = vweird.f32 %v2337_v51 }
  0xc8   : > { %v1086_v60 = vsel %vm1083_vm4, %v1085_v52, %v1081_v58  ;;  %2340 = vrcp.f32 %v2746_v53  ;;  %v624_v61 = vpop.f32.mrf.mxu0  ;;  %vm1095_vm7 = vmor %vm1093_vm6, %vm1094_vm5  ;;  %v2040_v28 = vor.u32 %v2275_v19, %v2037_v20  ;;  %v1112_v29 = vand.u32 2147483647, %v2746_v53 }
  0xc9   : > { %1823 = vst [vmem:[%s2744_s15] sm:$0xff] %v1086_v60  ;;  %v1090_v63 = vsub.f32 1.0, %v1089_v59  ;;  %v625_v0 = vadd.f32 %v2698_v56, %v624_v61  ;;  %v1114_v31 = vand.u32 2147483648, %v2746_v53  ;;  %vm1108_vm10 = vweird.f32 %v2746_v53 }
  0xca   : > { %v2028_v50 = vor.u32 %v2274_v39, %v2027_v35  ;;  %vm1113_vm12 = vcmp.eq.f32.partialorder %v1112_v29, 8.507059e+37 }
  0xcb   : > { %v1091_v8 = vmul.f32 %v2337_v51, %v1090_v63  ;;  %v759_v10 = vadd.f32 %v2707_v7, %v625_v0  ;;  %663 = vmatmul.bf16.gmra.mxu0 %v2020_v55  ;;  %723 = vmatmul.bf16.gmra.mxu2 %v2116_v57  ;;  %v2778_v34 = vpop.f32.mrf.mxu3  ;;  %v1115_v48 = vor.u32 1.1754944e-38, %v1114_v31  ;;  %v2300_v31 = vld [vmem:[%s2586_s26 + $0x184] sm:$0xf0] }
  0xcd   : > { %v2339_v11 = vpop.eup %2338  ;;  %v1092_v12 = vadd.f32 %v2337_v51, %v1091_v8  ;;  %v2202_v13 = vmul.f32 -1.442695, %v759_v10  ;;  %v2277_v10 = vld [vmem:[%s2586_s26 + $0xd4] sm:$0xf] }
  0xce   : > { %v2341_v14 = vpop.eup %2340  ;;  %v2765_v17 = vadd.f32 1.0, %v2339_v11  ;;  %v684_v18 = vpop.f32.mrf.mxu2 }
  0xcf   : > { %v1096_v21 = vsel %vm1095_vm7, %v2337_v51, %v1092_v12  ;;  %v1104_v7 = vmul.f32 %v2341_v14, %v2746_v53  ;;  %2342 = vpow2.f32 %v2202_v13  ;;  %v685_v26 = vadd.f32 %v2698_v56, %v684_v18  ;;  %v2776_v32 = vpop.f32.mrf.mxu1 }
  0xd0   : > { %v1101_v22 = vsel %vm1098_vm8, %v1100_v15, %v1096_v21  ;;  %2344 = vrcp.f32 %v2765_v17  ;;  %v626_v23 = vpop.f32.mrf.mxu0  ;;  %vm1109_vm9 = vweird.f32 %v2341_v14  ;;  %v1129_v59 = vand.u32 2147483648, %v2765_v17  ;;  %v2045_v15 = vld [vmem:[%s2586_s26 + $0xd8] sm:$0xf0] }
  0xd1   : > { %1824 = vst [vmem:[%s2744_s15 + $0x8] sm:$0xff] %v1101_v22  ;;  %v1105_v25 = vsub.f32 1.0, %v1104_v7  ;;  %v627_v27 = vadd.f32 %v2698_v56, %v626_v23  ;;  %v819_v37 = vadd.f32 %v2728_v33, %v685_v26  ;;  %2185 = vmatmul.msk.bf16.gmra.mxu1 %vm529_vm0, %v2040_v28  ;;  %vm1110_vm11 = vmor %vm1108_vm10, %vm1109_vm9  ;;  %v1127_v0 = vand.u32 2147483647, %v2765_v17  ;;  %v2131_v23 = vld [vmem:[%s2586_s26 + $0x180] sm:$0xf] }
  0xd2   : > { %vm1123_vm14 = vweird.f32 %v2765_v17  ;;  %v1130_v12 = vor.u32 1.1754944e-38, %v1129_v59  ;;  %v2048_v22 = vor.u32 %v2277_v10, %v2045_v15 }
  0xd3   : > { %v1106_v36 = vmul.f32 %v2341_v14, %v1105_v25  ;;  %v761_v38 = vadd.f32 %v2719_v24, %v627_v27  ;;  %v2226_v45 = vmul.f32 -1.442695, %v819_v37  ;;  %v2124_v24 = vor.u32 %v2298_v42, %v2123_v41  ;;  %v2801_v4 = vpop.f32.mrf.mxu3 }
  0xd4   : > { %vm1128_vm1 = vcmp.eq.f32.partialorder %v1127_v0, 8.507059e+37  ;;  %v2132_v41 = vor.u32 %v2300_v31, %v2131_v23 }
  0xd5   : > { %v2343_v43 = vpop.eup %2342  ;;  %v1107_v44 = vadd.f32 %v2341_v14, %v1106_v36  ;;  %v2203_v46 = vmul.f32 -1.442695, %v761_v38  ;;  %2346 = vpow2.f32 %v2226_v45 }
  0xd6   : > { %v2345_v47 = vpop.eup %2344  ;;  %v2788_v49 = vadd.f32 1.0, %v2343_v43  ;;  %v686_v33 = vpop.f32.mrf.mxu2 }
  0xd7   : > { %v1111_v51 = vsel %vm1110_vm11, %v2341_v14, %v1107_v44  ;;  %v1119_v52 = vmul.f32 %v2345_v47, %v2765_v17  ;;  %v687_v58 = vadd.f32 %v2698_v56, %v686_v33  ;;  %v2796_v61 = vpop.f32.mrf.mxu1  ;;  %vm1124_vm13 = vweird.f32 %v2345_v47 }
  0xd8   : > { %v1116_v55 = vsel %vm1113_vm12, %v1115_v48, %v1111_v51  ;;  %2348 = vrcp.f32 %v2788_v49  ;;  %v629_v53 = vpop.f32.mrf.mxu0  ;;  %vm1125_vm15 = vmor %vm1123_vm14, %vm1124_vm13  ;;  %v1142_v25 = vand.u32 2147483647, %v2788_v49  ;;  %v1144_v26 = vand.u32 2147483648, %v2788_v49 }
  0xd9   : > { %1825 = vst [vmem:[%s2744_s15 + $0x10] sm:$0xff] %v1116_v55  ;;  %v1120_v57 = vsub.f32 1.0, %v1119_v52  ;;  %2350 = vpow2.f32 %v2203_v46  ;;  %v630_v60 = vadd.f32 %v2698_v56, %v629_v53  ;;  %v821_v2 = vadd.f32 %v2752_v62, %v687_v58 }
  0xda   : > { %vm1138_vm3 = vweird.f32 %v2788_v49  ;;  %vm1143_vm5 = vcmp.eq.f32.partialorder %v1142_v25, 8.507059e+37  ;;  %v1145_v43 = vor.u32 1.1754944e-38, %v1144_v26 }
  0xdb   : > { %v1121_v63 = vmul.f32 %v2345_v47, %v1120_v57  ;;  %668 = vmatmul.bf16.gmra.mxu0 %v2028_v50  ;;  %728 = vmatmul.bf16.gmra.mxu2 %v2124_v24  ;;  %v764_v3 = vadd.f32 %v2732_v40, %v630_v60  ;;  %v2347_v6 = vpop.eup %2346  ;;  %v2227_v9 = vmul.f32 -1.442695, %v821_v2 }
  0xdc   : > { %v2805_v13 = vadd.f32 1.0, %v2347_v6 }
  0xdd   : > { %v1122_v8 = vadd.f32 %v2345_v47, %v1121_v63  ;;  %v2204_v62 = vmul.f32 -1.442695, %v764_v3  ;;  %2352 = vpow2.f32 %v2227_v9 }
  0xde   : > { %v2349_v11 = vpop.eup %2348  ;;  %v689_v14 = vpop.f32.mrf.mxu2  ;;  %2354 = vrcp.f32 %v2805_v13  ;;  %v1504_v24 = vand.u32 2147483648, %v2805_v13 }
  0xdf   : > { %v2351_v18 = vpop.eup %2350  ;;  %v1126_v40 = vsel %vm1125_vm15, %v2345_v47, %v1122_v8  ;;  %v1134_v19 = vmul.f32 %v2349_v11, %v2788_v49  ;;  %2356 = vpow2.f32 %v2204_v62  ;;  %v690_v27 = vadd.f32 %v2698_v56, %v689_v14  ;;  %v2818_v29 = vpop.f32.mrf.mxu1 }
  0xe0   : > { %v1131_v17 = vsel %vm1128_vm1, %v1130_v12, %v1126_v40  ;;  %v631_v20 = vpop.f32.mrf.mxu0  ;;  %v2811_v7 = vadd.f32 1.0, %v2351_v18  ;;  %vm1139_vm2 = vweird.f32 %v2349_v11  ;;  %v2828_v47 = vpop.f32.mrf.mxu3  ;;  %v1502_v49 = vand.u32 2147483647, %v2805_v13 }
  0xe1   : > { %1826 = vst [vmem:[%s2744_s15 + $0x18] sm:$0xff] %v1131_v17  ;;  %v1135_v21 = vsub.f32 1.0, %v1134_v19  ;;  %v632_v28 = vadd.f32 %v2698_v56, %v631_v20  ;;  %v824_v36 = vadd.f32 %v2778_v34, %v690_v27  ;;  %2186 = vmatmul.msk.bf16.gmra.mxu1 %vm529_vm0, %v2048_v22  ;;  %vm1140_vm4 = vmor %vm1138_vm3, %vm1139_vm2  ;;  %vm1498_vm0 = vweird.f32 %v2805_v13 }
  0xe2   : > { %2358 = vrcp.f32 %v2811_v7  ;;  %v1157_v51 = vand.u32 2147483647, %v2811_v7  ;;  %v1159_v57 = vand.u32 2147483648, %v2811_v7  ;;  %vm2843_vm7 = vcmp.eq.f32.partialorder %v1502_v49, 8.507059e+37 }
  0xe3   : > { %v1136_v35 = vmul.f32 %v2349_v11, %v1135_v21  ;;  %v766_v37 = vadd.f32 %v2759_v5, %v632_v28  ;;  %v2353_v38 = vpop.eup %2352  ;;  %v2228_v45 = vmul.f32 -1.442695, %v824_v36  ;;  %v1505_v2 = vor.u32 1.1754944e-38, %v1504_v24 }
  0xe4   : > { %v2355_v42 = vpop.eup %2354  ;;  %v2826_v44 = vadd.f32 1.0, %v2353_v38  ;;  %vm1153_vm8 = vweird.f32 %v2811_v7  ;;  %vm2850_vm9 = vcmp.eq.f32.partialorder %v1157_v51, 8.507059e+37  ;;  %v1160_v10 = vor.u32 1.1754944e-38, %v1159_v57 }
  0xe5   : > { %v1137_v39 = vadd.f32 %v2349_v11, %v1136_v35  ;;  %v2357_v34 = vpop.eup %2356  ;;  %v1494_v48 = vmul.f32 %v2355_v42, %v2805_v13  ;;  %v2205_v33 = vmul.f32 -1.442695, %v766_v37  ;;  %vm1499_vm6 = vweird.f32 %v2355_v42 }
  0xe6   : > { %v691_v46 = vpop.f32.mrf.mxu2  ;;  %2360 = vrcp.f32 %v2826_v44  ;;  %v2837_v58 = vadd.f32 1.0, %v2357_v34  ;;  %vm1500_vm10 = vmor %vm1498_vm0, %vm1499_vm6  ;;  %v1517_v14 = vand.u32 2147483647, %v2826_v44  ;;  %v1519_v20 = vand.u32 2147483648, %v2826_v44 }
  0xe7   : > { %v1141_v5 = vsel %vm1140_vm4, %v2349_v11, %v1137_v39  ;;  %v1495_v53 = vsub.f32 1.0, %v1494_v48  ;;  %2362 = vpow2.f32 %v2228_v45  ;;  %v2841_v60 = vpop.f32.mrf.mxu1  ;;  %v692_v6 = vadd.f32 %v2698_v56, %v691_v46 }
  0xe8   : > { %v1146_v50 = vsel %vm1143_vm5, %v1145_v43, %v1141_v5  ;;  %v634_v52 = vpop.f32.mrf.mxu0  ;;  %v2359_v55 = vpop.eup %2358  ;;  %2364 = vpow2.f32 %v2205_v33  ;;  %v1172_v25 = vand.u32 2147483647, %v2837_v58  ;;  %v1174_v31 = vand.u32 2147483648, %v2837_v58 }
  0xe9   : > { %1827 = vst [vmem:[%s2744_s15 + $0x20] sm:$0xff] %v1146_v50  ;;  %v1149_v59 = vmul.f32 %v2359_v55, %v2811_v7  ;;  %v1496_v63 = vmul.f32 %v2355_v42, %v1495_v53  ;;  %2366 = vrcp.f32 %v2837_v58  ;;  %v635_v11 = vadd.f32 %v2698_v56, %v634_v52 }
  0xea   : > { %vm1154_vm11 = vweird.f32 %v2359_v55  ;;  %v826_v15 = vadd.f32 %v2801_v4, %v692_v6  ;;  %v2867_v4 = vpop.f32.mrf.mxu3  ;;  %vm1513_vm14 = vweird.f32 %v2826_v44  ;;  %vm1518_vm15 = vcmp.eq.f32.partialorder %v1517_v14, 8.507059e+37 }
  0xeb   : > { %733 = vmatmul.bf16.gmra.mxu2 %v2132_v41  ;;  %v1150_v3 = vsub.f32 1.0, %v1149_v59  ;;  %v1497_v8 = vadd.f32 %v2355_v42, %v1496_v63  ;;  %v769_v21 = vadd.f32 %v2776_v32, %v635_v11  ;;  %vm1155_vm12 = vmor %vm1153_vm8, %vm1154_vm11  ;;  %v1520_v34 = vor.u32 1.1754944e-38, %v1519_v20 }
  0xec   : > { %v2361_v12 = vpop.eup %2360  ;;  %v2229_v36 = vmul.f32 -1.442695, %v826_v15  ;;  %vm1168_vm1 = vweird.f32 %v2837_v58  ;;  %vm2888_vm4 = vcmp.eq.f32.partialorder %v1172_v25, 8.507059e+37 }
  0xed   : > { %v1151_v62 = vmul.f32 %v2359_v55, %v1150_v3  ;;  %v2363_v40 = vpop.eup %2362  ;;  %v1501_v19 = vsel %vm1500_vm10, %v2355_v42, %v1497_v8  ;;  %v1509_v17 = vmul.f32 %v2361_v12, %v2826_v44  ;;  %vm1514_vm13 = vweird.f32 %v2361_v12 }
  0xee   : > { %v694_v18 = vpop.f32.mrf.mxu2  ;;  %v2365_v22 = vpop.eup %2364  ;;  %v1506_v13 = vsel %vm2843_vm7, %v1505_v2, %v1501_v19  ;;  %v2865_v26 = vadd.f32 1.0, %v2363_v40  ;;  %v2206_v43 = vmul.f32 -1.442695, %v769_v21  ;;  %vm1515_vm2 = vmor %vm1513_vm14, %vm1514_vm13  ;;  %v1175_v44 = vor.u32 1.1754944e-38, %v1174_v31 }
  0xef   : > { %v1152_v23 = vadd.f32 %v2359_v55, %v1151_v62  ;;  %v2367_v28 = vpop.eup %2366  ;;  %1851 = vst [vmem:[%s2744_s15 + $0xe0] sm:$0xff] %v1506_v13  ;;  %v1510_v32 = vsub.f32 1.0, %v1509_v17  ;;  %v2874_v35 = vadd.f32 1.0, %v2365_v22  ;;  %v695_v39 = vadd.f32 %v2698_v56, %v694_v18  ;;  %v2879_v41 = vpop.f32.mrf.mxu1 }
  0xf0   : > { %v636_v27 = vpop.f32.mrf.mxu0  ;;  %v1164_v38 = vmul.f32 %v2367_v28, %v2837_v58  ;;  %2368 = vrcp.f32 %v2865_v26  ;;  %vm1169_vm3 = vweird.f32 %v2367_v28  ;;  %vm1528_vm0 = vweird.f32 %v2865_v26 }
  0xf1   : > { %v1156_v37 = vsel %vm1155_vm12, %v2359_v55, %v1152_v23  ;;  %v1511_v7 = vmul.f32 %v2361_v12, %v1510_v32  ;;  %2370 = vrcp.f32 %v2874_v35  ;;  %v829_v48 = vadd.f32 %v2828_v47, %v695_v39  ;;  %vm1170_vm5 = vmor %vm1168_vm1, %vm1169_vm3 }
  0xf2   : > { %v1161_v42 = vsel %vm2850_vm9, %v1160_v10, %v1156_v37  ;;  %v1165_v45 = vsub.f32 1.0, %v1164_v38  ;;  %2372 = vpow2.f32 %v2229_v36  ;;  %v637_v53 = vadd.f32 %v2698_v56, %v636_v27  ;;  %v2903_v8 = vpop.f32.mrf.mxu3 }
  0xf3   : > { %1828 = vst [vmem:[%s2744_s15 + $0x28] sm:$0xff] %v1161_v42  ;;  %v1512_v46 = vadd.f32 %v2361_v12, %v1511_v7  ;;  %2374 = vpow2.f32 %v2206_v43  ;;  %v2230_v55 = vmul.f32 -1.442695, %v829_v48  ;;  %v1532_v3 = vand.u32 2147483647, %v2865_v26 }
  0xf4   : > { %v1166_v5 = vmul.f32 %v2367_v28, %v1165_v45  ;;  %v771_v6 = vadd.f32 %v2796_v61, %v637_v53  ;;  %v1534_v11 = vand.u32 2147483648, %v2865_v26  ;;  %v1187_v14 = vand.u32 2147483647, %v2874_v35 }
  0xf5   : > { %v1516_v33 = vsel %vm1515_vm2, %v2361_v12, %v1512_v46  ;;  %2376 = vpow2.f32 %v2230_v55  ;;  %v1189_v21 = vand.u32 2147483648, %v2874_v35  ;;  %vm1183_vm9 = vweird.f32 %v2874_v35 }
  0xf6   : > { %v696_v49 = vpop.f32.mrf.mxu2  ;;  %v2369_v24 = vpop.eup %2368  ;;  %v1521_v51 = vsel %vm1518_vm15, %v1520_v34, %v1516_v33  ;;  %v1167_v52 = vadd.f32 %v2367_v28, %v1166_v5  ;;  %v2207_v15 = vmul.f32 -1.442695, %v771_v6  ;;  %vm1533_vm10 = vcmp.eq.f32.partialorder %v1532_v3, 8.507059e+37 }
  0xf7   : > { %1852 = vst [vmem:[%s2744_s15 + $0xe8] sm:$0xff] %v1521_v51  ;;  %v1524_v47 = vmul.f32 %v2369_v24, %v2865_v26  ;;  %v697_v59 = vadd.f32 %v2698_v56, %v696_v49  ;;  %v2371_v0 = vpop.eup %2370  ;;  %v2905_v58 = vpop.f32.mrf.mxu1  ;;  %vm1529_vm6 = vweird.f32 %v2369_v24  ;;  %v1190_v38 = vor.u32 1.1754944e-38, %v1189_v21 }
  0xf8   : > { %v639_v57 = vpop.f32.mrf.mxu0  ;;  %v1171_v2 = vsel %vm1170_vm5, %v2367_v28, %v1167_v52  ;;  %v1179_v12 = vmul.f32 %v2371_v0, %v2874_v35  ;;  %v2373_v62 = vpop.eup %2372  ;;  %vm1184_vm7 = vweird.f32 %v2371_v0  ;;  %2378 = vpow2.f32 %v2207_v15  ;;  %vm1530_vm8 = vmor %vm1528_vm0, %vm1529_vm6 }
  0xf9   : > { %v640_v63 = vadd.f32 %v2698_v56, %v639_v57  ;;  %v1176_v9 = vsel %vm2888_vm4, %v1175_v44, %v1171_v2  ;;  %v1525_v10 = vsub.f32 1.0, %v1524_v47  ;;  %v831_v61 = vadd.f32 %v2867_v4, %v697_v59  ;;  %v2375_v18 = vpop.eup %2374  ;;  %vm1185_vm11 = vmor %vm1183_vm9, %vm1184_vm7 }
  0xfa   : > { %1829 = vst [vmem:[%s2744_s15 + $0x30] sm:$0xff] %v1176_v9  ;;  %v1180_v19 = vsub.f32 1.0, %v1179_v12  ;;  %v2914_v17 = vadd.f32 1.0, %v2373_v62  ;;  %v2918_v22 = vadd.f32 1.0, %v2375_v18  ;;  %v1535_v28 = vor.u32 1.1754944e-38, %v1534_v11  ;;  %v2936_v34 = vpop.f32.mrf.mxu3 }
  0xfb   : > { %v1526_v40 = vmul.f32 %v2369_v24, %v1525_v10  ;;  %v774_v20 = vadd.f32 %v2818_v29, %v640_v63  ;;  %v2231_v27 = vmul.f32 -1.442695, %v831_v61  ;;  %v2377_v4 = vpop.eup %2376  ;;  %vm1188_vm12 = vcmp.eq.f32.partialorder %v1187_v14, 8.507059e+37 }
  0xfc   : > { %v1181_v25 = vmul.f32 %v2371_v0, %v1180_v19  ;;  %2380 = vrcp.f32 %v2914_v17  ;;  %v2927_v39 = vadd.f32 1.0, %v2377_v4  ;;  %v1547_v35 = vand.u32 2147483647, %v2914_v17 }
  0xfd   : > { %v1527_v23 = vadd.f32 %v2369_v24, %v1526_v40  ;;  %2382 = vrcp.f32 %v2918_v22  ;;  %v2208_v36 = vmul.f32 -1.442695, %v774_v20  ;;  %v1549_v45 = vand.u32 2147483648, %v2914_v17 }
  0xfe   : > { %v699_v13 = vpop.f32.mrf.mxu2  ;;  %v1182_v31 = vadd.f32 %v2371_v0, %v1181_v25  ;;  %2384 = vpow2.f32 %v2231_v27  ;;  %v2379_v7 = vpop.eup %2378  ;;  %v1202_v46 = vand.u32 2147483647, %v2918_v22  ;;  %v1204_v48 = vand.u32 2147483648, %v2918_v22 }
  0xff   : > { %v1531_v32 = vsel %vm1530_vm8, %v2369_v24, %v1527_v23  ;;  %v2929_v42 = vpop.f32.mrf.mxu1  ;;  %2386 = vrcp.f32 %v2927_v39  ;;  %v2940_v49 = vadd.f32 1.0, %v2379_v7  ;;  %v700_v33 = vadd.f32 %v2698_v56, %v699_v13 }
 0x100   : > { %v641_v29 = vpop.f32.mrf.mxu0  ;;  %v1536_v37 = vsel %vm1533_vm10, %v1535_v28, %v1531_v32  ;;  %v1186_v26 = vsel %vm1185_vm11, %v2371_v0, %v1182_v31  ;;  %2388 = vpow2.f32 %v2208_v36  ;;  %vm1543_vm13 = vweird.f32 %v2914_v17 }
 0x101   : > { %1853 = vst [vmem:[%s2744_s15 + $0xf0] sm:$0xff] %v1536_v37  ;;  %v1191_v43 = vsel %vm1188_vm12, %v1190_v38, %v1186_v26  ;;  %vm1198_vm14 = vweird.f32 %v2918_v22  ;;  %v1562_v52 = vand.u32 2147483647, %v2927_v39  ;;  %v1564_v55 = vand.u32 2147483648, %v2927_v39 }
 0x102   : > { %v2381_v5 = vpop.eup %2380  ;;  %1830 = vst [vmem:[%s2744_s15 + $0x38] sm:$0xff] %v1191_v43  ;;  %2390 = vrcp.f32 %v2940_v49  ;;  %vm2950_vm15 = vcmp.eq.f32.partialorder %v1547_v35, 8.507059e+37  ;;  %v1550_v47 = vor.u32 1.1754944e-38, %v1549_v45  ;;  %vm2954_vm1 = vcmp.eq.f32.partialorder %v1202_v46, 8.507059e+37 }
 0x103   : > { %v2383_v50 = vpop.eup %2382  ;;  %v1539_v44 = vmul.f32 %v2381_v5, %v2914_v17  ;;  %v1205_v3 = vor.u32 1.1754944e-38, %v1204_v48  ;;  %vm1558_vm2 = vweird.f32 %v2927_v39  ;;  %v834_v6 = vadd.f32 %v2903_v8, %v700_v33  ;;  %v838_v17 = vpop.f32.mrf.mxu3 }
 0x104   : > { %v1194_v51 = vmul.f32 %v2383_v50, %v2918_v22  ;;  %v2385_v0 = vpop.eup %2384  ;;  %vm1544_vm3 = vweird.f32 %v2381_v5  ;;  %v642_v12 = vadd.f32 %v2698_v56, %v641_v29  ;;  %vm1199_vm4 = vweird.f32 %v2383_v50 }
 0x105   : > { %v1540_v53 = vsub.f32 1.0, %v1539_v44  ;;  %v2387_v9 = vpop.eup %2386  ;;  %v2960_v11 = vadd.f32 1.0, %v2385_v0  ;;  %vm2966_vm5 = vcmp.eq.f32.partialorder %v1562_v52, 8.507059e+37  ;;  %v1565_v40 = vor.u32 1.1754944e-38, %v1564_v55  ;;  %vm1545_vm6 = vmor %vm1543_vm13, %vm1544_vm3 }
 0x106   : > { %v701_v24 = vpop.f32.mrf.mxu2  ;;  %v1195_v2 = vsub.f32 1.0, %v1194_v51  ;;  %v2389_v14 = vpop.eup %2388  ;;  %v1554_v61 = vmul.f32 %v2387_v9, %v2927_v39  ;;  %vm1213_vm0 = vweird.f32 %v2940_v49  ;;  %v1217_v19 = vand.u32 2147483647, %v2940_v49  ;;  %vm1200_vm7 = vmor %vm1198_vm14, %vm1199_vm4 }
 0x107   : > { %v1541_v10 = vmul.f32 %v2381_v5, %v1540_v53  ;;  %v2963_v62 = vpop.f32.mrf.mxu1  ;;  %v1219_v20 = vand.u32 2147483648, %v2940_v49  ;;  %2392 = vrcp.f32 %v2960_v11  ;;  %v2977_v25 = vadd.f32 1.0, %v2389_v14 }
 0x108   : > { %v644_v63 = vpop.f32.mrf.mxu0  ;;  %v1196_v15 = vmul.f32 %v2383_v50, %v1195_v2  ;;  %v2391_v21 = vpop.eup %2390  ;;  %v1555_v23 = vsub.f32 1.0, %v1554_v61  ;;  %v2232_v27 = vmul.f32 -1.442695, %v834_v6  ;;  %v776_v29 = vadd.f32 %v2841_v60, %v642_v12 }
 0x109   : > { %v1542_v8 = vadd.f32 %v2381_v5, %v1541_v10  ;;  %v1209_v28 = vmul.f32 %v2391_v21, %v2940_v49  ;;  %v702_v32 = vadd.f32 %v2698_v56, %v701_v24  ;;  %vm1559_vm8 = vweird.f32 %v2387_v9 }
 0x10a   : > { %v1197_v13 = vadd.f32 %v2383_v50, %v1196_v15  ;;  %v1556_v38 = vmul.f32 %v2387_v9, %v1555_v23  ;;  %v1577_v35 = vand.u32 2147483647, %v2960_v11  ;;  %2394 = vrcp.f32 %v2977_v25  ;;  %vm1560_vm10 = vmor %vm1558_vm2, %vm1559_vm8 }
 0x10b   : > { %v1546_v4 = vsel %vm1545_vm6, %v2381_v5, %v1542_v8  ;;  %v1210_v26 = vsub.f32 1.0, %v1209_v28  ;;  %vm1214_vm9 = vweird.f32 %v2391_v21  ;;  %v1579_v43 = vand.u32 2147483648, %v2960_v11  ;;  %v840_v61 = vpop.f32.mrf.mxu3 }
 0x10c   : > { %v1551_v36 = vsel %vm2950_vm15, %v1550_v47, %v1546_v4  ;;  %v1201_v37 = vsel %vm1200_vm7, %v2383_v50, %v1197_v13  ;;  %v1557_v7 = vadd.f32 %v2387_v9, %v1556_v38  ;;  %2396 = vpow2.f32 %v2232_v27  ;;  %vm1215_vm13 = vmor %vm1213_vm0, %vm1214_vm9 }
 0x10d   : > { %1854 = vst [vmem:[%s2744_s15 + $0xf8] sm:$0xff] %v1551_v36  ;;  %v1206_v22 = vsel %vm2954_vm1, %v1205_v3, %v1201_v37  ;;  %v2393_v45 = vpop.eup %2392  ;;  %v1211_v46 = vmul.f32 %v2391_v21, %v1210_v26  ;;  %v2209_v5 = vmul.f32 -1.442695, %v776_v29  ;;  %v836_v48 = vadd.f32 %v2936_v34, %v702_v32 }
 0x10e   : > { %v704_v31 = vpop.f32.mrf.mxu2  ;;  %1831 = vst [vmem:[%s2744_s15 + $0x40] sm:$0xff] %v1206_v22  ;;  %v645_v33 = vadd.f32 %v2698_v56, %v644_v63  ;;  %v1561_v44 = vsel %vm1560_vm10, %v2387_v9, %v1557_v7  ;;  %vm3000_vm11 = vcmp.eq.f32.partialorder %v1217_v19, 8.507059e+37  ;;  %v1220_v51 = vor.u32 1.1754944e-38, %v1219_v20 }
 0x10f   : > { %v2998_v50 = vpop.f32.mrf.mxu1  ;;  %v1569_v52 = vmul.f32 %v2393_v45, %v2960_v11  ;;  %v1566_v39 = vsel %vm2966_vm5, %v1565_v40, %v1561_v44  ;;  %v1212_v55 = vadd.f32 %v2391_v21, %v1211_v46  ;;  %vm1573_vm12 = vweird.f32 %v2960_v11 }
 0x110   : > { %v646_v60 = vpop.f32.mrf.mxu0  ;;  %2398 = vpow2.f32 %v2209_v5  ;;  %1855 = vst [vmem:[%s2744_s15 + $0x100] sm:$0xff] %v1566_v39  ;;  %v2233_v53 = vmul.f32 -1.442695, %v836_v48  ;;  %v779_v57 = vadd.f32 %v2879_v41, %v645_v33  ;;  %v705_v47 = vadd.f32 %v2698_v56, %v704_v31  ;;  %v2395_v59 = vpop.eup %2394  ;;  %v3054_v33 = vld [vmem:[%s3624_s2] ss:$0 sm:$0xff] }
 0x111   : > { %v1570_v34 = vsub.f32 1.0, %v1569_v52  ;;  %v1216_v63 = vsel %vm1215_vm13, %v2391_v21, %v1212_v55  ;;  %vm3014_vm14 = vcmp.eq.f32.partialorder %v1577_v35, 8.507059e+37  ;;  %v1580_v2 = vor.u32 1.1754944e-38, %v1579_v43 }
 0x112   : > { %v647_v3 = vadd.f32 %v2698_v56, %v646_v60  ;;  %v2397_v9 = vpop.eup %2396  ;;  %v1221_v49 = vsel %vm3000_vm11, %v1220_v51, %v1216_v63  ;;  %vm1574_vm15 = vweird.f32 %v2393_v45  ;;  %v1224_v41 = vmul.f32 %v2395_v59, %v2977_v25 }
 0x113   : > { %v1571_v10 = vmul.f32 %v2393_v45, %v1570_v34  ;;  %1832 = vst [vmem:[%s2744_s15 + $0x48] sm:$0xff] %v1221_v49  ;;  %v3023_v12 = vadd.f32 1.0, %v2397_v9  ;;  %2400 = vpow2.f32 %v2233_v53  ;;  %v2210_v14 = vmul.f32 -1.442695, %v779_v57  ;;  %vm1575_vm1 = vmor %vm1573_vm12, %vm1574_vm15  ;;  %v843_v52 = vpop.f32.mrf.mxu3 }
 0x114   : > { %v839_v15 = vadd.f32 %v838_v17, %v705_v47  ;;  %v1225_v8 = vsub.f32 1.0, %v1224_v41  ;;  %v1232_v19 = vand.u32 2147483647, %v2977_v25  ;;  %v1234_v20 = vand.u32 2147483648, %v2977_v25 }
 0x115   : > { %v1572_v40 = vadd.f32 %v2393_v45, %v1571_v10  ;;  %vm1229_vm2 = vweird.f32 %v2395_v59  ;;  %2402 = vrcp.f32 %v3023_v12  ;;  %v781_v13 = vadd.f32 %v2905_v58, %v647_v3 }
 0x116   : > { %v706_v6 = vpop.f32.mrf.mxu2  ;;  %v2399_v21 = vpop.eup %2398  ;;  %v1226_v4 = vmul.f32 %v2395_v59, %v1225_v8  ;;  %2404 = vpow2.f32 %v2210_v14  ;;  %v2234_v17 = vmul.f32 -1.442695, %v839_v15  ;;  %vm1228_vm3 = vweird.f32 %v2977_v25 }
 0x117   : > { %v707_v23 = vadd.f32 %v2698_v56, %v706_v6  ;;  %v1576_v27 = vsel %vm1575_vm1, %v2393_v45, %v1572_v40  ;;  %v3032_v28 = vadd.f32 1.0, %v2399_v21  ;;  %v3034_v29 = vpop.f32.mrf.mxu1  ;;  %vm1233_vm4 = vcmp.eq.f32.partialorder %v1232_v19, 8.507059e+37  ;;  %vm1230_vm5 = vmor %vm1228_vm3, %vm1229_vm2 }
 0x118   : > { %v649_v18 = vpop.f32.mrf.mxu0  ;;  %v1581_v32 = vsel %vm3014_vm14, %v1580_v2, %v1576_v27  ;;  %v1227_v11 = vadd.f32 %v2395_v59, %v1226_v4  ;;  %v1235_v56 = vor.u32 1.1754944e-38, %v1234_v20  ;;  %v2211_v31 = vmul.f32 -1.442695, %v781_v13 }
 0x119   : > { %1856 = vst [vmem:[%s2744_s15 + $0x108] sm:$0xff] %v1581_v32  ;;  %2406 = vrcp.f32 %v3032_v28  ;;  %v2401_v58 = vpop.eup %2400  ;;  %v841_v36 = vadd.f32 %v840_v61, %v707_v23  ;;  %v1592_v22 = vand.u32 2147483647, %v3023_v12  ;;  %v1594_v26 = vand.u32 2147483648, %v3023_v12 }
 0x11a   : > { %2408 = vpow2.f32 %v2234_v17  ;;  %v1231_v38 = vsel %vm1230_vm5, %v2395_v59, %v1227_v11  ;;  %v3044_v35 = vadd.f32 1.0, %v2401_v58  ;;  %v1247_v7 = vand.u32 2147483647, %v3032_v28 }
 0x11b   : > { %v2403_v25 = vpop.eup %2402  ;;  %v1236_v60 = vsel %vm1233_vm4, %v1235_v56, %v1231_v38  ;;  %2410 = vpow2.f32 %v2211_v31  ;;  %v2235_v43 = vmul.f32 -1.442695, %v841_v36  ;;  %v1249_v48 = vand.u32 2147483648, %v3032_v28  ;;  %v845_v38 = vpop.f32.mrf.mxu3 }
 0x11c   : > { %v2405_v46 = vpop.eup %2404  ;;  %1833 = vst [vmem:[%s2744_s15 + $0x50] sm:$0xff] %v1236_v60  ;;  %v1584_v5 = vmul.f32 %v2403_v25, %v3023_v12  ;;  %2412 = vrcp.f32 %v3044_v35  ;;  %v3058_v44 = vadd.f32 %v3054_v33, %v2702_v1  ;;  %vm1588_vm0 = vweird.f32 %v3023_v12 }
 0x11d   : > { %v3061_v24 = vadd.f32 1.0, %v2405_v46  ;;  %v650_v51 = vadd.f32 %v3054_v33, %v649_v18  ;;  %vm3064_vm6 = vcmp.eq.f32.partialorder %v1592_v22, 8.507059e+37  ;;  %v1595_v53 = vor.u32 1.1754944e-38, %v1594_v26 }
 0x11e   : > { %v709_v37 = vpop.f32.mrf.mxu2  ;;  %v1585_v55 = vsub.f32 1.0, %v1584_v5  ;;  %vm1243_vm7 = vweird.f32 %v3032_v28  ;;  %vm3070_vm8 = vcmp.eq.f32.partialorder %v1247_v7, 8.507059e+37  ;;  %v1607_v59 = vand.u32 2147483647, %v3044_v35 }
 0x11f   : > { %v2407_v39 = vpop.eup %2406  ;;  %2414 = vpow2.f32 %v2235_v43  ;;  %vm1589_vm9 = vweird.f32 %v2403_v25  ;;  %v1250_v0 = vor.u32 1.1754944e-38, %v1249_v48  ;;  %v3076_v2 = vpop.f32.mrf.mxu1  ;;  %vm1603_vm10 = vweird.f32 %v3044_v35 }
 0x120   : > { %v651_v45 = vpop.f32.mrf.mxu0  ;;  %v2409_v57 = vpop.eup %2408  ;;  %v1239_v1 = vmul.f32 %v2407_v39, %v3032_v28  ;;  %v1586_v63 = vmul.f32 %v2403_v25, %v1585_v55  ;;  %2416 = vrcp.f32 %v3061_v24  ;;  %v1609_v9 = vand.u32 2147483648, %v3044_v35  ;;  %vm1590_vm11 = vmor %vm1588_vm0, %vm1589_vm9 }
 0x121   : > { %v2411_v3 = vpop.eup %2410  ;;  %v3080_v49 = vadd.f32 1.0, %v2409_v57  ;;  %v784_v10 = vadd.f32 %v2929_v42, %v650_v51  ;;  %v710_v61 = vadd.f32 %v3054_v33, %v709_v37  ;;  %v652_v18 = vadd.f32 %v3054_v33, %v651_v45 }
 0x122   : > { %v1240_v6 = vsub.f32 1.0, %v1239_v1  ;;  %v2413_v41 = vpop.eup %2412  ;;  %v1587_v14 = vadd.f32 %v2403_v25, %v1586_v63  ;;  %v3083_v15 = vadd.f32 1.0, %v2411_v3  ;;  %vm1244_vm12 = vweird.f32 %v2407_v39 }
 0x123   : > { %v1599_v19 = vmul.f32 %v2413_v41, %v3044_v35  ;;  %vm3091_vm13 = vcmp.eq.f32.partialorder %v1607_v59, 8.507059e+37  ;;  %v1262_v13 = vand.u32 2147483647, %v3061_v24  ;;  %v1264_v23 = vand.u32 2147483648, %v3061_v24  ;;  %vm1245_vm14 = vmor %vm1243_vm7, %vm1244_vm12 }
 0x124   : > { %v1241_v8 = vmul.f32 %v2407_v39, %v1240_v6  ;;  %v1591_v21 = vsel %vm1590_vm11, %v2403_v25, %v1587_v14  ;;  %2418 = vrcp.f32 %v3080_v49  ;;  %v2212_v17 = vmul.f32 -1.442695, %v784_v10 }
 0x125   : > { %v2415_v12 = vpop.eup %2414  ;;  %v1596_v27 = vsel %vm3064_vm6, %v1595_v53, %v1591_v21  ;;  %v1600_v32 = vsub.f32 1.0, %v1599_v19  ;;  %v1610_v58 = vor.u32 1.1754944e-38, %v1609_v9  ;;  %vm1258_vm15 = vweird.f32 %v3061_v24  ;;  %v848_v21 = vpop.f32.mrf.mxu3 }
 0x126   : > { %v711_v40 = vpop.f32.mrf.mxu2  ;;  %v1242_v4 = vadd.f32 %v2407_v39, %v1241_v8  ;;  %v2417_v11 = vpop.eup %2416  ;;  %1857 = vst [vmem:[%s2744_s15 + $0x110] sm:$0xff] %v1596_v27  ;;  %2420 = vrcp.f32 %v3083_v15  ;;  %v844_v56 = vadd.f32 %v843_v52, %v710_v61  ;;  %vm1604_vm1 = vweird.f32 %v2413_v41 }
 0x127   : > { %v1601_v36 = vmul.f32 %v2413_v41, %v1600_v32  ;;  %v1254_v37 = vmul.f32 %v2417_v11, %v3061_v24  ;;  %vm3111_vm2 = vcmp.eq.f32.partialorder %v1262_v13, 8.507059e+37  ;;  %v1265_v28 = vor.u32 1.1754944e-38, %v1264_v23  ;;  %vm1605_vm4 = vmor %vm1603_vm10, %vm1604_vm1  ;;  %v3124_v51 = vpop.f32.mrf.mxu1 }
 0x128   : > { %v3095_v20 = vpop.f32.mrf.mxu0  ;;  %v1246_v31 = vsel %vm1245_vm14, %v2407_v39, %v1242_v4  ;;  %v1622_v25 = vand.u32 2147483647, %v3080_v49  ;;  %vm1618_vm3 = vweird.f32 %v3080_v49  ;;  %v3118_v43 = vadd.f32 1.0, %v2415_v12 }
 0x129   : > { %v1251_v22 = vsel %vm3070_vm8, %v1250_v0, %v1246_v31  ;;  %v1602_v60 = vadd.f32 %v2413_v41, %v1601_v36  ;;  %v1255_v7 = vsub.f32 1.0, %v1254_v37  ;;  %2422 = vpow2.f32 %v2212_v17 }
 0x12a   : > { %1834 = vst [vmem:[%s2744_s15 + $0x58] sm:$0xff] %v1251_v22  ;;  %v2419_v45 = vpop.eup %2418  ;;  %vm1259_vm5 = vweird.f32 %v2417_v11  ;;  %v1624_v46 = vand.u32 2147483648, %v3080_v49  ;;  %v2236_v5 = vmul.f32 -1.442695, %v844_v56  ;;  %v786_v48 = vadd.f32 %v2963_v62, %v652_v18 }
 0x12b   : > { %v1606_v52 = vsel %vm1605_vm4, %v2413_v41, %v1602_v60  ;;  %v1256_v39 = vmul.f32 %v2417_v11, %v1255_v7  ;;  %v1614_v55 = vmul.f32 %v2419_v45, %v3080_v49  ;;  %v712_v34 = vadd.f32 %v3054_v33, %v711_v40  ;;  %vm1260_vm7 = vmor %vm1258_vm15, %vm1259_vm5 }
 0x12c   : > { %v2421_v53 = vpop.eup %2420  ;;  %v1611_v35 = vsel %vm3091_vm13, %v1610_v58, %v1606_v52  ;;  %vm3130_vm0 = vcmp.eq.f32.partialorder %v1622_v25, 8.507059e+37  ;;  %vm1273_vm6 = vweird.f32 %v3083_v15  ;;  %2424 = vrcp.f32 %v3118_v43 }
 0x12d   : > { %1858 = vst [vmem:[%s2744_s15 + $0x118] sm:$0xff] %v1611_v35  ;;  %v1257_v1 = vadd.f32 %v2417_v11, %v1256_v39  ;;  %v1615_v47 = vsub.f32 1.0, %v1614_v55  ;;  %v1269_v59 = vmul.f32 %v2421_v53, %v3083_v15  ;;  %v1277_v63 = vand.u32 2147483647, %v3083_v15 }
 0x12e   : > { %v714_v62 = vpop.f32.mrf.mxu2  ;;  %vm1619_vm8 = vweird.f32 %v2419_v45  ;;  %v1279_v3 = vand.u32 2147483648, %v3083_v15  ;;  %2426 = vpow2.f32 %v2236_v5  ;;  %v2213_v6 = vmul.f32 -1.442695, %v786_v48 }
 0x12f   : > { %v2423_v9 = vpop.eup %2422  ;;  %v1261_v10 = vsel %vm1260_vm7, %v2417_v11, %v1257_v1  ;;  %v1616_v41 = vmul.f32 %v2419_v45, %v1615_v47  ;;  %v1270_v14 = vsub.f32 1.0, %v1269_v59  ;;  %v846_v61 = vadd.f32 %v845_v38, %v712_v34  ;;  %vm1620_vm10 = vmor %vm1618_vm3, %vm1619_vm8  ;;  %v3169_v31 = vpop.f32.mrf.mxu1 }
 0x130   : > { %v3139_v0 = vpop.f32.mrf.mxu0  ;;  %v1266_v18 = vsel %vm3111_vm2, %v1265_v28, %v1261_v10  ;;  %vm1274_vm9 = vweird.f32 %v2421_v53  ;;  %v3147_v40 = vadd.f32 1.0, %v2423_v9  ;;  %2428 = vpow2.f32 %v2213_v6 }
 0x131   : > { %1835 = vst [vmem:[%s2744_s15 + $0x60] sm:$0xff] %v1266_v18  ;;  %v1617_v24 = vadd.f32 %v2419_v45, %v1616_v41  ;;  %v1271_v8 = vmul.f32 %v2421_v53, %v1270_v14  ;;  %v2237_v19 = vmul.f32 -1.442695, %v846_v61  ;;  %v655_v42 = vadd.f32 %v3054_v33, %v3095_v20  ;;  %vm1275_vm12 = vmor %vm1273_vm6, %vm1274_vm9 }
 0x132   : > { %v2425_v13 = vpop.eup %2424  ;;  %v1625_v23 = vor.u32 1.1754944e-38, %v1624_v46  ;;  %vm3155_vm11 = vcmp.eq.f32.partialorder %v1277_v63, 8.507059e+37  ;;  %v1637_v27 = vand.u32 2147483647, %v3118_v43  ;;  %2430 = vrcp.f32 %v3147_v40 }
 0x133   : > { %v1621_v4 = vsel %vm1620_vm10, %v2419_v45, %v1617_v24  ;;  %v1272_v32 = vadd.f32 %v2421_v53, %v1271_v8  ;;  %v1629_v20 = vmul.f32 %v2425_v13, %v3118_v43  ;;  %v1639_v17 = vand.u32 2147483648, %v3118_v43 }
 0x134   : > { %v2427_v11 = vpop.eup %2426  ;;  %v1626_v49 = vsel %vm3130_vm0, %v1625_v23, %v1621_v4  ;;  %v1280_v58 = vor.u32 1.1754944e-38, %v1279_v3  ;;  %v1292_v56 = vand.u32 2147483647, %v3147_v40  ;;  %2432 = vpow2.f32 %v2237_v19  ;;  %v850_v3 = vpop.f32.mrf.mxu3 }
 0x135   : > { %1859 = vst [vmem:[%s2744_s15 + $0x120] sm:$0xff] %v1626_v49  ;;  %v1276_v36 = vsel %vm1275_vm12, %v2421_v53, %v1272_v32  ;;  %v1630_v37 = vsub.f32 1.0, %v1629_v20  ;;  %v3172_v38 = vadd.f32 1.0, %v2427_v11  ;;  %v789_v22 = vadd.f32 %v2998_v50, %v655_v42 }
 0x136   : > { %v2429_v26 = vpop.eup %2428  ;;  %v1281_v28 = vsel %vm3155_vm11, %v1280_v58, %v1276_v36  ;;  %vm1633_vm13 = vweird.f32 %v3118_v43  ;;  %vm3178_vm14 = vcmp.eq.f32.partialorder %v1637_v27, 8.507059e+37  ;;  %v715_v25 = vadd.f32 %v3054_v33, %v714_v62  ;;  %v716_v60 = vpop.f32.mrf.mxu2 }
 0x137   : > { %1836 = vst [vmem:[%s2744_s15 + $0x68] sm:$0xff] %v1281_v28  ;;  %v1631_v7 = vmul.f32 %v2425_v13, %v1630_v37  ;;  %vm1634_vm15 = vweird.f32 %v2425_v13  ;;  %v1640_v45 = vor.u32 1.1754944e-38, %v1639_v17  ;;  %2434 = vrcp.f32 %v3172_v38  ;;  %v3215_v8 = vpop.f32.mrf.mxu1 }
 0x138   : > { %v659_v50 = vpop.f32.mrf.mxu0  ;;  %v2431_v46 = vpop.eup %2430  ;;  %v1294_v5 = vand.u32 2147483648, %v3147_v40  ;;  %v3186_v48 = vadd.f32 1.0, %v2429_v26  ;;  %v2214_v52 = vmul.f32 -1.442695, %v789_v22  ;;  %v849_v39 = vadd.f32 %v848_v21, %v715_v25  ;;  %vm1635_vm3 = vmor %vm1633_vm13, %vm1634_vm15 }
 0x139   : > { %v1632_v55 = vadd.f32 %v2425_v13, %v1631_v7  ;;  %v1284_v34 = vmul.f32 %v2431_v46, %v3147_v40  ;;  %vm1288_vm1 = vweird.f32 %v3147_v40  ;;  %vm3190_vm2 = vcmp.eq.f32.partialorder %v1292_v56, 8.507059e+37 }
 0x13a   : > { %v2433_v35 = vpop.eup %2432  ;;  %v1652_v57 = vand.u32 2147483647, %v3172_v38  ;;  %v1654_v62 = vand.u32 2147483648, %v3172_v38  ;;  %2436 = vrcp.f32 %v3186_v48  ;;  %v657_v1 = vadd.f32 %v3054_v33, %v3139_v0 }
 0x13b   : > { %v1636_v47 = vsel %vm1635_vm3, %v2425_v13, %v1632_v55  ;;  %v1285_v59 = vsub.f32 1.0, %v1284_v34  ;;  %v3201_v63 = vadd.f32 1.0, %v2433_v35  ;;  %v717_v6 = vadd.f32 %v3054_v33, %v716_v60 }
 0x13c   : > { %v1641_v43 = vsel %vm3178_vm14, %v1640_v45, %v1636_v47  ;;  %v1295_v9 = vor.u32 1.1754944e-38, %v1294_v5  ;;  %2438 = vpow2.f32 %v2214_v52  ;;  %v2238_v10 = vmul.f32 -1.442695, %v849_v39 }
 0x13d   : > { %v2435_v41 = vpop.eup %2434  ;;  %1860 = vst [vmem:[%s2744_s15 + $0x128] sm:$0xff] %v1641_v43  ;;  %v1286_v14 = vmul.f32 %v2431_v46, %v1285_v59  ;;  %vm1289_vm4 = vweird.f32 %v2431_v46  ;;  %v1307_v61 = vand.u32 2147483647, %v3186_v48  ;;  %2440 = vrcp.f32 %v3201_v63 }
 0x13e   : > { %v1644_v0 = vmul.f32 %v2435_v41, %v3172_v38  ;;  %vm1648_vm5 = vweird.f32 %v3172_v38  ;;  %vm3211_vm0 = vcmp.eq.f32.partialorder %v1652_v57, 8.507059e+37  ;;  %v1655_v24 = vor.u32 1.1754944e-38, %v1654_v62  ;;  %vm1290_vm6 = vmor %vm1288_vm1, %vm1289_vm4  ;;  %v719_v4 = vpop.f32.mrf.mxu2 }
 0x13f   : > { %v1287_v19 = vadd.f32 %v2431_v46, %v1286_v14  ;;  %2442 = vpow2.f32 %v2238_v10  ;;  %v791_v42 = vadd.f32 %v3034_v29, %v657_v1  ;;  %v851_v21 = vadd.f32 %v850_v3, %v717_v6  ;;  %v3255_v35 = vpop.f32.mrf.mxu1 }
 0x140   : > { %v2437_v13 = vpop.eup %2436  ;;  %v1645_v23 = vsub.f32 1.0, %v1644_v0  ;;  %vm1303_vm7 = vweird.f32 %v3186_v48  ;;  %v1309_v12 = vand.u32 2147483648, %v3186_v48  ;;  %v660_v27 = vadd.f32 %v3054_v33, %v659_v50  ;;  %v3228_v11 = vpop.f32.mrf.mxu0 }
 0x141   : > { %v1291_v32 = vsel %vm1290_vm6, %v2431_v46, %v1287_v19  ;;  %v1299_v20 = vmul.f32 %v2437_v13, %v3186_v48  ;;  %vm3224_vm8 = vcmp.eq.f32.partialorder %v1307_v61, 8.507059e+37  ;;  %v2215_v29 = vmul.f32 -1.442695, %v791_v42  ;;  %v853_v50 = vpop.f32.mrf.mxu3 }
 0x142   : > { %v2439_v40 = vpop.eup %2438  ;;  %v1296_v49 = vsel %vm3190_vm2, %v1295_v9, %v1291_v32  ;;  %v1646_v58 = vmul.f32 %v2435_v41, %v1645_v23  ;;  %vm1649_vm9 = vweird.f32 %v2435_v41  ;;  %v2239_v56 = vmul.f32 -1.442695, %v851_v21 }
 0x143   : > { %v2441_v36 = vpop.eup %2440  ;;  %1837 = vst [vmem:[%s2744_s15 + $0x70] sm:$0xff] %v1296_v49  ;;  %v1300_v37 = vsub.f32 1.0, %v1299_v20  ;;  %v3233_v22 = vadd.f32 1.0, %v2439_v40  ;;  %2444 = vpow2.f32 %v2215_v29  ;;  %v794_v26 = vadd.f32 %v3076_v2, %v660_v27  ;;  %vm1650_vm10 = vmor %vm1648_vm5, %vm1649_vm9 }
 0x144   : > { %v1647_v28 = vadd.f32 %v2435_v41, %v1646_v58  ;;  %v1659_v15 = vmul.f32 %v2441_v36, %v3201_v63  ;;  %v1667_v25 = vand.u32 2147483647, %v3201_v63  ;;  %2446 = vpow2.f32 %v2239_v56 }
 0x145   : > { %v2443_v60 = vpop.eup %2442  ;;  %v1301_v7 = vmul.f32 %v2437_v13, %v1300_v37  ;;  %vm1304_vm11 = vweird.f32 %v2437_v13  ;;  %v1310_v45 = vor.u32 1.1754944e-38, %v1309_v12  ;;  %2448 = vrcp.f32 %v3233_v22 }
 0x146   : > { %v1651_v46 = vsel %vm1650_vm10, %v2435_v41, %v1647_v28  ;;  %v1660_v5 = vsub.f32 1.0, %v1659_v15  ;;  %vm1663_vm12 = vweird.f32 %v3201_v63  ;;  %v3242_v2 = vadd.f32 1.0, %v2443_v60  ;;  %vm1305_vm13 = vmor %vm1303_vm7, %vm1304_vm11  ;;  %v721_v9 = vpop.f32.mrf.mxu2 }
 0x147   : > { %v1656_v52 = vsel %vm3211_vm0, %v1655_v24, %v1651_v46  ;;  %v1302_v39 = vadd.f32 %v2437_v13, %v1301_v7  ;;  %v1669_v55 = vand.u32 2147483648, %v3201_v63  ;;  %v2216_v38 = vmul.f32 -1.442695, %v794_v26  ;;  %v3302_v60 = vpop.f32.mrf.mxu1 }
 0x148   : > { %1861 = vst [vmem:[%s2744_s15 + $0x130] sm:$0xff] %v1656_v52  ;;  %v1661_v34 = vmul.f32 %v2441_v36, %v1660_v5  ;;  %vm1664_vm14 = vweird.f32 %v2441_v36  ;;  %vm3250_vm15 = vcmp.eq.f32.partialorder %v1667_v25, 8.507059e+37  ;;  %2450 = vrcp.f32 %v3242_v2  ;;  %v3272_v18 = vpop.f32.mrf.mxu0 }
 0x149   : > { %v2445_v57 = vpop.eup %2444  ;;  %v1306_v62 = vsel %vm1305_vm13, %v2437_v13, %v1302_v39  ;;  %v1322_v1 = vand.u32 2147483647, %v3233_v22  ;;  %2452 = vpow2.f32 %v2216_v38  ;;  %v720_v47 = vadd.f32 %v3054_v33, %v719_v4  ;;  %vm1665_vm1 = vmor %vm1663_vm12, %vm1664_vm14  ;;  %v855_v40 = vpop.f32.mrf.mxu3 }
 0x14a   : > { %v2447_v48 = vpop.eup %2446  ;;  %v1311_v59 = vsel %vm3224_vm8, %v1310_v45, %v1306_v62  ;;  %v1662_v3 = vadd.f32 %v2441_v36, %v1661_v34  ;;  %v1324_v6 = vand.u32 2147483648, %v3233_v22  ;;  %v3262_v43 = vadd.f32 1.0, %v2445_v57 }
 0x14b   : > { %v2449_v10 = vpop.eup %2448  ;;  %1838 = vst [vmem:[%s2744_s15 + $0x78] sm:$0xff] %v1311_v59  ;;  %v1670_v41 = vor.u32 1.1754944e-38, %v1669_v55  ;;  %v1682_v14 = vand.u32 2147483647, %v3242_v2  ;;  %v1684_v61 = vand.u32 2147483648, %v3242_v2  ;;  %v3270_v0 = vadd.f32 1.0, %v2447_v48 }
 0x14c   : > { %v1666_v24 = vsel %vm1665_vm1, %v2441_v36, %v1662_v3  ;;  %v1314_v19 = vmul.f32 %v2449_v10, %v3233_v22  ;;  %vm1318_vm2 = vweird.f32 %v3233_v22  ;;  %2454 = vrcp.f32 %v3262_v43 }
 0x14d   : > { %v1671_v63 = vsel %vm3250_vm15, %v1670_v41, %v1666_v24  ;;  %vm3279_vm3 = vcmp.eq.f32.partialorder %v1322_v1, 8.507059e+37  ;;  %v854_v21 = vadd.f32 %v853_v50, %v720_v47  ;;  %v662_v13 = vadd.f32 %v3054_v33, %v3228_v11 }
 0x14e   : > { %v2451_v23 = vpop.eup %2450  ;;  %1862 = vst [vmem:[%s2744_s15 + $0x138] sm:$0xff] %v1671_v63  ;;  %v1315_v12 = vsub.f32 1.0, %v1314_v19  ;;  %v1325_v27 = vor.u32 1.1754944e-38, %v1324_v6  ;;  %vm1678_vm4 = vweird.f32 %v3242_v2  ;;  %2456 = vrcp.f32 %v3270_v0  ;;  %v724_v22 = vpop.f32.mrf.mxu2 }
 0x14f   : > { %v2453_v4 = vpop.eup %2452  ;;  %v1674_v32 = vmul.f32 %v2451_v23, %v3242_v2  ;;  %vm3289_vm5 = vcmp.eq.f32.partialorder %v1682_v14, 8.507059e+37  ;;  %v1685_v17 = vor.u32 1.1754944e-38, %v1684_v61  ;;  %v1337_v29 = vand.u32 2147483647, %v3262_v43 }
 0x150   : > { %v1339_v11 = vand.u32 2147483648, %v3262_v43  ;;  %v1316_v49 = vmul.f32 %v2449_v10, %v1315_v12  ;;  %vm1319_vm0 = vweird.f32 %v2449_v10  ;;  %v1699_v58 = vand.u32 2147483648, %v3270_v0  ;;  %v666_v1 = vpop.f32.mrf.mxu0 }
 0x151   : > { %v3296_v56 = vadd.f32 1.0, %v2453_v4  ;;  %v1675_v36 = vsub.f32 1.0, %v1674_v32  ;;  %v1697_v37 = vand.u32 2147483647, %v3270_v0  ;;  %v2240_v26 = vmul.f32 -1.442695, %v854_v21  ;;  %vm1320_vm8 = vmor %vm1318_vm2, %vm1319_vm0  ;;  %v858_v42 = vpop.f32.mrf.mxu3 }
 0x152   : > { %v796_v28 = vadd.f32 %v3124_v51, %v662_v13  ;;  %v2455_v15 = vpop.eup %2454  ;;  %v1317_v25 = vadd.f32 %v2449_v10, %v1316_v49  ;;  %vm1679_vm6 = vweird.f32 %v2451_v23  ;;  %vm1333_vm7 = vweird.f32 %v3262_v43 }
 0x153   : > { %2458 = vrcp.f32 %v3296_v56  ;;  %v1676_v7 = vmul.f32 %v2451_v23, %v1675_v36  ;;  %v1329_v45 = vmul.f32 %v2455_v15, %v3262_v43  ;;  %vm3307_vm9 = vcmp.eq.f32.partialorder %v1337_v29, 8.507059e+37  ;;  %vm1680_vm12 = vmor %vm1678_vm4, %vm1679_vm6  ;;  %v808_v43 = vpop.f32.mrf.mxu1 }
 0x154   : > { %v1340_v51 = vor.u32 1.1754944e-38, %v1339_v11  ;;  %vm1693_vm10 = vweird.f32 %v3270_v0  ;;  %v722_v46 = vadd.f32 %v3054_v33, %v721_v9  ;;  %v2457_v5 = vpop.eup %2456  ;;  %v1321_v52 = vsel %vm1320_vm8, %v2449_v10, %v1317_v25 }
 0x155   : > { %v1700_v39 = vor.u32 1.1754944e-38, %v1699_v58  ;;  %2460 = vpow2.f32 %v2240_v26  ;;  %v2217_v55 = vmul.f32 -1.442695, %v796_v28  ;;  %v1326_v38 = vsel %vm3279_vm3, %v1325_v27, %v1321_v52 }
 0x156   : > { %v1677_v34 = vadd.f32 %v2451_v23, %v1676_v7  ;;  %v1330_v53 = vsub.f32 1.0, %v1329_v45  ;;  %v1689_v57 = vmul.f32 %v2457_v5, %v3270_v0  ;;  %vm3316_vm11 = vcmp.eq.f32.partialorder %v1697_v37, 8.507059e+37  ;;  %1839 = vst [vmem:[%s2744_s15 + $0x80] sm:$0xff] %v1326_v38  ;;  %v726_v36 = vpop.f32.mrf.mxu2 }
 0x157   : > { %vm1334_vm13 = vweird.f32 %v2455_v15  ;;  %v1352_v47 = vand.u32 2147483647, %v3296_v56  ;;  %v1354_v48 = vand.u32 2147483648, %v3296_v56  ;;  %2462 = vpow2.f32 %v2217_v55 }
 0x158   : > { %v1681_v59 = vsel %vm1680_vm12, %v2451_v23, %v1677_v34  ;;  %v1331_v3 = vmul.f32 %v2455_v15, %v1330_v53  ;;  %v1690_v6 = vsub.f32 1.0, %v1689_v57  ;;  %v856_v9 = vadd.f32 %v855_v40, %v722_v46  ;;  %vm1335_vm15 = vmor %vm1333_vm7, %vm1334_vm13 }
 0x159   : > { %v2459_v10 = vpop.eup %2458  ;;  %v1686_v41 = vsel %vm3289_vm5, %v1685_v17, %v1681_v59  ;;  %v665_v14 = vadd.f32 %v3054_v33, %v3272_v18  ;;  %v725_v2 = vadd.f32 %v3054_v33, %v724_v22  ;;  %v667_v61 = vadd.f32 %v3054_v33, %v666_v1  ;;  %v860_v55 = vpop.f32.mrf.mxu3 }
 0x15a   : > { %1863 = vst [vmem:[%s2744_s15 + $0x140] sm:$0xff] %v1686_v41  ;;  %v1332_v24 = vadd.f32 %v2455_v15, %v1331_v3  ;;  %v1691_v19 = vmul.f32 %v2457_v5, %v1690_v6  ;;  %vm1694_vm14 = vweird.f32 %v2457_v5  ;;  %v1344_v63 = vmul.f32 %v2459_v10, %v3296_v56 }
 0x15b   : > { %v2461_v21 = vpop.eup %2460  ;;  %v2241_v13 = vmul.f32 -1.442695, %v856_v9  ;;  %v799_v18 = vadd.f32 %v3169_v31, %v665_v14  ;;  %v859_v23 = vadd.f32 %v858_v42, %v725_v2  ;;  %v801_v12 = vadd.f32 %v3215_v8, %v667_v61  ;;  %vm1695_vm1 = vmor %vm1693_vm10, %vm1694_vm14 }
 0x15c   : > { %v1336_v27 = vsel %vm1335_vm15, %v2455_v15, %v1332_v24  ;;  %v1692_v4 = vadd.f32 %v2457_v5, %v1691_v19  ;;  %v1345_v32 = vsub.f32 1.0, %v1344_v63  ;;  %v3339_v20 = vadd.f32 1.0, %v2461_v21  ;;  %v3402_v21 = vpop.f32.mrf.mxu1 }
 0x15d   : > { %v2463_v17 = vpop.eup %2462  ;;  %v1341_v29 = vsel %vm3307_vm9, %v1340_v51, %v1336_v27  ;;  %vm1349_vm2 = vweird.f32 %v2459_v10  ;;  %2464 = vpow2.f32 %v2241_v13  ;;  %v2218_v31 = vmul.f32 -1.442695, %v799_v18  ;;  %v669_v51 = vpop.f32.mrf.mxu0 }
 0x15e   : > { %1840 = vst [vmem:[%s2744_s15 + $0x88] sm:$0xff] %v1341_v29  ;;  %v1696_v8 = vsel %vm1695_vm1, %v2457_v5, %v1692_v4  ;;  %v1346_v11 = vmul.f32 %v2459_v10, %v1345_v32  ;;  %2466 = vrcp.f32 %v3339_v20  ;;  %v2242_v40 = vmul.f32 -1.442695, %v859_v23  ;;  %v3395_v61 = vpop.f32.mrf.mxu2 }
 0x15f   : > { %v1701_v49 = vsel %vm3316_vm11, %v1700_v39, %v1696_v8  ;;  %vm1348_vm3 = vweird.f32 %v3296_v56  ;;  %v3351_v58 = vadd.f32 1.0, %v2463_v17  ;;  %2468 = vpow2.f32 %v2218_v31 }
 0x160   : > { %1864 = vst [vmem:[%s2744_s15 + $0x148] sm:$0xff] %v1701_v49  ;;  %v1347_v0 = vadd.f32 %v2459_v10, %v1346_v11  ;;  %v2219_v37 = vmul.f32 -1.442695, %v801_v12  ;;  %v809_v26 = vadd.f32 %v808_v43, %v3058_v44  ;;  %v3357_v28 = vadd.f32 %v3054_v33, %v2714_v16  ;;  %vm1350_vm4 = vmor %vm1348_vm3, %vm1349_vm2 }
 0x161   : > { %vm1353_vm5 = vcmp.eq.f32.partialorder %v1352_v47, 8.507059e+37  ;;  %v1355_v15 = vor.u32 1.1754944e-38, %v1354_v48  ;;  %2470 = vrcp.f32 %v3351_v58  ;;  %v1712_v25 = vand.u32 2147483647, %v3339_v20 }
 0x162   : > { %v1351_v56 = vsel %vm1350_vm4, %v2459_v10, %v1347_v0  ;;  %v1714_v7 = vand.u32 2147483648, %v3339_v20  ;;  %2472 = vpow2.f32 %v2242_v40  ;;  %v1367_v44 = vand.u32 2147483647, %v3351_v58 }
 0x163   : > { %v2465_v45 = vpop.eup %2464  ;;  %v1356_v50 = vsel %vm1353_vm5, %v1355_v15, %v1351_v56  ;;  %2474 = vpow2.f32 %v2219_v37  ;;  %v727_v16 = vadd.f32 %v3054_v33, %v726_v36  ;;  %v3367_v5 = vadd.f32 %v3054_v33, %v2724_v30  ;;  %v3425_v36 = vpop.f32.mrf.mxu3 }
 0x164   : > { %v2467_v46 = vpop.eup %2466  ;;  %1841 = vst [vmem:[%s2744_s15 + $0x90] sm:$0xff] %v1356_v50  ;;  %v1369_v52 = vand.u32 2147483648, %v3351_v58  ;;  %v3371_v39 = vadd.f32 1.0, %v2465_v45  ;;  %v2222_v22 = vmul.f32 -1.442695, %v809_v26  ;;  %v3375_v38 = vadd.f32 %v3054_v33, %v2748_v54  ;;  %v3454_v30 = vpop.f32.mrf.mxu1 }
 0x165   : > { %v1704_v34 = vmul.f32 %v2467_v46, %v3339_v20  ;;  %vm1708_vm0 = vweird.f32 %v3339_v20  ;;  %v861_v53 = vadd.f32 %v860_v55, %v727_v16  ;;  %v2469_v57 = vpop.eup %2468  ;;  %vm3379_vm6 = vcmp.eq.f32.partialorder %v1712_v25, 8.507059e+37 }
 0x166   : > { %v1715_v62 = vor.u32 1.1754944e-38, %v1714_v7  ;;  %2476 = vrcp.f32 %v3371_v39  ;;  %v670_v1 = vadd.f32 %v3054_v33, %v669_v51  ;;  %vm1363_vm7 = vweird.f32 %v3351_v58 }
 0x167   : > { %v2471_v47 = vpop.eup %2470  ;;  %v1705_v48 = vsub.f32 1.0, %v1704_v34  ;;  %v3386_v54 = vadd.f32 1.0, %v2469_v57  ;;  %v2243_v59 = vmul.f32 -1.442695, %v861_v53  ;;  %vm3389_vm8 = vcmp.eq.f32.partialorder %v1367_v44, 8.507059e+37 }
 0x168   : > { %v2473_v3 = vpop.eup %2472  ;;  %v1359_v6 = vmul.f32 %v2471_v47, %v3351_v58  ;;  %v1370_v10 = vor.u32 1.1754944e-38, %v1369_v52  ;;  %2478 = vpow2.f32 %v2222_v22  ;;  %vm1709_vm9 = vweird.f32 %v2467_v46  ;;  %v3448_v22 = vpop.f32.mrf.mxu2 }
 0x169   : > { %v2475_v41 = vpop.eup %2474  ;;  %v1706_v14 = vmul.f32 %v2467_v46, %v1705_v48  ;;  %v1727_v2 = vand.u32 2147483647, %v3371_v39  ;;  %2480 = vrcp.f32 %v3386_v54  ;;  %v3397_v19 = vadd.f32 1.0, %v2473_v3  ;;  %vm1710_vm11 = vmor %vm1708_vm0, %vm1709_vm9 }
 0x16a   : > { %v1360_v24 = vsub.f32 1.0, %v1359_v6  ;;  %v3399_v63 = vadd.f32 1.0, %v2475_v41  ;;  %v804_v42 = vadd.f32 %v3255_v35, %v670_v1  ;;  %vm1364_vm10 = vweird.f32 %v2471_v47 }
 0x16b   : > { %v1707_v13 = vadd.f32 %v2467_v46, %v1706_v14  ;;  %v1729_v18 = vand.u32 2147483648, %v3371_v39  ;;  %2482 = vpow2.f32 %v2243_v59  ;;  %v1382_v27 = vand.u32 2147483647, %v3386_v54  ;;  %vm1365_vm14 = vmor %vm1363_vm7, %vm1364_vm10 }
 0x16c   : > { %v2477_v23 = vpop.eup %2476  ;;  %v1361_v12 = vmul.f32 %v2471_v47, %v1360_v24  ;;  %v1384_v4 = vand.u32 2147483648, %v3386_v54  ;;  %2484 = vrcp.f32 %v3397_v19  ;;  %vm1723_vm12 = vweird.f32 %v3371_v39  ;;  %v815_v26 = vpop.f32.mrf.mxu1 }
 0x16d   : > { %v1711_v35 = vsel %vm1710_vm11, %v2467_v46, %v1707_v13  ;;  %v1719_v32 = vmul.f32 %v2477_v23, %v3371_v39  ;;  %vm3412_vm13 = vcmp.eq.f32.partialorder %v1727_v2, 8.507059e+37  ;;  %2486 = vrcp.f32 %v3399_v63 }
 0x16e   : > { %v2479_v29 = vpop.eup %2478  ;;  %v1716_v20 = vsel %vm3379_vm6, %v1715_v62, %v1711_v35  ;;  %v1362_v31 = vadd.f32 %v2471_v47, %v1361_v12  ;;  %v2220_v43 = vmul.f32 -1.442695, %v804_v42  ;;  %v1730_v40 = vor.u32 1.1754944e-38, %v1729_v18 }
 0x16f   : > { %v2481_v8 = vpop.eup %2480  ;;  %1865 = vst [vmem:[%s2744_s15 + $0x150] sm:$0xff] %v1716_v20  ;;  %v1720_v11 = vsub.f32 1.0, %v1719_v32  ;;  %vm1378_vm15 = vweird.f32 %v3386_v54  ;;  %v1742_v49 = vand.u32 2147483647, %v3397_v19  ;;  %vm3428_vm1 = vcmp.eq.f32.partialorder %v1382_v27, 8.507059e+37 }
 0x170   : > { %v1366_v0 = vsel %vm1365_vm14, %v2471_v47, %v1362_v31  ;;  %v1374_v37 = vmul.f32 %v2481_v8, %v3386_v54  ;;  %v1385_v15 = vor.u32 1.1754944e-38, %v1384_v4  ;;  %v1744_v58 = vand.u32 2147483648, %v3397_v19 }
 0x171   : > { %v2483_v56 = vpop.eup %2482  ;;  %v1371_v25 = vsel %vm3389_vm8, %v1370_v10, %v1366_v0  ;;  %v1721_v7 = vmul.f32 %v2477_v23, %v1720_v11  ;;  %vm1724_vm2 = vweird.f32 %v2477_v23  ;;  %v1397_v45 = vand.u32 2147483647, %v3399_v63 }
 0x172   : > { %v2485_v50 = vpop.eup %2484  ;;  %1842 = vst [vmem:[%s2744_s15 + $0x98] sm:$0xff] %v1371_v25  ;;  %v1375_v44 = vsub.f32 1.0, %v1374_v37  ;;  %vm1738_vm3 = vweird.f32 %v3397_v19  ;;  %v3438_v16 = vadd.f32 1.0, %v2479_v29  ;;  %2488 = vpow2.f32 %v2220_v43  ;;  %vm1725_vm0 = vmor %vm1723_vm12, %vm1724_vm2  ;;  %v2529_v25 = vld [vmem:[%s3624_s2] ss:$0 sm:$0xff] }
 0x173   : > { %v1722_v51 = vadd.f32 %v2477_v23, %v1721_v7  ;;  %v1734_v46 = vmul.f32 %v2485_v50, %v3397_v19  ;;  %vm3441_vm4 = vcmp.eq.f32.partialorder %v1742_v49, 8.507059e+37  ;;  %vm1393_vm5 = vweird.f32 %v3399_v63  ;;  %v2487_v34 = vpop.eup %2486 }
 0x174   : > { %v3446_v55 = vadd.f32 1.0, %v2483_v56  ;;  %v1376_v53 = vmul.f32 %v2481_v8, %v1375_v44  ;;  %vm1379_vm6 = vweird.f32 %v2481_v8  ;;  %v1745_v57 = vor.u32 1.1754944e-38, %v1744_v58 }
 0x175   : > { %2490 = vrcp.f32 %v3438_v16  ;;  %v1726_v62 = vsel %vm1725_vm0, %v2477_v23, %v1722_v51  ;;  %v1735_v1 = vsub.f32 1.0, %v1734_v46  ;;  %v1389_v47 = vmul.f32 %v2487_v34, %v3399_v63  ;;  %vm1380_vm9 = vmor %vm1378_vm15, %vm1379_vm6  ;;  %v865_v23 = vpop.f32.mrf.mxu3 }
 0x176   : > { %vm3457_vm7 = vcmp.eq.f32.partialorder %v1397_v45, 8.507059e+37  ;;  %v1731_v59 = vsel %vm3412_vm13, %v1730_v40, %v1726_v62  ;;  %v1377_v39 = vadd.f32 %v2481_v8, %v1376_v53  ;;  %vm1739_vm8 = vweird.f32 %v2485_v50 }
 0x177   : > { %v1399_v3 = vand.u32 2147483648, %v3399_v63  ;;  %1866 = vst [vmem:[%s2744_s15 + $0x158] sm:$0xff] %v1731_v59  ;;  %v1736_v6 = vmul.f32 %v2485_v50, %v1735_v1  ;;  %v1390_v9 = vsub.f32 1.0, %v1389_v47  ;;  %v1442_v10 = vand.u32 2147483647, %v3438_v16  ;;  %vm1740_vm11 = vmor %vm1738_vm3, %vm1739_vm8 }
 0x178   : > { %2492 = vrcp.f32 %v3446_v55  ;;  %v2489_v41 = vpop.eup %2488  ;;  %v1381_v14 = vsel %vm1380_vm9, %v2481_v8, %v1377_v39  ;;  %vm1394_vm10 = vweird.f32 %v2487_v34  ;;  %v1444_v2 = vand.u32 2147483648, %v3438_v16 }
 0x179   : > { %v1759_v24 = vand.u32 2147483648, %v3446_v55  ;;  %v1386_v42 = vsel %vm3428_vm1, %v1385_v15, %v1381_v14  ;;  %v1737_v13 = vadd.f32 %v2485_v50, %v1736_v6  ;;  %v1391_v54 = vmul.f32 %v2487_v34, %v1390_v9  ;;  %vm1395_vm14 = vmor %vm1393_vm5, %vm1394_vm10 }
 0x17a   : > { %v3473_v18 = vadd.f32 1.0, %v2489_v41  ;;  %1843 = vst [vmem:[%s2744_s15 + $0xa0] sm:$0xff] %v1386_v42  ;;  %v1400_v27 = vor.u32 1.1754944e-38, %v1399_v3  ;;  %vm1438_vm12 = vweird.f32 %v3438_v16  ;;  %v1757_v4 = vand.u32 2147483647, %v3446_v55 }
 0x17b   : > { %v2491_v12 = vpop.eup %2490  ;;  %v811_v35 = vadd.f32 %v3402_v21, %v3357_v28  ;;  %v1741_v32 = vsel %vm1740_vm11, %v2485_v50, %v1737_v13  ;;  %v1392_v17 = vadd.f32 %v2487_v34, %v1391_v54  ;;  %vm3484_vm13 = vcmp.eq.f32.partialorder %v1442_v10, 8.507059e+37 }
 0x17c   : > { %v1434_v29 = vmul.f32 %v2491_v12, %v3438_v16  ;;  %v730_v19 = vadd.f32 %v3054_v33, %v3395_v61  ;;  %v1746_v31 = vsel %vm3441_vm4, %v1745_v57, %v1741_v32  ;;  %v1445_v43 = vor.u32 1.1754944e-38, %v1444_v2  ;;  %v671_v33 = vpop.f32.mrf.mxu0  ;;  %v734_v61 = vpop.f32.mrf.mxu2 }
 0x17d   : > { %vm1753_vm15 = vweird.f32 %v3446_v55  ;;  %2494 = vrcp.f32 %v3473_v18  ;;  %1867 = vst [vmem:[%s2744_s15 + $0x160] sm:$0xff] %v1746_v31  ;;  %v1396_v21 = vsel %vm1395_vm14, %v2487_v34, %v1392_v17  ;;  %v1760_v11 = vor.u32 1.1754944e-38, %v1759_v24 }
 0x17e   : > { %v2493_v28 = vpop.eup %2492  ;;  %v1435_v8 = vsub.f32 1.0, %v1434_v29  ;;  %v2223_v40 = vmul.f32 -1.442695, %v811_v35  ;;  %v1401_v49 = vsel %vm3457_vm7, %v1400_v27, %v1396_v21  ;;  %vm1439_vm1 = vweird.f32 %v2491_v12 }
 0x17f   : > { %v1749_v63 = vmul.f32 %v2493_v28, %v3446_v55  ;;  %vm3501_vm2 = vcmp.eq.f32.partialorder %v1757_v4, 8.507059e+37  ;;  %v1412_v37 = vand.u32 2147483647, %v3473_v18  ;;  %1844 = vst [vmem:[%s2744_s15 + $0xa8] sm:$0xff] %v1401_v49  ;;  %vm1754_vm3 = vweird.f32 %v2493_v28  ;;  %vm1440_vm4 = vmor %vm1438_vm12, %vm1439_vm1 }
 0x180   : > { %v1436_v15 = vmul.f32 %v2491_v12, %v1435_v8  ;;  %2496 = vpow2.f32 %v2223_v40  ;;  %v864_v58 = vadd.f32 %v3425_v36, %v730_v19  ;;  %v672_v7 = vadd.f32 %v2529_v25, %v671_v33  ;;  %vm1755_vm5 = vmor %vm1753_vm15, %vm1754_vm3 }
 0x181   : > { %v1750_v56 = vsub.f32 1.0, %v1749_v63  ;;  %v814_v45 = vadd.f32 %v3454_v30, %v3367_v5  ;;  %v732_v50 = vadd.f32 %v2529_v25, %v3448_v22  ;;  %v816_v46 = vadd.f32 %v815_v26, %v3375_v38  ;;  %v868_v30 = vpop.f32.mrf.mxu3 }
 0x182   : > { %v1437_v44 = vadd.f32 %v2491_v12, %v1436_v15  ;;  %v2244_v51 = vmul.f32 -1.442695, %v864_v58  ;;  %v735_v52 = vadd.f32 %v2529_v25, %v734_v61  ;;  %v806_v53 = vadd.f32 %v3302_v60, %v672_v7 }
 0x183   : > { %v2495_v34 = vpop.eup %2494  ;;  %v1751_v36 = vmul.f32 %v2493_v28, %v1750_v56  ;;  %v2224_v57 = vmul.f32 -1.442695, %v814_v45  ;;  %v866_v62 = vadd.f32 %v865_v23, %v732_v50  ;;  %v1414_v22 = vand.u32 2147483648, %v3473_v18 }
 0x184   : > { %v1441_v1 = vsel %vm1440_vm4, %v2491_v12, %v1437_v44  ;;  %v1404_v5 = vmul.f32 %v2495_v34, %v3473_v18  ;;  %2498 = vpow2.f32 %v2244_v51  ;;  %v2221_v48 = vmul.f32 -1.442695, %v806_v53  ;;  %v736_v14 = vpop.f32.mrf.mxu2 }
 0x185   : > { %v1446_v38 = vsel %vm3484_vm13, %v1445_v43, %v1441_v1  ;;  %v1752_v47 = vadd.f32 %v2493_v28, %v1751_v36  ;;  %2500 = vpow2.f32 %v2224_v57  ;;  %v2245_v59 = vmul.f32 -1.442695, %v866_v62 }
 0x186   : > { %v2497_v16 = vpop.eup %2496  ;;  %1847 = vst [vmem:[%s2744_s15 + $0xc0] sm:$0xff] %v1446_v38  ;;  %v1405_v60 = vsub.f32 1.0, %v1404_v5  ;;  %v2225_v39 = vmul.f32 -1.442695, %v816_v46  ;;  %2502 = vpow2.f32 %v2221_v48  ;;  %v869_v9 = vadd.f32 %v868_v30, %v735_v52 }
 0x187   : > { %v1756_v3 = vsel %vm1755_vm5, %v2493_v28, %v1752_v47  ;;  %v3527_v6 = vadd.f32 1.0, %v2497_v16  ;;  %vm1409_vm0 = vweird.f32 %v2495_v34  ;;  %2504 = vpow2.f32 %v2245_v59 }
 0x188   : > { %v1761_v10 = vsel %vm3501_vm2, %v1760_v11, %v1756_v3  ;;  %v1406_v41 = vmul.f32 %v2495_v34, %v1405_v60  ;;  %vm1408_vm6 = vweird.f32 %v3473_v18  ;;  %v1415_v24 = vor.u32 1.1754944e-38, %v1414_v22 }
 0x189   : > { %1868 = vst [vmem:[%s2744_s15 + $0x168] sm:$0xff] %v1761_v10  ;;  %2506 = vrcp.f32 %v3527_v6  ;;  %vm1410_vm7 = vmor %vm1408_vm6, %vm1409_vm0  ;;  %v2246_v54 = vmul.f32 -1.442695, %v869_v9  ;;  %v737_v23 = vadd.f32 %v2529_v25, %v736_v14  ;;  %vm1413_vm8 = vcmp.eq.f32.partialorder %v1412_v37, 8.507059e+37  ;;  %v870_v20 = vpop.f32.mrf.mxu3 }
 0x18a   : > { %v2499_v55 = vpop.eup %2498  ;;  %v1407_v2 = vadd.f32 %v2495_v34, %v1406_v41  ;;  %2508 = vpow2.f32 %v2225_v39  ;;  %v1457_v18 = vand.u32 2147483647, %v3527_v6  ;;  %v1459_v17 = vand.u32 2147483648, %v3527_v6 }
 0x18b   : > { %v2501_v42 = vpop.eup %2500  ;;  %v3534_v13 = vadd.f32 1.0, %v2499_v55  ;;  %v871_v43 = vadd.f32 %v870_v20, %v737_v23  ;;  %vm1453_vm9 = vweird.f32 %v3527_v6 }
 0x18c   : > { %v1411_v12 = vsel %vm1410_vm7, %v2495_v34, %v1407_v2  ;;  %v3536_v27 = vadd.f32 1.0, %v2501_v42  ;;  %v2503_v4 = vpop.eup %2502  ;;  %vm3552_vm10 = vcmp.eq.f32.partialorder %v1457_v18, 8.507059e+37  ;;  %v1460_v61 = vor.u32 1.1754944e-38, %v1459_v17 }
 0x18d   : > { %v1416_v35 = vsel %vm1413_vm8, %v1415_v24, %v1411_v12  ;;  %2510 = vrcp.f32 %v3534_v13  ;;  %v2505_v32 = vpop.eup %2504  ;;  %v3542_v29 = vadd.f32 1.0, %v2503_v4  ;;  %v1772_v21 = vand.u32 2147483647, %v3534_v13 }
 0x18e   : > { %1845 = vst [vmem:[%s2744_s15 + $0xb0] sm:$0xff] %v1416_v35  ;;  %2512 = vrcp.f32 %v3536_v27  ;;  %v3545_v31 = vadd.f32 1.0, %v2505_v32  ;;  %v1774_v11 = vand.u32 2147483648, %v3534_v13  ;;  %vm1768_vm11 = vweird.f32 %v3534_v13 }
 0x18f   : > { %v2507_v19 = vpop.eup %2506  ;;  %2514 = vpow2.f32 %v2246_v54  ;;  %vm1468_vm12 = vweird.f32 %v3536_v27  ;;  %v1472_v63 = vand.u32 2147483647, %v3536_v27  ;;  %v2247_v0 = vmul.f32 -1.442695, %v871_v43 }
 0x190   : > { %v1449_v28 = vmul.f32 %v2507_v19, %v3527_v6  ;;  %2516 = vrcp.f32 %v3542_v29  ;;  %v2509_v8 = vpop.eup %2508  ;;  %vm1454_vm13 = vweird.f32 %v2507_v19  ;;  %vm3561_vm14 = vcmp.eq.f32.partialorder %v1772_v21, 8.507059e+37 }
 0x191   : > { %2518 = vrcp.f32 %v3545_v31  ;;  %v3565_v56 = vadd.f32 1.0, %v2509_v8  ;;  %v1775_v7 = vor.u32 1.1754944e-38, %v1774_v11  ;;  %vm1423_vm15 = vweird.f32 %v3542_v29  ;;  %vm1455_vm1 = vmor %vm1453_vm9, %vm1454_vm13 }
 0x192   : > { %v1450_v40 = vsub.f32 1.0, %v1449_v28  ;;  %v1474_v50 = vand.u32 2147483648, %v3536_v27  ;;  %v1427_v52 = vand.u32 2147483647, %v3542_v29  ;;  %v1429_v36 = vand.u32 2147483648, %v3542_v29 }
 0x193   : > { %v2511_v49 = vpop.eup %2510  ;;  %2520 = vrcp.f32 %v3565_v56  ;;  %vm3582_vm5 = vcmp.eq.f32.partialorder %v1472_v63, 8.507059e+37  ;;  %v1787_v10 = vand.u32 2147483647, %v3545_v31  ;;  %v1789_v41 = vand.u32 2147483648, %v3545_v31 }
 0x194   : > { %v2513_v37 = vpop.eup %2512  ;;  %v1451_v26 = vmul.f32 %v2507_v19, %v1450_v40  ;;  %v1764_v15 = vmul.f32 %v2511_v49, %v3534_v13  ;;  %vm1769_vm2 = vweird.f32 %v2511_v49  ;;  %v1475_v60 = vor.u32 1.1754944e-38, %v1474_v50 }
 0x195   : > { %v2515_v25 = vpop.eup %2514  ;;  %v1464_v45 = vmul.f32 %v2513_v37, %v3536_v27  ;;  %vm1469_vm3 = vweird.f32 %v2513_v37  ;;  %vm1770_vm0 = vmor %vm1768_vm11, %vm1769_vm2  ;;  %v1430_v42 = vor.u32 1.1754944e-38, %v1429_v36  ;;  %vm1783_vm9 = vweird.f32 %v3545_v31 }
 0x196   : > { %v2517_v44 = vpop.eup %2516  ;;  %v1452_v51 = vadd.f32 %v2507_v19, %v1451_v26  ;;  %v1765_v46 = vsub.f32 1.0, %v1764_v15  ;;  %v3576_v5 = vadd.f32 1.0, %v2515_v25  ;;  %vm1470_vm6 = vmor %vm1468_vm12, %vm1469_vm3  ;;  %v1790_v4 = vor.u32 1.1754944e-38, %v1789_v41 }
 0x197   : > { %v1419_v34 = vmul.f32 %v2517_v44, %v3542_v29  ;;  %v1465_v53 = vsub.f32 1.0, %v1464_v45  ;;  %v2519_v57 = vpop.eup %2518  ;;  %vm1424_vm4 = vweird.f32 %v2517_v44  ;;  %vm1788_vm12 = vcmp.eq.f32.partialorder %v1787_v10, 8.507059e+37 }
 0x198   : > { %v1456_v62 = vsel %vm1455_vm1, %v2507_v19, %v1452_v51  ;;  %v1766_v1 = vmul.f32 %v2511_v49, %v1765_v46  ;;  %v1779_v47 = vmul.f32 %v2519_v57, %v3545_v31  ;;  %2522 = vrcp.f32 %v3576_v5  ;;  %vm1425_vm8 = vmor %vm1423_vm15, %vm1424_vm4 }
 0x199   : > { %v1461_v22 = vsel %vm3552_vm10, %v1460_v61, %v1456_v62  ;;  %v1420_v30 = vsub.f32 1.0, %v1419_v34  ;;  %v1466_v38 = vmul.f32 %v2513_v37, %v1465_v53  ;;  %v2521_v6 = vpop.eup %2520  ;;  %vm1784_vm7 = vweird.f32 %v2519_v57 }
 0x19a   : > { %1848 = vst [vmem:[%s2744_s15 + $0xc8] sm:$0xff] %v1461_v22  ;;  %v1767_v48 = vadd.f32 %v2511_v49, %v1766_v1  ;;  %v1780_v3 = vsub.f32 1.0, %v1779_v47  ;;  %v1479_v54 = vmul.f32 %v2521_v6, %v3565_v56  ;;  %vm1428_vm10 = vcmp.eq.f32.partialorder %v1427_v52, 8.507059e+37  ;;  %vm1785_vm11 = vmor %vm1783_vm9, %vm1784_vm7 }
 0x19b   : > { %v1421_v59 = vmul.f32 %v2517_v44, %v1420_v30  ;;  %v1467_v39 = vadd.f32 %v2513_v37, %v1466_v38  ;;  %2524 = vpow2.f32 %v2247_v0  ;;  %v1487_v17 = vand.u32 2147483647, %v3565_v56 }
 0x19c   : > { %v1771_v9 = vsel %vm1770_vm0, %v2511_v49, %v1767_v48  ;;  %v1781_v24 = vmul.f32 %v2519_v57, %v1780_v3  ;;  %v1480_v35 = vsub.f32 1.0, %v1479_v54  ;;  %v1489_v29 = vand.u32 2147483648, %v3565_v56 }
 0x19d   : > { %v1776_v14 = vsel %vm3561_vm14, %v1775_v7, %v1771_v9  ;;  %v1422_v55 = vadd.f32 %v2517_v44, %v1421_v59  ;;  %v1471_v2 = vsel %vm1470_vm6, %v2513_v37, %v1467_v39  ;;  %vm1484_vm13 = vweird.f32 %v2521_v6 }
 0x19e   : > { %1869 = vst [vmem:[%s2744_s15 + $0x170] sm:$0xff] %v1776_v14  ;;  %v1476_v13 = vsel %vm3582_vm5, %v1475_v60, %v1471_v2  ;;  %v1782_v12 = vadd.f32 %v2519_v57, %v1781_v24  ;;  %v2523_v32 = vpop.eup %2522  ;;  %v1481_v19 = vmul.f32 %v2521_v6, %v1480_v35  ;;  %vm1483_vm14 = vweird.f32 %v3565_v56 }
 0x19f   : > { %v1426_v23 = vsel %vm1425_vm8, %v2517_v44, %v1422_v55  ;;  %1849 = vst [vmem:[%s2744_s15 + $0xd0] sm:$0xff] %v1476_v13  ;;  %v1794_v31 = vmul.f32 %v2523_v32, %v3576_v5  ;;  %vm1485_vm15 = vmor %vm1483_vm14, %vm1484_vm13  ;;  %vm1488_vm1 = vcmp.eq.f32.partialorder %v1487_v17, 8.507059e+37  ;;  %v1490_v8 = vor.u32 1.1754944e-38, %v1489_v29 }
 0x1a0   : > { %v1431_v27 = vsel %vm1428_vm10, %v1430_v42, %v1426_v23  ;;  %v1786_v18 = vsel %vm1785_vm11, %v2519_v57, %v1782_v12  ;;  %v1482_v43 = vadd.f32 %v2521_v6, %v1481_v19  ;;  %v1802_v11 = vand.u32 2147483647, %v3576_v5 }
 0x1a1   : > { %1846 = vst [vmem:[%s2744_s15 + $0xb8] sm:$0xff] %v1431_v27  ;;  %v1791_v20 = vsel %vm1788_vm12, %v1790_v4, %v1786_v18  ;;  %v1795_v28 = vsub.f32 1.0, %v1794_v31  ;;  %v2525_v21 = vpop.eup %2524  ;;  %v1804_v40 = vand.u32 2147483648, %v3576_v5  ;;  %vm1799_vm2 = vweird.f32 %v2523_v32 }
 0x1a2   : > { %1870 = vst [vmem:[%s2744_s15 + $0x178] sm:$0xff] %v1791_v20  ;;  %v1486_v33 = vsel %vm1485_vm15, %v2521_v6, %v1482_v43  ;;  %v1072_v49 = vadd.f32 1.0, %v2525_v21  ;;  %vm1798_vm3 = vweird.f32 %v3576_v5  ;;  %vm1803_vm5 = vcmp.eq.f32.partialorder %v1802_v11, 8.507059e+37 }
 0x1a3   : > { %v1796_v61 = vmul.f32 %v2523_v32, %v1795_v28  ;;  %v1491_v63 = vsel %vm1488_vm1, %v1490_v8, %v1486_v33  ;;  %vm1800_vm4 = vmor %vm1798_vm3, %vm1799_vm2  ;;  %v1805_v37 = vor.u32 1.1754944e-38, %v1804_v40 }
 0x1a4   : > { %1850 = vst [vmem:[%s2744_s15 + $0xd8] sm:$0xff] %v1491_v63  ;;  %2526 = vrcp.f32 %v1072_v49  ;;  %v1819_v7 = vand.u32 2147483648, %v1072_v49  ;;  %v1817_v50 = vand.u32 2147483647, %v1072_v49  ;;  %vm1813_vm6 = vweird.f32 %v1072_v49 }
 0x1a5   : > { %v1797_v0 = vadd.f32 %v2523_v32, %v1796_v61 }
 0x1a6   : > { %v1820_v51 = vor.u32 1.1754944e-38, %v1819_v7  ;;  %vm1818_vm8 = vcmp.eq.f32.partialorder %v1817_v50, 8.507059e+37 }
 0x1a7   : > { %v1801_v26 = vsel %vm1800_vm4, %v2523_v32, %v1797_v0 }
 0x1a8   : > { %v1806_v15 = vsel %vm1803_vm5, %v1805_v37, %v1801_v26 }
 0x1a9   : > { %1871 = vst [vmem:[%s2744_s15 + $0x180] sm:$0xff] %v1806_v15 }
 0x1aa   : > { %v2527_v58 = vpop.eup %2526 }
 0x1ab   : > { %v1809_v56 = vmul.f32 %v2527_v58, %v1072_v49  ;;  %vm1814_vm0 = vweird.f32 %v2527_v58 }
 0x1ac   : > { %vm1815_vm7 = vmor %vm1813_vm6, %vm1814_vm0 }
 0x1ad   : > { %v1810_v25 = vsub.f32 1.0, %v1809_v56 }
 0x1af   : > { %v1811_v45 = vmul.f32 %v2527_v58, %v1810_v25 }
 0x1b1   : > { %v1812_v44 = vadd.f32 %v2527_v58, %v1811_v45 }
 0x1b3   : > { %v1816_v46 = vsel %vm1815_vm7, %v2527_v58, %v1812_v44 }
 0x1b4   : > { %v1821_v52 = vsel %vm1818_vm8, %v1820_v51, %v1816_v46 }
 0x1b5   : > { %1872 = vst [vmem:[%s2744_s15 + $0x188] sm:$0xff] %v1821_v52 }
 0x1b6 PF: > { %s13_s12 = sadd.s32 1, %s2536_s12  }
 0x1b7   : > { %p10_p4 = scmp.ge.s32.totalorder %s13_s12, 6  }
 0x1b9   :  { %12 = sbr.rel (!%p10_p4) target bundleno = 1 (0x1), region = 62 }

</bundles_post_ra>
